<compile_context>
chip_gen: v7x
topology: tpu7x:2x2x1
jax: 0.10.0
libtpu: 0.0.40
codegen_flags: <defaults>
</compile_context>

<pallas_src>
import jax
import jax.numpy as jnp
from jax import lax
from jax.experimental import pallas as pl
from jax.experimental.pallas import tpu as pltpu

# ---------------------------------------------------------------------------
# Static network dimensions (fixed by the PyTorch module; fc1 = Linear(32*4*4)
# implies a 1x28x28 input).
# ---------------------------------------------------------------------------
BATCH = 2
IN_C, IN_H, IN_W = 1, 28, 28
K = 5                                   # conv kernel size (both convs)
C1 = 16                                 # conv1 out channels
C1_H = C1_W = IN_H - K + 1              # 24
P1_H = P1_W = C1_H // 2                 # 12
C2 = 32                                 # conv2 out channels
C2_H = C2_W = P1_H - K + 1              # 8
P2_H = P2_W = C2_H // 2                 # 4
FC_IN = C2 * P2_H * P2_W                # 512
FC_OUT = 2

PHASES = 4                              # 2x2 pool phases packed on lanes
K1_GROUP = 32                           # per-phase im2col width (25 -> 32)
CONV1_K = PHASES * K1_GROUP             # 128  (conv1 contraction)
CONV1_N = PHASES * C1                   # 64   (conv1 output lanes)
ROWS_P1 = BATCH * P1_H * P1_W           # 288  pooled rows, pitch 12 / sample
CONV1_ROWS = ROWS_P1 + 8                # 296  (zero-pad so row shifts fit)
CONV2_K = 128                           # 5 dx groups x 16 ch (80) -> 128
POOL1W_ROWS = ROWS_P1 + 4 * P1_W        # 336  (max row shift = 4*12)
OUT2_ROWS = 304                         # 288 + pad (pool2 reads up to +13)


# ---------------------------------------------------------------------------
# Fused kernel: conv1 + relu + pool1 + conv2 + relu + pool2 + flatten + fc
# ---------------------------------------------------------------------------
def _cnn_fused_kernel(p1_ref, w1_ref, b1_ref, w2_ref, b2_ref, wfc_ref, bfc_ref,
                      out_ref, pool1w_ref, out2_ref, mxy_ref, fcin_ref):
    f32 = jnp.float32

    # ---- conv1: one K=128 matmul over the phase-packed im2col ---------------
    a = jnp.dot(p1_ref[...], w1_ref[...], preferred_element_type=f32)  # [296,64]

    # maxpool1 = max over the 4 pool-phase lane groups (16 lanes each).
    # Bias + ReLU commute with the max (monotone, phase-independent), so
    # they are applied once after pooling.
    m = jnp.maximum(jnp.maximum(a[:, 0 * C1:1 * C1], a[:, 1 * C1:2 * C1]),
                    jnp.maximum(a[:, 2 * C1:3 * C1], a[:, 3 * C1:4 * C1]))
    pooled1 = jnp.maximum(m + b1_ref[...], 0.0)                # [296, 16]

    # ---- build the dx-widened pool1 slab for conv2 ---------------------------
    # pool1w[s, 16*dx + ci] = pooled1[s + dx, ci]  (row s = b*144 + y*12 + x).
    # Zero the whole slab once: lanes 80..127 and the pad rows feed the K=128
    # contraction / junk (out-of-image) rows and must be finite (same store
    # count as zeroing only the unwritten region, and no stale-VMEM NaN risk).
    pool1w_ref[...] = jnp.zeros(pool1w_ref.shape, f32)
    for dx in range(K):
        pool1w_ref[pl.ds(0, ROWS_P1), pl.ds(C1 * dx, C1)] = (
            pooled1[dx:dx + ROWS_P1, :])

    # ---- conv2: 5 matmuls with K=128 (dy on rows, dx folded into lanes) ------
    acc2 = jnp.dot(pool1w_ref[pl.ds(0, ROWS_P1), :], w2_ref[0],
                   preferred_element_type=f32)                 # [288, 32]
    for dy in range(1, K):
        acc2 = acc2 + jnp.dot(pool1w_ref[pl.ds(dy * P1_W, ROWS_P1), :],
                              w2_ref[dy], preferred_element_type=f32)
    out2_ref[pl.ds(0, ROWS_P1), :] = jnp.maximum(acc2 + b2_ref[...], 0.0)
    out2_ref[pl.ds(ROWS_P1, OUT2_ROWS - ROWS_P1), :] = (
        jnp.zeros((OUT2_ROWS - ROWS_P1, C2), f32))             # finite pad rows

    # ---- maxpool2: two vectorized shifted-maximum passes over the slab ------
    # mxy[r] = max(out2[r], out2[r+1], out2[r+12], out2[r+13]); only the rows
    # with even (y, x) <= 6 are ever read below, so pad/edge rows are harmless.
    mxy_ref[...] = jnp.maximum(
        jnp.maximum(out2_ref[pl.ds(0, ROWS_P1), :],
                    out2_ref[pl.ds(1, ROWS_P1), :]),
        jnp.maximum(out2_ref[pl.ds(P1_W, ROWS_P1), :],
                    out2_ref[pl.ds(P1_W + 1, ROWS_P1), :]))

    # ---- flatten: gather the 32 valid even-(y,x) rows into [B, 512] ----------
    # (Every 32-lane segment of fcin is written before the FC matmul reads it.)
    for b in range(BATCH):
        for qy in range(P2_H):
            for qx in range(P2_W):
                r = b * (P1_H * P1_W) + (2 * qy) * P1_W + 2 * qx
                pos = qy * P2_W + qx
                fcin_ref[pl.ds(b, 1), pl.ds(pos * C2, C2)] = (
                    mxy_ref[pl.ds(r, 1), :])

    # ---- dropout (inference: identity) + fc ----------------------------------
    # TODO(synk): nn.Dropout(p=0.5) is a no-op in eval mode; a training-mode
    # version would draw a mask with pltpu.prng_seed / prng_random_bits here.
    logits = jnp.dot(fcin_ref[...], wfc_ref[...], preferred_element_type=f32)
    out_ref[...] = logits + bfc_ref[...]


# ---------------------------------------------------------------------------
# Wrapper-side layout plumbing
# ---------------------------------------------------------------------------
def _im2col_phase_packed(x):
    """[B,1,28,28] -> [296, 128] lane-dense conv1 im2col.

    Row  s = b*144 + py*12 + px (pooled output position); rows 288..295 zero.
    Lane l = 32*(sy*2+sx) + (dy*5+dx); lanes 25..31 of each phase group zero.
    Value = x[b, 0, 2*py+sy+dy, 2*px+sx+dx].  Pure data movement (XLA side).
    """
    groups = []
    for sy in range(2):
        for sx in range(2):
            cols = []
            for dy in range(K):
                for dx in range(K):
                    v = x[:, 0,
                          sy + dy:sy + dy + 2 * P1_H - 1:2,
                          sx + dx:sx + dx + 2 * P1_W - 1:2]     # [B, 12, 12]
                    cols.append(v.reshape(-1))                  # (b, py, px)
            g = jnp.stack(cols, axis=1)                         # [288, 25]
            groups.append(jnp.pad(g, ((0, 0), (0, K1_GROUP - K * K))))
    p1 = jnp.concatenate(groups, axis=1)                        # [288, 128]
    return jnp.pad(p1, ((0, CONV1_ROWS - ROWS_P1), (0, 0)))     # [296, 128]


def init_params(key):
    """PyTorch-layout parameters with nn.Conv2d / nn.Linear default init."""
    ks = jax.random.split(key, 6)

    def uni(k, shape, fan_in):
        bound = 1.0 / float(fan_in) ** 0.5
        return jax.random.uniform(k, shape, jnp.float32, -bound, bound)

    return dict(
        w1=uni(ks[0], (C1, IN_C, K, K), IN_C * K * K),          # [16,1,5,5]
        b1=uni(ks[1], (C1,), IN_C * K * K),
        w2=uni(ks[2], (C2, C1, K, K), C1 * K * K),              # [32,16,5,5]
        b2=uni(ks[3], (C2,), C1 * K * K),
        wfc=uni(ks[4], (FC_OUT, FC_IN), FC_IN),                 # [2,512]
        bfc=uni(ks[5], (FC_OUT,), FC_IN),
    )


def prepare_params(params):
    """One-time re-layout of the PyTorch weights into kernel-packed formats
    (hoisted out of the per-forward path, per the performance review)."""
    f32 = jnp.float32
    w1 = params["w1"].astype(f32)
    w2 = params["w2"].astype(f32)
    wfc = params["wfc"].astype(f32)

    # conv1: block-diagonal [128, 64]; block (phase, phase) = [25->32, 16].
    w1m = jnp.transpose(w1.reshape(C1, K * K), (1, 0))          # [25, 16]
    w1bd = jnp.zeros((CONV1_K, CONV1_N), f32)
    for ph in range(PHASES):
        w1bd = w1bd.at[ph * K1_GROUP:ph * K1_GROUP + K * K,
                       ph * C1:(ph + 1) * C1].set(w1m)

    # conv2: per-dy [128, 32] with K index = 16*dx + ci (matches pool1w lanes).
    w2s = jnp.transpose(w2, (2, 3, 1, 0)).reshape(K, K * C1, C2)  # [5, 80, 32]
    w2s = jnp.pad(w2s, ((0, 0), (0, CONV2_K - K * C1), (0, 0)))   # [5,128,32]

    # fc: fcin flatten order is (qy, qx, c); torch flatten order is (c, qy, qx).
    wfcr = jnp.transpose(wfc.reshape(FC_OUT, C2, P2_H, P2_W),
                         (2, 3, 1, 0)).reshape(FC_IN, FC_OUT)     # [512, 2]

    return dict(
        w1bd=w1bd,
        b1=params["b1"].astype(f32).reshape(1, C1),
        w2s=w2s,
        b2=params["b2"].astype(f32).reshape(1, C2),
        wfc=wfcr,
        bfc=params["bfc"].astype(f32).reshape(1, FC_OUT),
    )


def cnn_forward(prepared, x):
    """CNNModel.forward as one fused Pallas TPU kernel (grid=())."""
    assert x.shape == (BATCH, IN_C, IN_H, IN_W)
    p1 = _im2col_phase_packed(x.astype(jnp.float32))

    def full(shape):
        return pl.BlockSpec(shape, lambda: (0,) * len(shape))

    return pl.pallas_call(
        _cnn_fused_kernel,
        out_shape=jax.ShapeDtypeStruct((BATCH, FC_OUT), jnp.float32),
        in_specs=[
            full((CONV1_ROWS, CONV1_K)),      # phase-packed im2col  [296,128]
            full((CONV1_K, CONV1_N)),         # conv1 block-diag weight
            full((1, C1)),                    # conv1 bias
            full((K, CONV2_K, C2)),           # conv2 per-dy weights [5,128,32]
            full((1, C2)),                    # conv2 bias
            full((FC_IN, FC_OUT)),            # fc weight (qy,qx,c order)
            full((1, FC_OUT)),                # fc bias
        ],
        out_specs=full((BATCH, FC_OUT)),
        scratch_shapes=[
            pltpu.VMEM((POOL1W_ROWS, CONV2_K), jnp.float32),  # widened pool1
            pltpu.VMEM((OUT2_ROWS, C2), jnp.float32),         # conv2 act (+pad)
            pltpu.VMEM((ROWS_P1, C2), jnp.float32),           # pool2 max slab
            pltpu.VMEM((BATCH, FC_IN), jnp.float32),          # flat features
        ],
    )(p1, prepared["w1bd"], prepared["b1"], prepared["w2s"], prepared["b2"],
      prepared["wfc"], prepared["bfc"])


# ---------------------------------------------------------------------------
# Pure-JAX reference mirroring the PyTorch module, and a sanity check.
# ---------------------------------------------------------------------------
def _reference_forward(params, x):
    xf = x.astype(jnp.float32)
    y = lax.conv_general_dilated(
        xf, params["w1"], (1, 1), "VALID",
        dimension_numbers=("NCHW", "OIHW", "NCHW"))
    y = jnp.maximum(y + params["b1"].reshape(1, -1, 1, 1), 0.0)
    y = lax.reduce_window(y, -jnp.inf, lax.max,
                          (1, 1, 2, 2), (1, 1, 2, 2), "VALID")
    y = lax.conv_general_dilated(
        y, params["w2"], (1, 1), "VALID",
        dimension_numbers=("NCHW", "OIHW", "NCHW"))
    y = jnp.maximum(y + params["b2"].reshape(1, -1, 1, 1), 0.0)
    y = lax.reduce_window(y, -jnp.inf, lax.max,
                          (1, 1, 2, 2), (1, 1, 2, 2), "VALID")
    flat = y.reshape(y.shape[0], -1)                       # NCHW flatten
    return flat @ params["wfc"].T + params["bfc"]          # dropout = identity


if __name__ == "__main__":
    key = jax.random.PRNGKey(0)
    kx, kp = jax.random.split(key)
    x = jax.random.normal(kx, (BATCH, IN_C, IN_H, IN_W), dtype=jnp.float32)
    params = init_params(kp)

    prepared = prepare_params(params)       # weight re-layouts, hoisted (once)
    fwd = jax.jit(cnn_forward)
    out = fwd(prepared, x)
    jax.block_until_ready(out)

    ref = _reference_forward(params, x)
    assert out.shape == (BATCH, FC_OUT)
    assert jnp.allclose(out, ref, atol=1e-4, rtol=1e-4), (out, ref)

    print("KERNEL_OK")
</pallas_src>

<mosaic_0001>
module attributes {stable_mosaic.version = 11 : i64} {
  func.func @_cnn_fused_kernel(%arg0: memref<296x128xf32, #tpu.memory_space<vmem>>, %arg1: memref<128x64xf32, #tpu.memory_space<vmem>>, %arg2: memref<1x16xf32, #tpu.memory_space<vmem>>, %arg3: memref<5x128x32xf32, #tpu.memory_space<vmem>>, %arg4: memref<1x32xf32, #tpu.memory_space<vmem>>, %arg5: memref<512x2xf32, #tpu.memory_space<vmem>>, %arg6: memref<1x2xf32, #tpu.memory_space<vmem>>, %arg7: memref<2x2xf32, #tpu.memory_space<vmem>>, %arg8: memref<336x128xf32, #tpu.memory_space<vmem>>, %arg9: memref<304x32xf32, #tpu.memory_space<vmem>>, %arg10: memref<288x32xf32, #tpu.memory_space<vmem>>, %arg11: memref<2x512xf32, #tpu.memory_space<vmem>>) attributes {dimension_semantics = [], scalar_prefetch = 0 : i64, scratch_operands = 4 : i64, tpu.core_type = #tpu.core_type<tc>} {
    %c0 = arith.constant 0 : index
    %c0_0 = arith.constant 0 : index
    %0 = vector.load %arg0[%c0, %c0_0] : memref<296x128xf32, #tpu.memory_space<vmem>>, vector<296x128xf32>
    %c0_1 = arith.constant 0 : index
    %c0_2 = arith.constant 0 : index
    %1 = vector.load %arg1[%c0_1, %c0_2] : memref<128x64xf32, #tpu.memory_space<vmem>>, vector<128x64xf32>
    %cst = arith.constant dense<0.000000e+00> : vector<296x64xf32>
    %2 = tpu.matmul %0, %1, %cst {dimension_numbers = #tpu.dot_dimension_numbers<[1], [0], [0], [1], [0, 0, 1, 1], [], []>} : vector<296x128xf32>, vector<128x64xf32>, vector<296x64xf32> -> vector<296x64xf32>
    %3 = vector.extract_strided_slice %2 {offsets = [0, 0], sizes = [296, 16], strides = [1, 1]} : vector<296x64xf32> to vector<296x16xf32>
    %4 = vector.extract_strided_slice %2 {offsets = [0, 16], sizes = [296, 16], strides = [1, 1]} : vector<296x64xf32> to vector<296x16xf32>
    %5 = arith.maximumf %3, %4 : vector<296x16xf32>
    %6 = vector.extract_strided_slice %2 {offsets = [0, 32], sizes = [296, 16], strides = [1, 1]} : vector<296x64xf32> to vector<296x16xf32>
    %7 = vector.extract_strided_slice %2 {offsets = [0, 48], sizes = [296, 16], strides = [1, 1]} : vector<296x64xf32> to vector<296x16xf32>
    %8 = arith.maximumf %6, %7 : vector<296x16xf32>
    %9 = arith.maximumf %5, %8 : vector<296x16xf32>
    %c0_3 = arith.constant 0 : index
    %c0_4 = arith.constant 0 : index
    %10 = vector.load %arg2[%c0_3, %c0_4] : memref<1x16xf32, #tpu.memory_space<vmem>>, vector<1x16xf32>
    %11 = vector.broadcast %10 : vector<1x16xf32> to vector<296x16xf32>
    %12 = arith.addf %9, %11 : vector<296x16xf32>
    %cst_5 = arith.constant 0.000000e+00 : f32
    %13 = vector.broadcast %cst_5 : f32 to vector<296x16xf32>
    %14 = arith.maximumf %12, %13 : vector<296x16xf32>
    %cst_6 = arith.constant 0.000000e+00 : f32
    %15 = vector.broadcast %cst_6 : f32 to vector<336x128xf32>
    %c0_7 = arith.constant 0 : index
    %c0_8 = arith.constant 0 : index
    %16 = vector.load %arg8[%c0_7, %c0_8] : memref<336x128xf32, #tpu.memory_space<vmem>>, vector<336x128xf32>
    tpu.vector_store %arg8[%c0_7, %c0_8], %15 {strides = array<i32>} : memref<336x128xf32, #tpu.memory_space<vmem>>, vector<336x128xf32>,
    %17 = vector.extract_strided_slice %14 {offsets = [0, 0], sizes = [288, 16], strides = [1, 1]} : vector<296x16xf32> to vector<288x16xf32>
    %c0_9 = arith.constant 0 : index
    %c0_10 = arith.constant 0 : index
    %18 = vector.load %arg8[%c0_9, %c0_10] : memref<336x128xf32, #tpu.memory_space<vmem>>, vector<288x16xf32>
    tpu.vector_store %arg8[%c0_9, %c0_10], %17 {strides = array<i32>} : memref<336x128xf32, #tpu.memory_space<vmem>>, vector<288x16xf32>,
    %19 = vector.extract_strided_slice %14 {offsets = [1, 0], sizes = [288, 16], strides = [1, 1]} : vector<296x16xf32> to vector<288x16xf32>
    %c0_11 = arith.constant 0 : index
    %c16 = arith.constant 16 : index
    %20 = vector.load %arg8[%c0_11, %c16] : memref<336x128xf32, #tpu.memory_space<vmem>>, vector<288x16xf32>
    tpu.vector_store %arg8[%c0_11, %c16], %19 {strides = array<i32>} : memref<336x128xf32, #tpu.memory_space<vmem>>, vector<288x16xf32>,
    %21 = vector.extract_strided_slice %14 {offsets = [2, 0], sizes = [288, 16], strides = [1, 1]} : vector<296x16xf32> to vector<288x16xf32>
    %c0_12 = arith.constant 0 : index
    %c32 = arith.constant 32 : index
    %22 = vector.load %arg8[%c0_12, %c32] : memref<336x128xf32, #tpu.memory_space<vmem>>, vector<288x16xf32>
    tpu.vector_store %arg8[%c0_12, %c32], %21 {strides = array<i32>} : memref<336x128xf32, #tpu.memory_space<vmem>>, vector<288x16xf32>,
    %23 = vector.extract_strided_slice %14 {offsets = [3, 0], sizes = [288, 16], strides = [1, 1]} : vector<296x16xf32> to vector<288x16xf32>
    %c0_13 = arith.constant 0 : index
    %c48 = arith.constant 48 : index
    %24 = vector.load %arg8[%c0_13, %c48] : memref<336x128xf32, #tpu.memory_space<vmem>>, vector<288x16xf32>
    tpu.vector_store %arg8[%c0_13, %c48], %23 {strides = array<i32>} : memref<336x128xf32, #tpu.memory_space<vmem>>, vector<288x16xf32>,
    %25 = vector.extract_strided_slice %14 {offsets = [4, 0], sizes = [288, 16], strides = [1, 1]} : vector<296x16xf32> to vector<288x16xf32>
    %c0_14 = arith.constant 0 : index
    %c64 = arith.constant 64 : index
    %26 = vector.load %arg8[%c0_14, %c64] : memref<336x128xf32, #tpu.memory_space<vmem>>, vector<288x16xf32>
    tpu.vector_store %arg8[%c0_14, %c64], %25 {strides = array<i32>} : memref<336x128xf32, #tpu.memory_space<vmem>>, vector<288x16xf32>,
    %c0_15 = arith.constant 0 : index
    %c0_16 = arith.constant 0 : index
    %27 = vector.load %arg8[%c0_15, %c0_16] : memref<336x128xf32, #tpu.memory_space<vmem>>, vector<288x128xf32>
    %c0_17 = arith.constant 0 : index
    %c0_18 = arith.constant 0 : index
    %c0_19 = arith.constant 0 : index
    %28 = vector.load %arg3[%c0_17, %c0_18, %c0_19] : memref<5x128x32xf32, #tpu.memory_space<vmem>>, vector<1x128x32xf32>
    %29 = vector.shape_cast %28 : vector<1x128x32xf32> to vector<128x32xf32>
    %cst_20 = arith.constant dense<0.000000e+00> : vector<288x32xf32>
    %30 = tpu.matmul %27, %29, %cst_20 {dimension_numbers = #tpu.dot_dimension_numbers<[1], [0], [0], [1], [0, 0, 1, 1], [], []>} : vector<288x128xf32>, vector<128x32xf32>, vector<288x32xf32> -> vector<288x32xf32>
    %c12 = arith.constant 12 : index
    %c0_21 = arith.constant 0 : index
    %31 = vector.load %arg8[%c12, %c0_21] : memref<336x128xf32, #tpu.memory_space<vmem>>, vector<288x128xf32>
    %c1 = arith.constant 1 : index
    %c0_22 = arith.constant 0 : index
    %c0_23 = arith.constant 0 : index
    %32 = vector.load %arg3[%c1, %c0_22, %c0_23] : memref<5x128x32xf32, #tpu.memory_space<vmem>>, vector<1x128x32xf32>
    %33 = vector.shape_cast %32 : vector<1x128x32xf32> to vector<128x32xf32>
    %cst_24 = arith.constant dense<0.000000e+00> : vector<288x32xf32>
    %34 = tpu.matmul %31, %33, %cst_24 {dimension_numbers = #tpu.dot_dimension_numbers<[1], [0], [0], [1], [0, 0, 1, 1], [], []>} : vector<288x128xf32>, vector<128x32xf32>, vector<288x32xf32> -> vector<288x32xf32>
    %35 = arith.addf %30, %34 : vector<288x32xf32>
    %c24 = arith.constant 24 : index
    %c0_25 = arith.constant 0 : index
    %36 = vector.load %arg8[%c24, %c0_25] : memref<336x128xf32, #tpu.memory_space<vmem>>, vector<288x128xf32>
    %c2 = arith.constant 2 : index
    %c0_26 = arith.constant 0 : index
    %c0_27 = arith.constant 0 : index
    %37 = vector.load %arg3[%c2, %c0_26, %c0_27] : memref<5x128x32xf32, #tpu.memory_space<vmem>>, vector<1x128x32xf32>
    %38 = vector.shape_cast %37 : vector<1x128x32xf32> to vector<128x32xf32>
    %cst_28 = arith.constant dense<0.000000e+00> : vector<288x32xf32>
    %39 = tpu.matmul %36, %38, %cst_28 {dimension_numbers = #tpu.dot_dimension_numbers<[1], [0], [0], [1], [0, 0, 1, 1], [], []>} : vector<288x128xf32>, vector<128x32xf32>, vector<288x32xf32> -> vector<288x32xf32>
    %40 = arith.addf %35, %39 : vector<288x32xf32>
    %c36 = arith.constant 36 : index
    %c0_29 = arith.constant 0 : index
    %41 = vector.load %arg8[%c36, %c0_29] : memref<336x128xf32, #tpu.memory_space<vmem>>, vector<288x128xf32>
    %c3 = arith.constant 3 : index
    %c0_30 = arith.constant 0 : index
    %c0_31 = arith.constant 0 : index
    %42 = vector.load %arg3[%c3, %c0_30, %c0_31] : memref<5x128x32xf32, #tpu.memory_space<vmem>>, vector<1x128x32xf32>
    %43 = vector.shape_cast %42 : vector<1x128x32xf32> to vector<128x32xf32>
    %cst_32 = arith.constant dense<0.000000e+00> : vector<288x32xf32>
    %44 = tpu.matmul %41, %43, %cst_32 {dimension_numbers = #tpu.dot_dimension_numbers<[1], [0], [0], [1], [0, 0, 1, 1], [], []>} : vector<288x128xf32>, vector<128x32xf32>, vector<288x32xf32> -> vector<288x32xf32>
    %45 = arith.addf %40, %44 : vector<288x32xf32>
    %c48_33 = arith.constant 48 : index
    %c0_34 = arith.constant 0 : index
    %46 = vector.load %arg8[%c48_33, %c0_34] : memref<336x128xf32, #tpu.memory_space<vmem>>, vector<288x128xf32>
    %c4 = arith.constant 4 : index
    %c0_35 = arith.constant 0 : index
    %c0_36 = arith.constant 0 : index
    %47 = vector.load %arg3[%c4, %c0_35, %c0_36] : memref<5x128x32xf32, #tpu.memory_space<vmem>>, vector<1x128x32xf32>
    %48 = vector.shape_cast %47 : vector<1x128x32xf32> to vector<128x32xf32>
    %cst_37 = arith.constant dense<0.000000e+00> : vector<288x32xf32>
    %49 = tpu.matmul %46, %48, %cst_37 {dimension_numbers = #tpu.dot_dimension_numbers<[1], [0], [0], [1], [0, 0, 1, 1], [], []>} : vector<288x128xf32>, vector<128x32xf32>, vector<288x32xf32> -> vector<288x32xf32>
    %50 = arith.addf %45, %49 : vector<288x32xf32>
    %c0_38 = arith.constant 0 : index
    %c0_39 = arith.constant 0 : index
    %51 = vector.load %arg4[%c0_38, %c0_39] : memref<1x32xf32, #tpu.memory_space<vmem>>, vector<1x32xf32>
    %52 = vector.broadcast %51 : vector<1x32xf32> to vector<288x32xf32>
    %53 = arith.addf %50, %52 : vector<288x32xf32>
    %cst_40 = arith.constant 0.000000e+00 : f32
    %54 = vector.broadcast %cst_40 : f32 to vector<288x32xf32>
    %55 = arith.maximumf %53, %54 : vector<288x32xf32>
    %c0_41 = arith.constant 0 : index
    %c0_42 = arith.constant 0 : index
    %56 = vector.load %arg9[%c0_41, %c0_42] : memref<304x32xf32, #tpu.memory_space<vmem>>, vector<288x32xf32>
    tpu.vector_store %arg9[%c0_41, %c0_42], %55 {strides = array<i32>} : memref<304x32xf32, #tpu.memory_space<vmem>>, vector<288x32xf32>,
    %cst_43 = arith.constant 0.000000e+00 : f32
    %57 = vector.broadcast %cst_43 : f32 to vector<16x32xf32>
    %c288 = arith.constant 288 : index
    %c0_44 = arith.constant 0 : index
    %58 = vector.load %arg9[%c288, %c0_44] : memref<304x32xf32, #tpu.memory_space<vmem>>, vector<16x32xf32>
    tpu.vector_store %arg9[%c288, %c0_44], %57 {strides = array<i32>} : memref<304x32xf32, #tpu.memory_space<vmem>>, vector<16x32xf32>,
    %c0_45 = arith.constant 0 : index
    %c0_46 = arith.constant 0 : index
    %59 = vector.load %arg9[%c0_45, %c0_46] : memref<304x32xf32, #tpu.memory_space<vmem>>, vector<288x32xf32>
    %c1_47 = arith.constant 1 : index
    %c0_48 = arith.constant 0 : index
    %60 = vector.load %arg9[%c1_47, %c0_48] : memref<304x32xf32, #tpu.memory_space<vmem>>, vector<288x32xf32>
    %61 = arith.maximumf %59, %60 : vector<288x32xf32>
    %c12_49 = arith.constant 12 : index
    %c0_50 = arith.constant 0 : index
    %62 = vector.load %arg9[%c12_49, %c0_50] : memref<304x32xf32, #tpu.memory_space<vmem>>, vector<288x32xf32>
    %c13 = arith.constant 13 : index
    %c0_51 = arith.constant 0 : index
    %63 = vector.load %arg9[%c13, %c0_51] : memref<304x32xf32, #tpu.memory_space<vmem>>, vector<288x32xf32>
    %64 = arith.maximumf %62, %63 : vector<288x32xf32>
    %65 = arith.maximumf %61, %64 : vector<288x32xf32>
    %c0_52 = arith.constant 0 : index
    %c0_53 = arith.constant 0 : index
    %66 = vector.load %arg10[%c0_52, %c0_53] : memref<288x32xf32, #tpu.memory_space<vmem>>, vector<288x32xf32>
    tpu.vector_store %arg10[%c0_52, %c0_53], %65 {strides = array<i32>} : memref<288x32xf32, #tpu.memory_space<vmem>>, vector<288x32xf32>,
    %c0_54 = arith.constant 0 : index
    %c0_55 = arith.constant 0 : index
    %67 = vector.load %arg10[%c0_54, %c0_55] : memref<288x32xf32, #tpu.memory_space<vmem>>, vector<1x32xf32>
    %c0_56 = arith.constant 0 : index
    %c0_57 = arith.constant 0 : index
    %68 = vector.load %arg11[%c0_56, %c0_57] : memref<2x512xf32, #tpu.memory_space<vmem>>, vector<1x32xf32>
    tpu.vector_store %arg11[%c0_56, %c0_57], %67 {strides = array<i32>} : memref<2x512xf32, #tpu.memory_space<vmem>>, vector<1x32xf32>,
    %c2_58 = arith.constant 2 : index
    %c0_59 = arith.constant 0 : index
    %69 = vector.load %arg10[%c2_58, %c0_59] : memref<288x32xf32, #tpu.memory_space<vmem>>, vector<1x32xf32>
    %c0_60 = arith.constant 0 : index
    %c32_61 = arith.constant 32 : index
    %70 = vector.load %arg11[%c0_60, %c32_61] : memref<2x512xf32, #tpu.memory_space<vmem>>, vector<1x32xf32>
    tpu.vector_store %arg11[%c0_60, %c32_61], %69 {strides = array<i32>} : memref<2x512xf32, #tpu.memory_space<vmem>>, vector<1x32xf32>,
    %c4_62 = arith.constant 4 : index
    %c0_63 = arith.constant 0 : index
    %71 = vector.load %arg10[%c4_62, %c0_63] : memref<288x32xf32, #tpu.memory_space<vmem>>, vector<1x32xf32>
    %c0_64 = arith.constant 0 : index
    %c64_65 = arith.constant 64 : index
    %72 = vector.load %arg11[%c0_64, %c64_65] : memref<2x512xf32, #tpu.memory_space<vmem>>, vector<1x32xf32>
    tpu.vector_store %arg11[%c0_64, %c64_65], %71 {strides = array<i32>} : memref<2x512xf32, #tpu.memory_space<vmem>>, vector<1x32xf32>,
    %c6 = arith.constant 6 : index
    %c0_66 = arith.constant 0 : index
    %73 = vector.load %arg10[%c6, %c0_66] : memref<288x32xf32, #tpu.memory_space<vmem>>, vector<1x32xf32>
    %c0_67 = arith.constant 0 : index
    %c96 = arith.constant 96 : index
    %74 = vector.load %arg11[%c0_67, %c96] : memref<2x512xf32, #tpu.memory_space<vmem>>, vector<1x32xf32>
    tpu.vector_store %arg11[%c0_67, %c96], %73 {strides = array<i32>} : memref<2x512xf32, #tpu.memory_space<vmem>>, vector<1x32xf32>,
    %c24_68 = arith.constant 24 : index
    %c0_69 = arith.constant 0 : index
    %75 = vector.load %arg10[%c24_68, %c0_69] : memref<288x32xf32, #tpu.memory_space<vmem>>, vector<1x32xf32>
    %c0_70 = arith.constant 0 : index
    %c128 = arith.constant 128 : index
    %76 = vector.load %arg11[%c0_70, %c128] : memref<2x512xf32, #tpu.memory_space<vmem>>, vector<1x32xf32>
    tpu.vector_store %arg11[%c0_70, %c128], %75 {strides = array<i32>} : memref<2x512xf32, #tpu.memory_space<vmem>>, vector<1x32xf32>,
    %c26 = arith.constant 26 : index
    %c0_71 = arith.constant 0 : index
    %77 = vector.load %arg10[%c26, %c0_71] : memref<288x32xf32, #tpu.memory_space<vmem>>, vector<1x32xf32>
    %c0_72 = arith.constant 0 : index
    %c160 = arith.constant 160 : index
    %78 = vector.load %arg11[%c0_72, %c160] : memref<2x512xf32, #tpu.memory_space<vmem>>, vector<1x32xf32>
    tpu.vector_store %arg11[%c0_72, %c160], %77 {strides = array<i32>} : memref<2x512xf32, #tpu.memory_space<vmem>>, vector<1x32xf32>,
    %c28 = arith.constant 28 : index
    %c0_73 = arith.constant 0 : index
    %79 = vector.load %arg10[%c28, %c0_73] : memref<288x32xf32, #tpu.memory_space<vmem>>, vector<1x32xf32>
    %c0_74 = arith.constant 0 : index
    %c192 = arith.constant 192 : index
    %80 = vector.load %arg11[%c0_74, %c192] : memref<2x512xf32, #tpu.memory_space<vmem>>, vector<1x32xf32>
    tpu.vector_store %arg11[%c0_74, %c192], %79 {strides = array<i32>} : memref<2x512xf32, #tpu.memory_space<vmem>>, vector<1x32xf32>,
    %c30 = arith.constant 30 : index
    %c0_75 = arith.constant 0 : index
    %81 = vector.load %arg10[%c30, %c0_75] : memref<288x32xf32, #tpu.memory_space<vmem>>, vector<1x32xf32>
    %c0_76 = arith.constant 0 : index
    %c224 = arith.constant 224 : index
    %82 = vector.load %arg11[%c0_76, %c224] : memref<2x512xf32, #tpu.memory_space<vmem>>, vector<1x32xf32>
    tpu.vector_store %arg11[%c0_76, %c224], %81 {strides = array<i32>} : memref<2x512xf32, #tpu.memory_space<vmem>>, vector<1x32xf32>,
    %c48_77 = arith.constant 48 : index
    %c0_78 = arith.constant 0 : index
    %83 = vector.load %arg10[%c48_77, %c0_78] : memref<288x32xf32, #tpu.memory_space<vmem>>, vector<1x32xf32>
    %c0_79 = arith.constant 0 : index
    %c256 = arith.constant 256 : index
    %84 = vector.load %arg11[%c0_79, %c256] : memref<2x512xf32, #tpu.memory_space<vmem>>, vector<1x32xf32>
    tpu.vector_store %arg11[%c0_79, %c256], %83 {strides = array<i32>} : memref<2x512xf32, #tpu.memory_space<vmem>>, vector<1x32xf32>,
    %c50 = arith.constant 50 : index
    %c0_80 = arith.constant 0 : index
    %85 = vector.load %arg10[%c50, %c0_80] : memref<288x32xf32, #tpu.memory_space<vmem>>, vector<1x32xf32>
    %c0_81 = arith.constant 0 : index
    %c288_82 = arith.constant 288 : index
    %86 = vector.load %arg11[%c0_81, %c288_82] : memref<2x512xf32, #tpu.memory_space<vmem>>, vector<1x32xf32>
    tpu.vector_store %arg11[%c0_81, %c288_82], %85 {strides = array<i32>} : memref<2x512xf32, #tpu.memory_space<vmem>>, vector<1x32xf32>,
    %c52 = arith.constant 52 : index
    %c0_83 = arith.constant 0 : index
    %87 = vector.load %arg10[%c52, %c0_83] : memref<288x32xf32, #tpu.memory_space<vmem>>, vector<1x32xf32>
    %c0_84 = arith.constant 0 : index
    %c320 = arith.constant 320 : index
    %88 = vector.load %arg11[%c0_84, %c320] : memref<2x512xf32, #tpu.memory_space<vmem>>, vector<1x32xf32>
    tpu.vector_store %arg11[%c0_84, %c320], %87 {strides = array<i32>} : memref<2x512xf32, #tpu.memory_space<vmem>>, vector<1x32xf32>,
    %c54 = arith.constant 54 : index
    %c0_85 = arith.constant 0 : index
    %89 = vector.load %arg10[%c54, %c0_85] : memref<288x32xf32, #tpu.memory_space<vmem>>, vector<1x32xf32>
    %c0_86 = arith.constant 0 : index
    %c352 = arith.constant 352 : index
    %90 = vector.load %arg11[%c0_86, %c352] : memref<2x512xf32, #tpu.memory_space<vmem>>, vector<1x32xf32>
    tpu.vector_store %arg11[%c0_86, %c352], %89 {strides = array<i32>} : memref<2x512xf32, #tpu.memory_space<vmem>>, vector<1x32xf32>,
    %c72 = arith.constant 72 : index
    %c0_87 = arith.constant 0 : index
    %91 = vector.load %arg10[%c72, %c0_87] : memref<288x32xf32, #tpu.memory_space<vmem>>, vector<1x32xf32>
    %c0_88 = arith.constant 0 : index
    %c384 = arith.constant 384 : index
    %92 = vector.load %arg11[%c0_88, %c384] : memref<2x512xf32, #tpu.memory_space<vmem>>, vector<1x32xf32>
    tpu.vector_store %arg11[%c0_88, %c384], %91 {strides = array<i32>} : memref<2x512xf32, #tpu.memory_space<vmem>>, vector<1x32xf32>,
    %c74 = arith.constant 74 : index
    %c0_89 = arith.constant 0 : index
    %93 = vector.load %arg10[%c74, %c0_89] : memref<288x32xf32, #tpu.memory_space<vmem>>, vector<1x32xf32>
    %c0_90 = arith.constant 0 : index
    %c416 = arith.constant 416 : index
    %94 = vector.load %arg11[%c0_90, %c416] : memref<2x512xf32, #tpu.memory_space<vmem>>, vector<1x32xf32>
    tpu.vector_store %arg11[%c0_90, %c416], %93 {strides = array<i32>} : memref<2x512xf32, #tpu.memory_space<vmem>>, vector<1x32xf32>,
    %c76 = arith.constant 76 : index
    %c0_91 = arith.constant 0 : index
    %95 = vector.load %arg10[%c76, %c0_91] : memref<288x32xf32, #tpu.memory_space<vmem>>, vector<1x32xf32>
    %c0_92 = arith.constant 0 : index
    %c448 = arith.constant 448 : index
    %96 = vector.load %arg11[%c0_92, %c448] : memref<2x512xf32, #tpu.memory_space<vmem>>, vector<1x32xf32>
    tpu.vector_store %arg11[%c0_92, %c448], %95 {strides = array<i32>} : memref<2x512xf32, #tpu.memory_space<vmem>>, vector<1x32xf32>,
    %c78 = arith.constant 78 : index
    %c0_93 = arith.constant 0 : index
    %97 = vector.load %arg10[%c78, %c0_93] : memref<288x32xf32, #tpu.memory_space<vmem>>, vector<1x32xf32>
    %c0_94 = arith.constant 0 : index
    %c480 = arith.constant 480 : index
    %98 = vector.load %arg11[%c0_94, %c480] : memref<2x512xf32, #tpu.memory_space<vmem>>, vector<1x32xf32>
    tpu.vector_store %arg11[%c0_94, %c480], %97 {strides = array<i32>} : memref<2x512xf32, #tpu.memory_space<vmem>>, vector<1x32xf32>,
    %c144 = arith.constant 144 : index
    %c0_95 = arith.constant 0 : index
    %99 = vector.load %arg10[%c144, %c0_95] : memref<288x32xf32, #tpu.memory_space<vmem>>, vector<1x32xf32>
    %c1_96 = arith.constant 1 : index
    %c0_97 = arith.constant 0 : index
    %100 = vector.load %arg11[%c1_96, %c0_97] : memref<2x512xf32, #tpu.memory_space<vmem>>, vector<1x32xf32>
    tpu.vector_store %arg11[%c1_96, %c0_97], %99 {strides = array<i32>} : memref<2x512xf32, #tpu.memory_space<vmem>>, vector<1x32xf32>,
    %c146 = arith.constant 146 : index
    %c0_98 = arith.constant 0 : index
    %101 = vector.load %arg10[%c146, %c0_98] : memref<288x32xf32, #tpu.memory_space<vmem>>, vector<1x32xf32>
    %c1_99 = arith.constant 1 : index
    %c32_100 = arith.constant 32 : index
    %102 = vector.load %arg11[%c1_99, %c32_100] : memref<2x512xf32, #tpu.memory_space<vmem>>, vector<1x32xf32>
    tpu.vector_store %arg11[%c1_99, %c32_100], %101 {strides = array<i32>} : memref<2x512xf32, #tpu.memory_space<vmem>>, vector<1x32xf32>,
    %c148 = arith.constant 148 : index
    %c0_101 = arith.constant 0 : index
    %103 = vector.load %arg10[%c148, %c0_101] : memref<288x32xf32, #tpu.memory_space<vmem>>, vector<1x32xf32>
    %c1_102 = arith.constant 1 : index
    %c64_103 = arith.constant 64 : index
    %104 = vector.load %arg11[%c1_102, %c64_103] : memref<2x512xf32, #tpu.memory_space<vmem>>, vector<1x32xf32>
    tpu.vector_store %arg11[%c1_102, %c64_103], %103 {strides = array<i32>} : memref<2x512xf32, #tpu.memory_space<vmem>>, vector<1x32xf32>,
    %c150 = arith.constant 150 : index
    %c0_104 = arith.constant 0 : index
    %105 = vector.load %arg10[%c150, %c0_104] : memref<288x32xf32, #tpu.memory_space<vmem>>, vector<1x32xf32>
    %c1_105 = arith.constant 1 : index
    %c96_106 = arith.constant 96 : index
    %106 = vector.load %arg11[%c1_105, %c96_106] : memref<2x512xf32, #tpu.memory_space<vmem>>, vector<1x32xf32>
    tpu.vector_store %arg11[%c1_105, %c96_106], %105 {strides = array<i32>} : memref<2x512xf32, #tpu.memory_space<vmem>>, vector<1x32xf32>,
    %c168 = arith.constant 168 : index
    %c0_107 = arith.constant 0 : index
    %107 = vector.load %arg10[%c168, %c0_107] : memref<288x32xf32, #tpu.memory_space<vmem>>, vector<1x32xf32>
    %c1_108 = arith.constant 1 : index
    %c128_109 = arith.constant 128 : index
    %108 = vector.load %arg11[%c1_108, %c128_109] : memref<2x512xf32, #tpu.memory_space<vmem>>, vector<1x32xf32>
    tpu.vector_store %arg11[%c1_108, %c128_109], %107 {strides = array<i32>} : memref<2x512xf32, #tpu.memory_space<vmem>>, vector<1x32xf32>,
    %c170 = arith.constant 170 : index
    %c0_110 = arith.constant 0 : index
    %109 = vector.load %arg10[%c170, %c0_110] : memref<288x32xf32, #tpu.memory_space<vmem>>, vector<1x32xf32>
    %c1_111 = arith.constant 1 : index
    %c160_112 = arith.constant 160 : index
    %110 = vector.load %arg11[%c1_111, %c160_112] : memref<2x512xf32, #tpu.memory_space<vmem>>, vector<1x32xf32>
    tpu.vector_store %arg11[%c1_111, %c160_112], %109 {strides = array<i32>} : memref<2x512xf32, #tpu.memory_space<vmem>>, vector<1x32xf32>,
    %c172 = arith.constant 172 : index
    %c0_113 = arith.constant 0 : index
    %111 = vector.load %arg10[%c172, %c0_113] : memref<288x32xf32, #tpu.memory_space<vmem>>, vector<1x32xf32>
    %c1_114 = arith.constant 1 : index
    %c192_115 = arith.constant 192 : index
    %112 = vector.load %arg11[%c1_114, %c192_115] : memref<2x512xf32, #tpu.memory_space<vmem>>, vector<1x32xf32>
    tpu.vector_store %arg11[%c1_114, %c192_115], %111 {strides = array<i32>} : memref<2x512xf32, #tpu.memory_space<vmem>>, vector<1x32xf32>,
    %c174 = arith.constant 174 : index
    %c0_116 = arith.constant 0 : index
    %113 = vector.load %arg10[%c174, %c0_116] : memref<288x32xf32, #tpu.memory_space<vmem>>, vector<1x32xf32>
    %c1_117 = arith.constant 1 : index
    %c224_118 = arith.constant 224 : index
    %114 = vector.load %arg11[%c1_117, %c224_118] : memref<2x512xf32, #tpu.memory_space<vmem>>, vector<1x32xf32>
    tpu.vector_store %arg11[%c1_117, %c224_118], %113 {strides = array<i32>} : memref<2x512xf32, #tpu.memory_space<vmem>>, vector<1x32xf32>,
    %c192_119 = arith.constant 192 : index
    %c0_120 = arith.constant 0 : index
    %115 = vector.load %arg10[%c192_119, %c0_120] : memref<288x32xf32, #tpu.memory_space<vmem>>, vector<1x32xf32>
    %c1_121 = arith.constant 1 : index
    %c256_122 = arith.constant 256 : index
    %116 = vector.load %arg11[%c1_121, %c256_122] : memref<2x512xf32, #tpu.memory_space<vmem>>, vector<1x32xf32>
    tpu.vector_store %arg11[%c1_121, %c256_122], %115 {strides = array<i32>} : memref<2x512xf32, #tpu.memory_space<vmem>>, vector<1x32xf32>,
    %c194 = arith.constant 194 : index
    %c0_123 = arith.constant 0 : index
    %117 = vector.load %arg10[%c194, %c0_123] : memref<288x32xf32, #tpu.memory_space<vmem>>, vector<1x32xf32>
    %c1_124 = arith.constant 1 : index
    %c288_125 = arith.constant 288 : index
    %118 = vector.load %arg11[%c1_124, %c288_125] : memref<2x512xf32, #tpu.memory_space<vmem>>, vector<1x32xf32>
    tpu.vector_store %arg11[%c1_124, %c288_125], %117 {strides = array<i32>} : memref<2x512xf32, #tpu.memory_space<vmem>>, vector<1x32xf32>,
    %c196 = arith.constant 196 : index
    %c0_126 = arith.constant 0 : index
    %119 = vector.load %arg10[%c196, %c0_126] : memref<288x32xf32, #tpu.memory_space<vmem>>, vector<1x32xf32>
    %c1_127 = arith.constant 1 : index
    %c320_128 = arith.constant 320 : index
    %120 = vector.load %arg11[%c1_127, %c320_128] : memref<2x512xf32, #tpu.memory_space<vmem>>, vector<1x32xf32>
    tpu.vector_store %arg11[%c1_127, %c320_128], %119 {strides = array<i32>} : memref<2x512xf32, #tpu.memory_space<vmem>>, vector<1x32xf32>,
    %c198 = arith.constant 198 : index
    %c0_129 = arith.constant 0 : index
    %121 = vector.load %arg10[%c198, %c0_129] : memref<288x32xf32, #tpu.memory_space<vmem>>, vector<1x32xf32>
    %c1_130 = arith.constant 1 : index
    %c352_131 = arith.constant 352 : index
    %122 = vector.load %arg11[%c1_130, %c352_131] : memref<2x512xf32, #tpu.memory_space<vmem>>, vector<1x32xf32>
    tpu.vector_store %arg11[%c1_130, %c352_131], %121 {strides = array<i32>} : memref<2x512xf32, #tpu.memory_space<vmem>>, vector<1x32xf32>,
    %c216 = arith.constant 216 : index
    %c0_132 = arith.constant 0 : index
    %123 = vector.load %arg10[%c216, %c0_132] : memref<288x32xf32, #tpu.memory_space<vmem>>, vector<1x32xf32>
    %c1_133 = arith.constant 1 : index
    %c384_134 = arith.constant 384 : index
    %124 = vector.load %arg11[%c1_133, %c384_134] : memref<2x512xf32, #tpu.memory_space<vmem>>, vector<1x32xf32>
    tpu.vector_store %arg11[%c1_133, %c384_134], %123 {strides = array<i32>} : memref<2x512xf32, #tpu.memory_space<vmem>>, vector<1x32xf32>,
    %c218 = arith.constant 218 : index
    %c0_135 = arith.constant 0 : index
    %125 = vector.load %arg10[%c218, %c0_135] : memref<288x32xf32, #tpu.memory_space<vmem>>, vector<1x32xf32>
    %c1_136 = arith.constant 1 : index
    %c416_137 = arith.constant 416 : index
    %126 = vector.load %arg11[%c1_136, %c416_137] : memref<2x512xf32, #tpu.memory_space<vmem>>, vector<1x32xf32>
    tpu.vector_store %arg11[%c1_136, %c416_137], %125 {strides = array<i32>} : memref<2x512xf32, #tpu.memory_space<vmem>>, vector<1x32xf32>,
    %c220 = arith.constant 220 : index
    %c0_138 = arith.constant 0 : index
    %127 = vector.load %arg10[%c220, %c0_138] : memref<288x32xf32, #tpu.memory_space<vmem>>, vector<1x32xf32>
    %c1_139 = arith.constant 1 : index
    %c448_140 = arith.constant 448 : index
    %128 = vector.load %arg11[%c1_139, %c448_140] : memref<2x512xf32, #tpu.memory_space<vmem>>, vector<1x32xf32>
    tpu.vector_store %arg11[%c1_139, %c448_140], %127 {strides = array<i32>} : memref<2x512xf32, #tpu.memory_space<vmem>>, vector<1x32xf32>,
    %c222 = arith.constant 222 : index
    %c0_141 = arith.constant 0 : index
    %129 = vector.load %arg10[%c222, %c0_141] : memref<288x32xf32, #tpu.memory_space<vmem>>, vector<1x32xf32>
    %c1_142 = arith.constant 1 : index
    %c480_143 = arith.constant 480 : index
    %130 = vector.load %arg11[%c1_142, %c480_143] : memref<2x512xf32, #tpu.memory_space<vmem>>, vector<1x32xf32>
    tpu.vector_store %arg11[%c1_142, %c480_143], %129 {strides = array<i32>} : memref<2x512xf32, #tpu.memory_space<vmem>>, vector<1x32xf32>,
    %c0_144 = arith.constant 0 : index
    %c0_145 = arith.constant 0 : index
    %131 = vector.load %arg11[%c0_144, %c0_145] : memref<2x512xf32, #tpu.memory_space<vmem>>, vector<2x512xf32>
    %c0_146 = arith.constant 0 : index
    %c0_147 = arith.constant 0 : index
    %132 = vector.load %arg5[%c0_146, %c0_147] : memref<512x2xf32, #tpu.memory_space<vmem>>, vector<512x2xf32>
    %cst_148 = arith.constant dense<0.000000e+00> : vector<2x2xf32>
    %133 = tpu.matmul %131, %132, %cst_148 {dimension_numbers = #tpu.dot_dimension_numbers<[1], [0], [0], [1], [0, 0, 1, 1], [], []>} : vector<2x512xf32>, vector<512x2xf32>, vector<2x2xf32> -> vector<2x2xf32>
    %c0_149 = arith.constant 0 : index
    %c0_150 = arith.constant 0 : index
    %134 = vector.load %arg6[%c0_149, %c0_150] : memref<1x2xf32, #tpu.memory_space<vmem>>, vector<1x2xf32>
    %135 = vector.broadcast %134 : vector<1x2xf32> to vector<2x2xf32>
    %136 = arith.addf %133, %135 : vector<2x2xf32>
    %c0_151 = arith.constant 0 : index
    %c0_152 = arith.constant 0 : index
    %137 = vector.load %arg7[%c0_151, %c0_152] : memref<2x2xf32, #tpu.memory_space<vmem>>, vector<2x2xf32>
    tpu.vector_store %arg7[%c0_151, %c0_152], %136 {strides = array<i32>} : memref<2x2xf32, #tpu.memory_space<vmem>>, vector<2x2xf32>,
    return
  }
}

</mosaic_0001>

<bundles_post_ra>
// kernel: squeeze.174
= control target key start
LH: loop header
LB: loop body
LE: loop exit
PB: predicated region body
PF: predicated region fallthrough
CT: control target
= control target key end

     0   :  { %vm9_vm0 = vcmask 31744   ;;  %vm13_vm1 = vcmask 64512   ;;  %s238_s14 = smov 124   ;;  %s239_s15 = smov 112   ;;  %vm3_vm2 = vcmask 97280   ;;  %vm16_vm3 = vcmask 1048544   ;;  %s362_s0 = inlined_call_operand.vmem [shape: f32[2,12,12], index: 0, kind: input, shape index: {}]   ;;  %s363_s1 = inlined_call_operand.vmem [shape: f32[288,1], index: 1, kind: output, shape index: {}]  }
   0x1   :  { %v188_v0 = vld [vmem:[%s362_s0 + $0x19] sm:$0x1]   ;;  %v192_v3 = vld [vmem:[%s362_s0 + $0x18] sm:$0x1]   ;;  %v190_v4 = vld [vmem:[%s362_s0 + $0xa] sm:$0x1]  }
   0x2   :  { %v189_v1 = vld [vmem:[%s362_s0 + $0x19] sm:$0x1]   ;;  %34 = vrot.lane.b32.xlu1 %v192_v3, %s239_s15  ;;  %v191_v5 = vld [vmem:[%s362_s0 + $0xa] sm:$0x1]   ;;  %v193_v7 = vld [vmem:[%s362_s0 + $0x9] sm:$0x1]  }
   0x3   :  { %v10_v2 = vsel %vm9_vm0, %v189_v1, %v188_v0  ;;  %v24_v6 = vsel %vm13_vm1, %v191_v5, %v190_v4  ;;  %s240_s20 = smov 120   ;;  %s241_s21 = smov 108   ;;  %v194_v8 = vld [vmem:[%s362_s0 + $0x17] sm:$0x1]   ;;  %v195_v9 = vld [vmem:[%s362_s0 + $0x8] sm:$0x1]  }
   0x4   :  { %11 = vrot.lane.b32.xlu0 %v10_v2, %s238_s14  ;;  %s242_s26 = smov 100   ;;  %s243_s27 = smov 96   ;;  %v196_v10 = vld [vmem:[%s362_s0 + $0x16] sm:$0x1]   ;;  %v197_v11 = vld [vmem:[%s362_s0 + $0x7] sm:$0x1]  }
   0x5   :  { %v2_v12 = vld [vmem:[%s362_s0] sm:$0x1]   ;;  %s244_s5 = smov 88   ;;  %s245_s6 = smov 84   ;;  %v198_v13 = vld [vmem:[%s362_s0 + $0x15] sm:$0x1]  }
   0x6   :  { %41 = vrot.lane.b32.xlu1 %v193_v7, %s241_s21  ;;  %4 = vst.msk [vmem:[#allocation0] sm:$0x1] %vm3_vm2, %v2_v12   ;;  %v199_v14 = vld [vmem:[%s362_s0 + $0x6] sm:$0x1]   ;;  %s246_s11 = smov 76   ;;  %s247_s12 = smov 72  }
   0x7   :  { %v200_v15 = vld [vmem:[%s362_s0 + $0x14] sm:$0x1]   ;;  %v201_v16 = vld [vmem:[%s362_s0 + $0x5] sm:$0x1]   ;;  %s248_s17 = smov 64   ;;  %s249_s18 = smov 60  }
   0x8   :  { %25 = vrot.lane.b32.xlu0 %v24_v6, %s240_s20  ;;  %v202_v17 = vld [vmem:[%s362_s0 + $0x13] sm:$0x1]   ;;  %v203_v18 = vld [vmem:[%s362_s0 + $0x4] sm:$0x1]   ;;  %s250_s23 = smov 52   ;;  %s251_s24 = smov 48  }
   0x9   :  { %v204_v19 = vld [vmem:[%s362_s0 + $0x12] sm:$0x1]   ;;  %v205_v20 = vld [vmem:[%s362_s0 + $0x3] sm:$0x1]   ;;  %s252_s29 = smov 40   ;;  %s253_s30 = smov 36  }
   0xa   :  { %54 = vrot.lane.b32.xlu1 %v195_v9, %s243_s27  ;;  %v206_v21 = vld [vmem:[%s362_s0 + $0x11] sm:$0x1]   ;;  %v207_v22 = vld [vmem:[%s362_s0 + $0x2] sm:$0x1]   ;;  %s255_s7 = smov 24   ;;  %s257_s13 = smov 16  }
   0xb   :  { %v208_v23 = vld [vmem:[%s362_s0 + $0x1b] sm:$0x1]   ;;  %v209_v24 = vld [vmem:[%s362_s0 + $0x10] sm:$0x1]   ;;  %v210_v25 = vld [vmem:[%s362_s0 + $0x1] sm:$0x1]  }
   0xc   :  { %47 = vrot.lane.b32.xlu0 %v194_v8, %s242_s26  ;;  %v211_v26 = vld [vmem:[%s362_s0 + $0x1a] sm:$0x1]   ;;  %s259_s19 = smov 8   ;;  %v212_v27 = vld [vmem:[%s362_s0 + $0xb] sm:$0x1]   ;;  %s260_s0 = smov 4  }
   0xd   :  { %vm30_vm4 = vcmask 1048512   ;;  %vm36_vm5 = vcmask 1015680   ;;  %vm43_vm6 = vcmask 982880   ;;  %vm49_vm7 = vcmask 917280  }
   0xe   :  { %67 = vrot.lane.b32.xlu1 %v197_v11, %s245_s6  ;;  %s254_s6 = smov 28   ;;  %vm56_vm8 = vcmask 884480   ;;  %vm62_vm9 = vcmask 818880   ;;  %vm69_vm10 = vcmask 786080   ;;  %vm75_vm11 = vcmask 720480  }
   0xf   :  { %vm82_vm12 = vcmask 687680   ;;  %vm88_vm13 = vcmask 622080   ;;  %vm95_vm14 = vcmask 589280   ;;  %vm101_vm15 = vcmask 523680  }
  0x10   :  { %60 = vrot.lane.b32.xlu0 %v196_v10, %s244_s5  ;;  %vm121_vm2 = vcmask 392480  }
  0x12   :  { %80 = vrot.lane.b32.xlu1 %v199_v14, %s247_s12  ;;  %s256_s12 = smov 20  }
  0x14   :  { %73 = vrot.lane.b32.xlu0 %v198_v13, %s246_s11 }
  0x16   :  { %93 = vrot.lane.b32.xlu1 %v201_v16, %s249_s18  ;;  %s258_s18 = smov 12  }
  0x18   :  { %86 = vrot.lane.b32.xlu0 %v200_v15, %s248_s17 }
  0x1a   :  { %106 = vrot.lane.b32.xlu1 %v203_v18, %s251_s24 }
  0x1c   :  { %99 = vrot.lane.b32.xlu0 %v202_v17, %s250_s23 }
  0x1e   :  { %119 = vrot.lane.b32.xlu1 %v205_v20, %s253_s30 }
  0x20   :  { %112 = vrot.lane.b32.xlu0 %v204_v19, %s252_s29 }
  0x22   :  { %132 = vrot.lane.b32.xlu1 %v207_v22, %s255_s7 }
  0x24   :  { %125 = vrot.lane.b32.xlu0 %v206_v21, %s254_s6 }
  0x26   :  { %145 = vrot.lane.b32.xlu1 %v209_v24, %s257_s13 }
  0x28   :  { %138 = vrot.lane.b32.xlu0 %v208_v23, %s256_s12 }
  0x2a   :  { %158 = vrot.lane.b32.xlu1 %v211_v26, %s259_s19 }
  0x2c   :  { %152 = vrot.lane.b32.xlu0 %v210_v25, %s258_s18 }
  0x30   :  { %165 = vrot.lane.b32.xlu0 %v212_v27, %s260_s0 }
  0x74   :  { %v35_v29 = vpop.permute.xlu1 %34  }
  0x76   :  { %v12_v28 = vpop.permute.xlu0 %11  }
  0x77   :  { %15 = vst.msk [vmem:[#allocation0 + $0x10] sm:$0x1] %vm13_vm1, %v12_v28   ;;  %vm114_vm1 = vcmask 425280  }
  0x78   :  { %18 = vst.msk [vmem:[#allocation0 + $0x8] sm:$0x1] %vm16_vm3, %v12_v28   ;;  %v42_v31 = vpop.permute.xlu1 %41   ;;  %vm127_vm3 = vcmask 326880  }
  0x7a   :  { %v26_v30 = vpop.permute.xlu0 %25  }
  0x7b   :  { %29 = vst.msk [vmem:[#allocation0 + $0x8] sm:$0x1] %vm9_vm0, %v26_v30   ;;  %vm108_vm0 = vcmask 490880  }
  0x7c   :  { %31 = vst.msk [vmem:[#allocation0] sm:$0x1] %vm30_vm4, %v26_v30   ;;  %v55_v33 = vpop.permute.xlu1 %54   ;;  %vm134_vm4 = vcmask 294080  }
  0x7d   :  { %38 = vst.msk [vmem:[#allocation0 + $0x8] sm:$0x1] %vm36_vm5, %v35_v29   ;;  %vm140_vm5 = vcmask 261280  }
  0x7e   :  { %44 = vst.msk [vmem:[#allocation0] sm:$0x1] %vm43_vm6, %v42_v31   ;;  %v48_v32 = vpop.permute.xlu0 %47   ;;  %vm147_vm6 = vcmask 228480  }
  0x7f   :  { %51 = vst.msk [vmem:[#allocation0 + $0x8] sm:$0x1] %vm49_vm7, %v48_v32   ;;  %vm154_vm7 = vcmask 195680  }
  0x80   :  { %57 = vst.msk [vmem:[#allocation0] sm:$0x1] %vm56_vm8, %v55_v33   ;;  %v68_v35 = vpop.permute.xlu1 %67   ;;  %vm160_vm8 = vcmask 162880  }
  0x81   :  { %70 = vst.msk [vmem:[#allocation0] sm:$0x1] %vm69_vm10, %v68_v35  }
  0x82   :  { %v61_v34 = vpop.permute.xlu0 %60  }
  0x83   :  { %64 = vst.msk [vmem:[#allocation0 + $0x8] sm:$0x1] %vm62_vm9, %v61_v34   ;;  %vm167_vm9 = vcmask 130080  }
  0x84   :  { %v81_v37 = vpop.permute.xlu1 %80  }
  0x85   :  { %83 = vst.msk [vmem:[#allocation0] sm:$0x1] %vm82_vm12, %v81_v37  }
  0x86   :  { %v74_v36 = vpop.permute.xlu0 %73  }
  0x87   :  { %77 = vst.msk [vmem:[#allocation0 + $0x8] sm:$0x1] %vm75_vm11, %v74_v36  }
  0x88   :  { %v94_v39 = vpop.permute.xlu1 %93  }
  0x89   :  { %96 = vst.msk [vmem:[#allocation0] sm:$0x1] %vm95_vm14, %v94_v39  }
  0x8a   :  { %v87_v38 = vpop.permute.xlu0 %86  }
  0x8b   :  { %90 = vst.msk [vmem:[#allocation0 + $0x8] sm:$0x1] %vm88_vm13, %v87_v38  }
  0x8c   :  { %v107_v41 = vpop.permute.xlu1 %106  }
  0x8d   :  { %109 = vst.msk [vmem:[#allocation0] sm:$0x1] %vm108_vm0, %v107_v41  }
  0x8e   :  { %v100_v40 = vpop.permute.xlu0 %99  }
  0x8f   :  { %103 = vst.msk [vmem:[#allocation0 + $0x8] sm:$0x1] %vm101_vm15, %v100_v40  }
  0x90   :  { %v120_v43 = vpop.permute.xlu1 %119  }
  0x91   :  { %122 = vst.msk [vmem:[#allocation0] sm:$0x1] %vm121_vm2, %v120_v43  }
  0x92   :  { %v113_v42 = vpop.permute.xlu0 %112  }
  0x93   :  { %116 = vst.msk [vmem:[#allocation0 + $0x8] sm:$0x1] %vm114_vm1, %v113_v42  }
  0x94   :  { %v133_v45 = vpop.permute.xlu1 %132  }
  0x95   :  { %135 = vst.msk [vmem:[#allocation0] sm:$0x1] %vm134_vm4, %v133_v45  }
  0x96   :  { %v126_v44 = vpop.permute.xlu0 %125  }
  0x97   :  { %129 = vst.msk [vmem:[#allocation0 + $0x8] sm:$0x1] %vm127_vm3, %v126_v44  }
  0x98   :  { %v146_v47 = vpop.permute.xlu1 %145  }
  0x99   :  { %149 = vst.msk [vmem:[#allocation0 + $0x8] sm:$0x1] %vm147_vm6, %v146_v47  }
  0x9a   :  { %v139_v46 = vpop.permute.xlu0 %138  }
  0x9b   :  { %142 = vst.msk [vmem:[#allocation0 + $0x10] sm:$0x1] %vm140_vm5, %v139_v46  }
  0x9c   :  { %v159_v49 = vpop.permute.xlu1 %158  }
  0x9d   :  { %162 = vst.msk [vmem:[#allocation0 + $0x10] sm:$0x1] %vm160_vm8, %v159_v49  }
  0x9e   :  { %v153_v48 = vpop.permute.xlu0 %152  }
  0x9f   :  { %155 = vst.msk [vmem:[#allocation0] sm:$0x1] %vm154_vm7, %v153_v48  }
  0xa2   :  { %v166_v50 = vpop.permute.xlu0 %165  }
  0xa3   :  { %169 = vst.msk [vmem:[#allocation0 + $0x8] sm:$0x1] %vm167_vm9, %v166_v50  }
  0xa4   :  { %v182_v52 = vld [vmem:[#allocation0 + $0x10] sm:$0x1] }
  0xa5   :  { %214 = vst [vmem:[%s363_s1 + $0x2] sm:$0x1] %v182_v52 }
  0xa6   :  { %v173_v51 = vld [vmem:[#allocation0] sm:$0x1] }
  0xa7   :  { %175 = vst [vmem:[%s363_s1] sm:$0x1] %v173_v51 }
  0xaa   :  { %v177_v53 = vld [vmem:[#allocation0 + $0x8] sm:$0x1] }
  0xab   :  { %213 = vst [vmem:[%s363_s1 + $0x1] sm:$0x1] %v177_v53 }

// kernel: cnn_forward.1
= control target key start
LH: loop header
LB: loop body
LE: loop exit
PB: predicated region body
PF: predicated region fallthrough
CT: control target
= control target key end

     0   :  { %v5564_v3 = vmov 0.0|0.0   ;;  %vm5565_vm0 = vmmov 0   ;;  %v5566_v6 = vmov 0.0   ;;  %s7848_s0 = inlined_call_operand.vmem [shape: f32[296,128], index: 0, kind: input, shape index: {}]   ;;  %s7849_s1 = inlined_call_operand.vmem [shape: f32[128,64], index: 1, kind: input, shape index: {}]   ;;  %s7850_s2 = inlined_call_operand.vmem [shape: f32[1,16], index: 2, kind: input, shape index: {}]   ;;  %s7851_s3 = inlined_call_operand.vmem [shape: f32[5,128,32], index: 3, kind: input, shape index: {}]   ;;  %s7852_s4 = inlined_call_operand.vmem [shape: f32[1,32], index: 4, kind: input, shape index: {}]   ;;  %s7853_s5 = inlined_call_operand.vmem [shape: f32[512,2], index: 5, kind: input, shape index: {}]   ;;  %s7854_s6 = inlined_call_operand.vmem [shape: f32[1,2], index: 6, kind: input, shape index: {}]   ;;  %s7855_s7 = inlined_call_operand.hbm [shape: f32[2,2], index: 7, kind: output, shape index: {}]  }
   0x1   :  { %v64_v0 = vld [vmem:[%s7849_s1] sm:$0xff]  ;;  %v65_v1 = vld [vmem:[%s7849_s1 + $0x8] sm:$0xff]  ;;  %v66_v2 = vld [vmem:[%s7849_s1 + $0x10] sm:$0xff]  ;;  %5133 = vmatprep.subr.bf16.mxu0 %v5564_v3  ;;  %4592 = vmatprep.mubr.msk.f32.mxu0 %vm5565_vm0, %v5566_v6  ;;  %781 = vst [vmem:[#allocation2] sm:$0xff] %v5566_v6 }
   0x2   :  { %v5134_v4 = vpack.c.bf16 %v65_v1, %v64_v0  ;;  %v67_v5 = vld [vmem:[%s7849_s1 + $0x18] sm:$0xff]  ;;  %782 = vst [vmem:[#allocation2 + $0x8] sm:$0xff] %v5566_v6  ;;  %783 = vst [vmem:[#allocation2 + $0x10] sm:$0xff] %v5566_v6  ;;  %v68_v8 = vld [vmem:[%s7849_s1 + $0x20] sm:$0xff] }
   0x3   :  { %784 = vst [vmem:[#allocation2 + $0x18] sm:$0xff] %v5566_v6  ;;  %785 = vst [vmem:[#allocation2 + $0x20] sm:$0xff] %v5566_v6  ;;  %v5137_v7 = vpack.c.bf16 %v67_v5, %v66_v2  ;;  %v69_v9 = vld [vmem:[%s7849_s1 + $0x28] sm:$0xff]  ;;  %v70_v11 = vld [vmem:[%s7849_s1 + $0x30] sm:$0xff] }
   0x4   :  { %786 = vst [vmem:[#allocation2 + $0x28] sm:$0xff] %v5566_v6  ;;  %787 = vst [vmem:[#allocation2 + $0x30] sm:$0xff] %v5566_v6  ;;  %5135 = vmatpush3.bf16.msra.mxu0 %v5134_v4  ;;  %v5140_v10 = vpack.c.bf16 %v69_v9, %v68_v8  ;;  %v71_v12 = vld [vmem:[%s7849_s1 + $0x38] sm:$0xff]  ;;  %v72_v14 = vld [vmem:[%s7849_s1 + $0x40] sm:$0xff] }
   0x5   :  { %788 = vst [vmem:[#allocation2 + $0x38] sm:$0xff] %v5566_v6  ;;  %789 = vst [vmem:[#allocation2 + $0x40] sm:$0xff] %v5566_v6  ;;  %5136 = vmatprep.subr.bf16.mxu0 %v5564_v3  ;;  %v5143_v13 = vpack.c.bf16 %v71_v12, %v70_v11  ;;  %v73_v15 = vld [vmem:[%s7849_s1 + $0x48] sm:$0xff] }
   0x6   :  { %790 = vst [vmem:[#allocation2 + $0x48] sm:$0xff] %v5566_v6  ;;  %791 = vst [vmem:[#allocation2 + $0x50] sm:$0xff] %v5566_v6 }
   0x7   :  { %792 = vst [vmem:[#allocation2 + $0x58] sm:$0xff] %v5566_v6  ;;  %793 = vst [vmem:[#allocation2 + $0x60] sm:$0xff] %v5566_v6 }
   0x8   :  { %794 = vst [vmem:[#allocation2 + $0x68] sm:$0xff] %v5566_v6  ;;  %795 = vst [vmem:[#allocation2 + $0x70] sm:$0xff] %v5566_v6  ;;  %5138 = vmatpush3.bf16.msra.mxu0 %v5137_v7 }
   0x9   :  { %796 = vst [vmem:[#allocation2 + $0x78] sm:$0xff] %v5566_v6  ;;  %797 = vst [vmem:[#allocation2 + $0x80] sm:$0xff] %v5566_v6  ;;  %5139 = vmatprep.subr.bf16.mxu0 %v5564_v3 }
   0xa   :  { %798 = vst [vmem:[#allocation2 + $0x88] sm:$0xff] %v5566_v6  ;;  %799 = vst [vmem:[#allocation2 + $0x90] sm:$0xff] %v5566_v6 }
   0xb   :  { %800 = vst [vmem:[#allocation2 + $0x98] sm:$0xff] %v5566_v6  ;;  %801 = vst [vmem:[#allocation2 + $0xa0] sm:$0xff] %v5566_v6 }
   0xc   :  { %802 = vst [vmem:[#allocation2 + $0xa8] sm:$0xff] %v5566_v6  ;;  %803 = vst [vmem:[#allocation2 + $0xb0] sm:$0xff] %v5566_v6  ;;  %5141 = vmatpush3.bf16.msra.mxu0 %v5140_v10 }
   0xd   :  { %804 = vst [vmem:[#allocation2 + $0xb8] sm:$0xff] %v5566_v6  ;;  %805 = vst [vmem:[#allocation2 + $0xc0] sm:$0xff] %v5566_v6  ;;  %5142 = vmatprep.subr.bf16.mxu0 %v5564_v3 }
   0xe   :  { %806 = vst [vmem:[#allocation2 + $0xc8] sm:$0xff] %v5566_v6  ;;  %807 = vst [vmem:[#allocation2 + $0xd0] sm:$0xff] %v5566_v6 }
   0xf   :  { %808 = vst [vmem:[#allocation2 + $0xd8] sm:$0xff] %v5566_v6  ;;  %809 = vst [vmem:[#allocation2 + $0xe0] sm:$0xff] %v5566_v6 }
  0x10   :  { %810 = vst [vmem:[#allocation2 + $0xe8] sm:$0xff] %v5566_v6  ;;  %811 = vst [vmem:[#allocation2 + $0xf0] sm:$0xff] %v5566_v6 }
  0x11   :  { %812 = vst [vmem:[#allocation2 + $0xf8] sm:$0xff] %v5566_v6  ;;  %813 = vst [vmem:[#allocation2 + $0x100] sm:$0xff] %v5566_v6 }
  0x12   :  { %814 = vst [vmem:[#allocation2 + $0x108] sm:$0xff] %v5566_v6  ;;  %815 = vst [vmem:[#allocation2 + $0x110] sm:$0xff] %v5566_v6 }
  0x13   :  { %816 = vst [vmem:[#allocation2 + $0x118] sm:$0xff] %v5566_v6  ;;  %817 = vst [vmem:[#allocation2 + $0x120] sm:$0xff] %v5566_v6 }
  0x14   :  { %818 = vst [vmem:[#allocation2 + $0x128] sm:$0xff] %v5566_v6  ;;  %819 = vst [vmem:[#allocation2 + $0x130] sm:$0xff] %v5566_v6 }
  0x15   :  { %820 = vst [vmem:[#allocation2 + $0x138] sm:$0xff] %v5566_v6  ;;  %821 = vst [vmem:[#allocation2 + $0x140] sm:$0xff] %v5566_v6 }
  0x16   :  { %12 = vsyncpa [#allocation7], 0  ;;  %5144 = vmatpush3.bf16.msra.mxu0 %v5143_v13  ;;  %v5146_v16 = vpack.c.bf16 %v73_v15, %v72_v14  ;;  %v74_v17 = vld [vmem:[%s7849_s1 + $0x50] sm:$0xff]  ;;  %v75_v18 = vld [vmem:[%s7849_s1 + $0x58] sm:$0xff]  ;;  %s5567_s12 = smov 112   ;;  %vm823_vm1 = vcmask 130048  }
  0x17   :  { %5145 = vmatprep.subr.bf16.mxu0 %v5564_v3  ;;  %v5149_v19 = vpack.c.bf16 %v75_v18, %v74_v17  ;;  %v76_v20 = vld [vmem:[%s7849_s1 + $0x60] sm:$0xff]  ;;  %v77_v21 = vld [vmem:[%s7849_s1 + $0x68] sm:$0xff]  ;;  %v78_v23 = vld [vmem:[%s7849_s1 + $0x70] sm:$0xff]  ;;  %s5569_s26 = smov 48   ;;  %s5570_s8 = smov 16   ;;  %vm1008_vm2 = vcmask 261249  }
  0x18   :  { %v5152_v22 = vpack.c.bf16 %v77_v21, %v76_v20  ;;  %v79_v24 = vld [vmem:[%s7849_s1 + $0x78] sm:$0xff]  ;;  %v27_v26 = vld [vmem:[%s7848_s0] sm:$0xff]  ;;  %v28_v27 = vld [vmem:[%s7848_s0 + $0x8] sm:$0xff]  ;;  %s5571_s16 = smov 32   ;;  %s5572_s25 = smov 64   ;;  %vm1159_vm3 = vcmask 392450  }
  0x19   :  { %v5155_v25 = vpack.c.bf16 %v79_v24, %v78_v23  ;;  %v29_v28 = vld [vmem:[%s7848_s0 + $0x10] sm:$0xff]  ;;  %v30_v29 = vld [vmem:[%s7848_s0 + $0x18] sm:$0xff]  ;;  %v31_v30 = vld [vmem:[%s7848_s0 + $0x20] sm:$0xff]  ;;  %vm1010_vm4 = vcmask 261248   ;;  %vm1310_vm5 = vcmask 523651   ;;  %vm1461_vm6 = vcmask 654852  }
  0x1a   :  { %5147 = vmatpush3.bf16.msra.mxu0 %v5146_v16  ;;  %v32_v31 = vld [vmem:[%s7848_s0 + $0x28] sm:$0xff]  ;;  %v33_v32 = vld [vmem:[%s7848_s0 + $0x30] sm:$0xff]  ;;  %v34_v33 = vld [vmem:[%s7848_s0 + $0x38] sm:$0xff]  ;;  %vm1161_vm7 = vcmask 392448   ;;  %vm1312_vm8 = vcmask 523648   ;;  %vm1463_vm9 = vcmask 654848  }
  0x1b   :  { %5148 = vmatprep.subr.bf16.mxu0 %v5564_v3  ;;  %v35_v34 = vld [vmem:[%s7848_s0 + $0x40] sm:$0xff]  ;;  %v36_v35 = vld [vmem:[%s7848_s0 + $0x48] sm:$0xff]  ;;  %v37_v36 = vld [vmem:[%s7848_s0 + $0x50] sm:$0xff]  ;;  %vm1046_vm10 = vcmask 254080   ;;  %vm1197_vm11 = vcmask 386304   ;;  %vm1348_vm12 = vcmask 518528  }
  0x1c   :  { %v38_v37 = vld [vmem:[%s7848_s0 + $0x58] sm:$0xff]  ;;  %v39_v38 = vld [vmem:[%s7848_s0 + $0x60] sm:$0xff]  ;;  %v40_v39 = vld [vmem:[%s7848_s0 + $0x68] sm:$0xff]  ;;  %vm1499_vm13 = vcmask 650752   ;;  %vm3177_vm14 = vcmask 261120   ;;  %vm3505_vm15 = vcmask 253952  }
  0x1d   :  { %v41_v40 = vld [vmem:[%s7848_s0 + $0x70] sm:$0xff]  ;;  %v42_v41 = vld [vmem:[%s7848_s0 + $0x78] sm:$0xff]  ;;  %v43_v42 = vld [vmem:[%s7848_s0 + $0x80] sm:$0xff]  ;;  %s5574_s24 = smov [#allocation6]  }
  0x1e   :  { %5150 = vmatpush3.bf16.msra.mxu0 %v5149_v19  ;;  %v44_v43 = vld [vmem:[%s7848_s0 + $0x88] sm:$0xff]  ;;  %v45_v44 = vld [vmem:[%s7848_s0 + $0x90] sm:$0xff]  ;;  %v46_v45 = vld [vmem:[%s7848_s0 + $0x98] sm:$0xff]  ;;  %s4078_s27 = sshll.u32 %s5574_s24, 4  ;;  %s4079_s27 = int_to_ptr.vmem [resolvable:$true] %s4078_s27 }
  0x1f   :  { %5151 = vmatprep.subr.bf16.mxu0 %v5564_v3  ;;  %v47_v46 = vld [vmem:[%s7848_s0 + $0xa0] sm:$0xff]  ;;  %v48_v47 = vld [vmem:[%s7848_s0 + $0xa8] sm:$0xff]  ;;  %v49_v48 = vld [vmem:[%s7848_s0 + $0xb0] sm:$0xff]  ;;  %p5545_p1 = scmp.lt.s32.totalorder %s4079_s27, %s4079_s27 }
  0x20   :  { %v50_v49 = vld [vmem:[%s7848_s0 + $0xb8] sm:$0xff]  ;;  %v51_v50 = vld [vmem:[%s7848_s0 + $0xc0] sm:$0xff]  ;;  %v52_v51 = vld [vmem:[%s7848_s0 + $0xc8] sm:$0xff] }
  0x21   :  { %v53_v52 = vld [vmem:[%s7848_s0 + $0xd0] sm:$0xff]  ;;  %v54_v53 = vld [vmem:[%s7848_s0 + $0xd8] sm:$0xff]  ;;  %v55_v54 = vld [vmem:[%s7848_s0 + $0xe0] sm:$0xff] }
  0x22   :  { %5153 = vmatpush3.bf16.msra.mxu0 %v5152_v22  ;;  %v56_v55 = vld [vmem:[%s7848_s0 + $0xe8] sm:$0xff]  ;;  %v57_v56 = vld [vmem:[%s7848_s0 + $0xf0] sm:$0xff]  ;;  %v58_v57 = vld [vmem:[%s7848_s0 + $0xf8] sm:$0xff] }
  0x23   :  { %5154 = vmatprep.subr.bf16.mxu0 %v5564_v3  ;;  %v59_v58 = vld [vmem:[%s7848_s0 + $0x100] sm:$0xff]  ;;  %v60_v59 = vld [vmem:[%s7848_s0 + $0x108] sm:$0xff]  ;;  %v61_v60 = vld [vmem:[%s7848_s0 + $0x110] sm:$0xff] }
  0x24   :  { %v62_v61 = vld [vmem:[%s7848_s0 + $0x118] sm:$0xff]  ;;  %v63_v62 = vld [vmem:[%s7848_s0 + $0x120] sm:$0xff]  ;;  %s5568_s0 = smov 96  }
  0x26   :  { %5156 = vmatpush3.bf16.msra.mxu0 %v5155_v25 }
  0x29   :  { %4593 = vmatmul.mubr.f32.vlgmr.msra.gmra.mrb[0].mxu0 %v27_v26 }
  0x2a   :  { %4595 = vmatprep.mubr.msk.f32.mxu0 %vm5565_vm0, %v5566_v6 }
  0x2d   :  { %4596 = vmatmul.mubr.f32.gmra.mrb[2].mxu0 %v28_v27 }
  0x2e   :  { %4598 = vmatprep.mubr.msk.f32.mxu0 %vm5565_vm0, %v5566_v6 }
  0x31   :  { %4599 = vmatmul.mubr.f32.gmra.mrb[4].mxu0 %v29_v28 }
  0x32   :  { %4601 = vmatprep.mubr.msk.f32.mxu0 %vm5565_vm0, %v5566_v6 }
  0x35   :  { %4602 = vmatmul.mubr.f32.gmra.mrb[6].mxu0 %v30_v29 }
  0x36   :  { %4604 = vmatprep.mubr.msk.f32.mxu0 %vm5565_vm0, %v5566_v6 }
  0x39   :  { %4605 = vmatmul.mubr.f32.gmra.mrb[8].mxu0 %v31_v30 }
  0x3a   :  { %4607 = vmatprep.mubr.msk.f32.mxu0 %vm5565_vm0, %v5566_v6 }
  0x3d   :  { %4608 = vmatmul.mubr.f32.gmra.mrb[10].mxu0 %v32_v31 }
  0x3e   :  { %4610 = vmatprep.mubr.msk.f32.mxu0 %vm5565_vm0, %v5566_v6 }
  0x41   :  { %4611 = vmatmul.mubr.f32.gmra.mrb[12].mxu0 %v33_v32 }
  0x42   :  { %4613 = vmatprep.mubr.msk.f32.mxu0 %vm5565_vm0, %v5566_v6 }
  0x45   :  { %4614 = vmatmul.mubr.f32.gmra.mrb[14].mxu0 %v34_v33 }
  0x46   :  { %4616 = vmatprep.mubr.msk.f32.mxu0 %vm5565_vm0, %v5566_v6 }
  0x49   :  { %4617 = vmatmul.mubr.f32.gmra.mrb[16].mxu0 %v35_v34 }
  0x4a   :  { %4619 = vmatprep.mubr.msk.f32.mxu0 %vm5565_vm0, %v5566_v6 }
  0x4d   :  { %4620 = vmatmul.mubr.f32.gmra.mrb[18].mxu0 %v36_v35 }
  0x4e   :  { %4622 = vmatprep.mubr.msk.f32.mxu0 %vm5565_vm0, %v5566_v6 }
  0x51   :  { %4623 = vmatmul.mubr.f32.gmra.mrb[20].mxu0 %v37_v36 }
  0x52   :  { %4625 = vmatprep.mubr.msk.f32.mxu0 %vm5565_vm0, %v5566_v6 }
  0x55   :  { %4626 = vmatmul.mubr.f32.gmra.mrb[22].mxu0 %v38_v37 }
  0x56   :  { %4628 = vmatprep.mubr.msk.f32.mxu0 %vm5565_vm0, %v5566_v6 }
  0x59   :  { %4629 = vmatmul.mubr.f32.gmra.mrb[24].mxu0 %v39_v38 }
  0x5a   :  { %4631 = vmatprep.mubr.msk.f32.mxu0 %vm5565_vm0, %v5566_v6 }
  0x5d   :  { %4632 = vmatmul.mubr.f32.gmra.mrb[26].mxu0 %v40_v39 }
  0x5e   :  { %4634 = vmatprep.mubr.msk.f32.mxu0 %vm5565_vm0, %v5566_v6 }
  0x61   :  { %4635 = vmatmul.mubr.f32.gmra.mrb[28].mxu0 %v41_v40 }
  0x62   :  { %4637 = vmatprep.mubr.msk.f32.mxu0 %vm5565_vm0, %v5566_v6 }
  0x65   :  { %4638 = vmatmul.mubr.f32.gmra.mrb[30].mxu0 %v42_v41 }
  0x66   :  { %4640 = vmatprep.mubr.msk.f32.mxu0 %vm5565_vm0, %v5566_v6 }
  0x69   :  { %4641 = vmatmul.mubr.f32.gmra.mrb[32].mxu0 %v43_v42 }
  0x6a   :  { %4643 = vmatprep.mubr.msk.f32.mxu0 %vm5565_vm0, %v5566_v6 }
  0x6d   :  { %4644 = vmatmul.mubr.f32.gmra.mrb[34].mxu0 %v44_v43 }
  0x6e   :  { %4646 = vmatprep.mubr.msk.f32.mxu0 %vm5565_vm0, %v5566_v6 }
  0x71   :  { %4647 = vmatmul.mubr.f32.gmra.mrb[36].mxu0 %v45_v44 }
  0x72   :  { %4649 = vmatprep.mubr.msk.f32.mxu0 %vm5565_vm0, %v5566_v6 }
  0x75   :  { %4650 = vmatmul.mubr.f32.gmra.mrb[38].mxu0 %v46_v45 }
  0x76   :  { %4652 = vmatprep.mubr.msk.f32.mxu0 %vm5565_vm0, %v5566_v6 }
  0x79   :  { %4653 = vmatmul.mubr.f32.gmra.mrb[40].mxu0 %v47_v46 }
  0x7a   :  { %4655 = vmatprep.mubr.msk.f32.mxu0 %vm5565_vm0, %v5566_v6 }
  0x7d   :  { %4656 = vmatmul.mubr.f32.gmra.mrb[42].mxu0 %v48_v47 }
  0x7e   :  { %4658 = vmatprep.mubr.msk.f32.mxu0 %vm5565_vm0, %v5566_v6 }
  0x81   :  { %4659 = vmatmul.mubr.f32.gmra.mrb[44].mxu0 %v49_v48 }
  0x82   :  { %4661 = vmatprep.mubr.msk.f32.mxu0 %vm5565_vm0, %v5566_v6 }
  0x85   :  { %4662 = vmatmul.mubr.f32.gmra.mrb[46].mxu0 %v50_v49 }
  0x86   :  { %4664 = vmatprep.mubr.msk.f32.mxu0 %vm5565_vm0, %v5566_v6 }
  0x89   :  { %4665 = vmatmul.mubr.f32.gmra.mrb[48].mxu0 %v51_v50 }
  0x8a   :  { %4667 = vmatprep.mubr.msk.f32.mxu0 %vm5565_vm0, %v5566_v6 }
  0x8d   :  { %4668 = vmatmul.mubr.f32.gmra.mrb[50].mxu0 %v52_v51 }
  0x8e   :  { %4670 = vmatprep.mubr.msk.f32.mxu0 %vm5565_vm0, %v5566_v6 }
  0x91   :  { %4671 = vmatmul.mubr.f32.gmra.mrb[52].mxu0 %v53_v52 }
  0x92   :  { %4673 = vmatprep.mubr.msk.f32.mxu0 %vm5565_vm0, %v5566_v6 }
  0x95   :  { %4674 = vmatmul.mubr.f32.gmra.mrb[54].mxu0 %v54_v53 }
  0x96   :  { %4676 = vmatprep.mubr.msk.f32.mxu0 %vm5565_vm0, %v5566_v6 }
  0x99   :  { %4677 = vmatmul.mubr.f32.gmra.mrb[56].mxu0 %v55_v54 }
  0x9a   :  { %4679 = vmatprep.mubr.msk.f32.mxu0 %vm5565_vm0, %v5566_v6 }
  0x9d   :  { %4680 = vmatmul.mubr.f32.gmra.mrb[58].mxu0 %v56_v55 }
  0x9e   :  { %4682 = vmatprep.mubr.msk.f32.mxu0 %vm5565_vm0, %v5566_v6 }
  0xa1   :  { %4683 = vmatmul.mubr.f32.gmra.mrb[60].mxu0 %v57_v56 }
  0xa2   :  { %4685 = vmatprep.mubr.msk.f32.mxu0 %vm5565_vm0, %v5566_v6 }
  0xa5   :  { %4686 = vmatmul.mubr.f32.gmra.mrb[62].mxu0 %v58_v57 }
  0xa6   :  { %4688 = vmatprep.mubr.msk.f32.mxu0 %vm5565_vm0, %v5566_v6 }
  0xa9   :  { %4689 = vmatmul.mubr.f32.gmra.mrb[64].mxu0 %v59_v58 }
  0xaa   :  { %4691 = vmatprep.mubr.msk.f32.mxu0 %vm5565_vm0, %v5566_v6 }
  0xad   :  { %4692 = vmatmul.mubr.f32.gmra.mrb[66].mxu0 %v60_v59 }
  0xae   :  { %4694 = vmatprep.mubr.msk.f32.mxu0 %vm5565_vm0, %v5566_v6 }
  0xb1   :  { %4695 = vmatmul.mubr.f32.gmra.mrb[68].mxu0 %v61_v60 }
  0xb2   :  { %4697 = vmatprep.mubr.msk.f32.mxu0 %vm5565_vm0, %v5566_v6 }
  0xb5   :  { %4698 = vmatmul.mubr.f32.gmra.mrb[70].mxu0 %v62_v61 }
  0xb6   :  { %4700 = vmatprep.mubr.msk.f32.mxu0 %vm5565_vm0, %v5566_v6  ;;  %vm3519_vm0 = vcmask 516352  }
  0xb9   :  { %4701 = vmatmul.mubr.f32.gmra.mrb[72].mxu0 %v63_v62 }
  0xfc   :  { %v5897_v63 = vpop.f32.mrb[0].mxu0 }
  0xfd   :  { %367 = vrot.lane.b32.xlu0 %v5897_v63, %s5567_s12  ;;  %v4594_v0 = vpop.f32.mrb[1].mxu0 }
 0x100   :  { %v5901_v1 = vpop.f32.mrb[2].mxu0 }
 0x101   :  { %369 = vrot.lane.b32.xlu0 %v5901_v1, %s5567_s12  ;;  %v4597_v2 = vpop.f32.mrb[3].mxu0 }
 0x104   :  { %v5905_v3 = vpop.f32.mrb[4].mxu0 }
 0x105   :  { %371 = vrot.lane.b32.xlu1 %v5905_v3, %s5567_s12  ;;  %v4600_v4 = vpop.f32.mrb[5].mxu0 }
 0x108   :  { %v5909_v5 = vpop.f32.mrb[6].mxu0 }
 0x109   :  { %373 = vrot.lane.b32.xlu1 %v5909_v5, %s5567_s12  ;;  %v4603_v6 = vpop.f32.mrb[7].mxu0 }
 0x10c   :  { %v5913_v7 = vpop.f32.mrb[8].mxu0 }
 0x10d   :  { %375 = vrot.lane.b32.xlu0 %v5913_v7, %s5567_s12  ;;  %v4606_v8 = vpop.f32.mrb[9].mxu0 }
 0x110   :  { %v5917_v9 = vpop.f32.mrb[10].mxu0 }
 0x111   :  { %377 = vrot.lane.b32.xlu1 %v5917_v9, %s5567_s12  ;;  %v4609_v10 = vpop.f32.mrb[11].mxu0 }
 0x114   :  { %v5921_v11 = vpop.f32.mrb[12].mxu0 }
 0x115   :  { %379 = vrot.lane.b32.xlu0 %v5921_v11, %s5567_s12  ;;  %v4612_v12 = vpop.f32.mrb[13].mxu0 }
 0x118   :  { %v5925_v13 = vpop.f32.mrb[14].mxu0 }
 0x119   :  { %381 = vrot.lane.b32.xlu1 %v5925_v13, %s5567_s12  ;;  %v4615_v14 = vpop.f32.mrb[15].mxu0 }
 0x11c   :  { %v5929_v15 = vpop.f32.mrb[16].mxu0 }
 0x11d   :  { %383 = vrot.lane.b32.xlu0 %v5929_v15, %s5567_s12  ;;  %v4618_v16 = vpop.f32.mrb[17].mxu0 }
 0x120   :  { %v5933_v17 = vpop.f32.mrb[18].mxu0 }
 0x121   :  { %385 = vrot.lane.b32.xlu1 %v5933_v17, %s5567_s12  ;;  %v4621_v18 = vpop.f32.mrb[19].mxu0 }
 0x124   :  { %v5937_v19 = vpop.f32.mrb[20].mxu0 }
 0x125   :  { %387 = vrot.lane.b32.xlu0 %v5937_v19, %s5567_s12  ;;  %v4624_v20 = vpop.f32.mrb[21].mxu0 }
 0x128   :  { %v5941_v21 = vpop.f32.mrb[22].mxu0 }
 0x129   :  { %389 = vrot.lane.b32.xlu1 %v5941_v21, %s5567_s12  ;;  %v4627_v22 = vpop.f32.mrb[23].mxu0 }
 0x12c   :  { %v5945_v23 = vpop.f32.mrb[24].mxu0 }
 0x12d   :  { %391 = vrot.lane.b32.xlu0 %v5945_v23, %s5567_s12  ;;  %v4630_v24 = vpop.f32.mrb[25].mxu0 }
 0x130   :  { %v5949_v25 = vpop.f32.mrb[26].mxu0 }
 0x131   :  { %393 = vrot.lane.b32.xlu1 %v5949_v25, %s5567_s12  ;;  %v4633_v26 = vpop.f32.mrb[27].mxu0 }
 0x134   :  { %v5953_v27 = vpop.f32.mrb[28].mxu0 }
 0x135   :  { %395 = vrot.lane.b32.xlu0 %v5953_v27, %s5567_s12  ;;  %v4636_v28 = vpop.f32.mrb[29].mxu0 }
 0x138   :  { %v5957_v29 = vpop.f32.mrb[30].mxu0 }
 0x139   :  { %397 = vrot.lane.b32.xlu1 %v5957_v29, %s5567_s12  ;;  %v4639_v30 = vpop.f32.mrb[31].mxu0 }
 0x13c   :  { %v5961_v31 = vpop.f32.mrb[32].mxu0 }
 0x13d   :  { %399 = vrot.lane.b32.xlu0 %v5961_v31, %s5567_s12  ;;  %v4642_v32 = vpop.f32.mrb[33].mxu0 }
 0x140   :  { %v5965_v33 = vpop.f32.mrb[34].mxu0 }
 0x141   :  { %401 = vrot.lane.b32.xlu1 %v5965_v33, %s5567_s12  ;;  %v4645_v34 = vpop.f32.mrb[35].mxu0 }
 0x144   :  { %v5969_v35 = vpop.f32.mrb[36].mxu0 }
 0x145   :  { %403 = vrot.lane.b32.xlu0 %v5969_v35, %s5567_s12  ;;  %v4648_v36 = vpop.f32.mrb[37].mxu0 }
 0x148   :  { %v5973_v37 = vpop.f32.mrb[38].mxu0 }
 0x149   :  { %405 = vrot.lane.b32.xlu1 %v5973_v37, %s5567_s12  ;;  %v4651_v38 = vpop.f32.mrb[39].mxu0 }
 0x14c   :  { %v5977_v39 = vpop.f32.mrb[40].mxu0 }
 0x14d   :  { %407 = vrot.lane.b32.xlu0 %v5977_v39, %s5567_s12  ;;  %v4654_v40 = vpop.f32.mrb[41].mxu0 }
 0x150   :  { %v5981_v41 = vpop.f32.mrb[42].mxu0 }
 0x151   :  { %409 = vrot.lane.b32.xlu1 %v5981_v41, %s5567_s12  ;;  %v4657_v42 = vpop.f32.mrb[43].mxu0 }
 0x154   :  { %v5985_v43 = vpop.f32.mrb[44].mxu0 }
 0x155   :  { %411 = vrot.lane.b32.xlu0 %v5985_v43, %s5567_s12  ;;  %v4660_v44 = vpop.f32.mrb[45].mxu0 }
 0x158   :  { %v5989_v45 = vpop.f32.mrb[46].mxu0 }
 0x159   :  { %413 = vrot.lane.b32.xlu1 %v5989_v45, %s5567_s12  ;;  %v4663_v46 = vpop.f32.mrb[47].mxu0 }
 0x15c   :  { %v5993_v47 = vpop.f32.mrb[48].mxu0 }
 0x15d   :  { %415 = vrot.lane.b32.xlu0 %v5993_v47, %s5567_s12  ;;  %v4666_v48 = vpop.f32.mrb[49].mxu0 }
 0x160   :  { %v5997_v49 = vpop.f32.mrb[50].mxu0 }
 0x161   :  { %417 = vrot.lane.b32.xlu1 %v5997_v49, %s5567_s12  ;;  %v4669_v50 = vpop.f32.mrb[51].mxu0 }
 0x164   :  { %v6001_v51 = vpop.f32.mrb[52].mxu0 }
 0x165   :  { %419 = vrot.lane.b32.xlu0 %v6001_v51, %s5567_s12  ;;  %v4672_v52 = vpop.f32.mrb[53].mxu0 }
 0x168   :  { %v6005_v53 = vpop.f32.mrb[54].mxu0 }
 0x169   :  { %421 = vrot.lane.b32.xlu1 %v6005_v53, %s5567_s12  ;;  %v4675_v54 = vpop.f32.mrb[55].mxu0 }
 0x16c   :  { %v6009_v55 = vpop.f32.mrb[56].mxu0 }
 0x16d   :  { %423 = vrot.lane.b32.xlu0 %v6009_v55, %s5567_s12  ;;  %v4678_v56 = vpop.f32.mrb[57].mxu0 }
 0x16f   :  { %v368_v57 = vpop.permute.xlu0 %367 }
 0x170   :  { %v6014_v58 = vmax.f32 %v5897_v63, %v368_v57  ;;  %v6016_v59 = vpop.f32.mrb[58].mxu0 }
 0x171   :  { %425 = vrot.lane.b32.xlu1 %v6016_v59, %s5567_s12  ;;  %v4681_v60 = vpop.f32.mrb[59].mxu0 }
 0x172   :  { %552 = vrot.lane.b32.xlu0 %v6014_v58, %s5568_s0 }
 0x173   :  { %v370_v61 = vpop.permute.xlu0 %369 }
 0x174   :  { %v6023_v62 = vmax.f32 %v5901_v1, %v370_v61  ;;  %v6025_v0 = vpop.f32.mrb[60].mxu0 }
 0x175   :  { %v4684_v2 = vpop.f32.mrb[61].mxu0 }
 0x176   :  { %554 = vrot.lane.b32.xlu1 %v6023_v62, %s5568_s0  ;;  %427 = vrot.lane.b32.xlu0 %v6025_v0, %s5567_s12 }
 0x177   :  { %v372_v63 = vpop.permute.xlu1 %371 }
 0x178   :  { %v6031_v4 = vpop.f32.mrb[62].mxu0  ;;  %v6036_v8 = vmax.f32 %v5905_v3, %v372_v63 }
 0x179   :  { %v4687_v6 = vpop.f32.mrb[63].mxu0 }
 0x17a   :  { %429 = vrot.lane.b32.xlu1 %v6031_v4, %s5567_s12 }
 0x17b   :  { %v374_v10 = vpop.permute.xlu1 %373 }
 0x17c   :  { %v6038_v1 = vpop.f32.mrb[64].mxu0  ;;  %v6045_v14 = vmax.f32 %v5909_v5, %v374_v10 }
 0x17d   :  { %431 = vrot.lane.b32.xlu0 %v6038_v1, %s5567_s12  ;;  %v4690_v12 = vpop.f32.mrb[65].mxu0 }
 0x17e   :  { %556 = vrot.lane.b32.xlu1 %v6036_v8, %s5568_s0 }
 0x17f   :  { %v376_v18 = vpop.permute.xlu0 %375 }
 0x180   :  { %v6047_v16 = vpop.f32.mrb[66].mxu0  ;;  %v6054_v20 = vmax.f32 %v5913_v7, %v376_v18 }
 0x181   :  { %433 = vrot.lane.b32.xlu0 %v6047_v16, %s5567_s12  ;;  %v4693_v3 = vpop.f32.mrb[67].mxu0 }
 0x182   :  { %558 = vrot.lane.b32.xlu1 %v6045_v14, %s5568_s0 }
 0x183   :  { %v378_v24 = vpop.permute.xlu1 %377 }
 0x184   :  { %v6056_v22 = vpop.f32.mrb[68].mxu0  ;;  %v6063_v26 = vmax.f32 %v5917_v9, %v378_v24 }
 0x185   :  { %435 = vrot.lane.b32.xlu0 %v6056_v22, %s5567_s12  ;;  %v4696_v5 = vpop.f32.mrb[69].mxu0 }
 0x186   :  { %560 = vrot.lane.b32.xlu1 %v6054_v20, %s5568_s0 }
 0x187   :  { %v380_v30 = vpop.permute.xlu0 %379 }
 0x188   :  { %v6065_v28 = vpop.f32.mrb[70].mxu0  ;;  %v6072_v32 = vmax.f32 %v5921_v11, %v380_v30 }
 0x189   :  { %437 = vrot.lane.b32.xlu0 %v6065_v28, %s5567_s12  ;;  %v4699_v7 = vpop.f32.mrb[71].mxu0 }
 0x18a   :  { %562 = vrot.lane.b32.xlu1 %v6063_v26, %s5568_s0 }
 0x18b   :  { %v382_v34 = vpop.permute.xlu1 %381 }
 0x18c   :  { %v6074_v36 = vpop.f32.mrb[72].mxu0  ;;  %v6081_v38 = vmax.f32 %v5925_v13, %v382_v34 }
 0x18d   :  { %439 = vrot.lane.b32.xlu0 %v6074_v36, %s5567_s12  ;;  %v4702_v9 = vpop.f32.mrb[73].mxu0 }
 0x18e   :  { %564 = vrot.lane.b32.xlu1 %v6072_v32, %s5568_s0  ;;  %v1539_v9 = vld [vmem:[%s7851_s3 + $0x10] sm:$0xff] }
 0x18f   :  { %v384_v40 = vpop.permute.xlu0 %383 }
 0x190   :  { %v6084_v42 = vmax.f32 %v5929_v15, %v384_v40  ;;  %v1540_v40 = vld [vmem:[%s7851_s3 + $0x18] sm:$0xff] }
 0x191   :  { %566 = vrot.lane.b32.xlu0 %v6081_v38, %s5568_s0 }
 0x192   :  { %568 = vrot.lane.b32.xlu1 %v6084_v42, %s5568_s0 }
 0x193   :  { %v386_v11 = vpop.permute.xlu1 %385 }
 0x194   :  { %v6091_v44 = vmax.f32 %v5933_v17, %v386_v11 }
 0x196   :  { %570 = vrot.lane.b32.xlu0 %v6091_v44, %s5568_s0 }
 0x197   :  { %v388_v46 = vpop.permute.xlu0 %387 }
 0x198   :  { %v6096_v13 = vmax.f32 %v5937_v19, %v388_v46 }
 0x19a   :  { %572 = vrot.lane.b32.xlu1 %v6096_v13, %s5568_s0 }
 0x19b   :  { %v390_v15 = vpop.permute.xlu1 %389 }
 0x19c   :  { %v6101_v48 = vmax.f32 %v5941_v21, %v390_v15  ;;  %v5193_v15 = vpack.c.bf16 %v1540_v40, %v1539_v9 }
 0x19e   :  { %574 = vrot.lane.b32.xlu0 %v6101_v48, %s5568_s0 }
 0x19f   :  { %v392_v50 = vpop.permute.xlu0 %391 }
 0x1a0   :  { %v6106_v17 = vmax.f32 %v5945_v23, %v392_v50 }
 0x1a2   :  { %576 = vrot.lane.b32.xlu1 %v6106_v17, %s5568_s0 }
 0x1a3   :  { %v394_v52 = vpop.permute.xlu1 %393 }
 0x1a4   :  { %v6111_v19 = vmax.f32 %v5949_v25, %v394_v52 }
 0x1a6   :  { %578 = vrot.lane.b32.xlu0 %v6111_v19, %s5568_s0 }
 0x1a7   :  { %v396_v54 = vpop.permute.xlu0 %395 }
 0x1a8   :  { %v6116_v21 = vmax.f32 %v5953_v27, %v396_v54  ;;  %v1542_v54 = vld [vmem:[%s7851_s3 + $0x28] sm:$0xff] }
 0x1aa   :  { %580 = vrot.lane.b32.xlu1 %v6116_v21, %s5568_s0 }
 0x1ab   :  { %v398_v56 = vpop.permute.xlu1 %397 }
 0x1ac   :  { %v6121_v23 = vmax.f32 %v5957_v29, %v398_v56 }
 0x1ae   :  { %582 = vrot.lane.b32.xlu0 %v6121_v23, %s5568_s0 }
 0x1af   :  { %v400_v57 = vpop.permute.xlu0 %399 }
 0x1b0   :  { %v6126_v25 = vmax.f32 %v5961_v31, %v400_v57 }
 0x1b2   :  { %584 = vrot.lane.b32.xlu1 %v6126_v25, %s5568_s0 }
 0x1b3   :  { %v402_v60 = vpop.permute.xlu1 %401 }
 0x1b4   :  { %v6131_v27 = vmax.f32 %v5965_v33, %v402_v60 }
 0x1b6   :  { %586 = vrot.lane.b32.xlu0 %v6131_v27, %s5568_s0 }
 0x1b7   :  { %v404_v61 = vpop.permute.xlu0 %403 }
 0x1b8   :  { %v6136_v29 = vmax.f32 %v5969_v35, %v404_v61 }
 0x1ba   :  { %588 = vrot.lane.b32.xlu1 %v6136_v29, %s5568_s0 }
 0x1bb   :  { %v406_v2 = vpop.permute.xlu1 %405 }
 0x1bc   :  { %v6141_v31 = vmax.f32 %v5973_v37, %v406_v2 }
 0x1be   :  { %590 = vrot.lane.b32.xlu0 %v6141_v31, %s5568_s0 }
 0x1bf   :  { %v408_v63 = vpop.permute.xlu0 %407 }
 0x1c0   :  { %v6146_v33 = vmax.f32 %v5977_v39, %v408_v63 }
 0x1c2   :  { %592 = vrot.lane.b32.xlu1 %v6146_v33, %s5568_s0 }
 0x1c3   :  { %v410_v6 = vpop.permute.xlu1 %409 }
 0x1c4   :  { %v6151_v35 = vmax.f32 %v5981_v41, %v410_v6  ;;  %v1543_v6 = vld [vmem:[%s7851_s3 + $0x30] sm:$0xff] }
 0x1c6   :  { %594 = vrot.lane.b32.xlu0 %v6151_v35, %s5568_s0 }
 0x1c7   :  { %v412_v10 = vpop.permute.xlu0 %411 }
 0x1c8   :  { %v6156_v37 = vmax.f32 %v5985_v43, %v412_v10 }
 0x1ca   :  { %596 = vrot.lane.b32.xlu1 %v6156_v37, %s5568_s0 }
 0x1cb   :  { %v414_v12 = vpop.permute.xlu1 %413 }
 0x1cc   :  { %v6161_v39 = vmax.f32 %v5989_v45, %v414_v12 }
 0x1ce   :  { %598 = vrot.lane.b32.xlu0 %v6161_v39, %s5568_s0 }
 0x1cf   :  { %v416_v18 = vpop.permute.xlu0 %415 }
 0x1d0   :  { %v6166_v41 = vmax.f32 %v5993_v47, %v416_v18 }
 0x1d2   :  { %600 = vrot.lane.b32.xlu1 %v6166_v41, %s5568_s0 }
 0x1d3   :  { %v418_v3 = vpop.permute.xlu1 %417 }
 0x1d4   :  { %v6171_v43 = vmax.f32 %v5997_v49, %v418_v3  ;;  %v1537_v49 = vld [vmem:[%s7851_s3] sm:$0xff] }
 0x1d6   :  { %602 = vrot.lane.b32.xlu0 %v6171_v43, %s5568_s0 }
 0x1d7   :  { %v420_v24 = vpop.permute.xlu0 %419 }
 0x1d8   :  { %v6176_v45 = vmax.f32 %v6001_v51, %v420_v24  ;;  %v1538_v51 = vld [vmem:[%s7851_s3 + $0x8] sm:$0xff]  ;;  %v4087_v24 = vld [vmem:[%s7851_s3 + $0x80] sm:$0xff] }
 0x1d9   :  { %v5189_v34 = vpack.c.bf16 %v1538_v51, %v1537_v49  ;;  %v1545_v49 = vld [vmem:[%s7851_s3 + $0x40] sm:$0xff]  ;;  %v1546_v51 = vld [vmem:[%s7851_s3 + $0x48] sm:$0xff] }
 0x1da   :  { %604 = vrot.lane.b32.xlu1 %v6176_v45, %s5568_s0 }
 0x1db   :  { %v422_v5 = vpop.permute.xlu1 %421  ;;  %5190 = vmatprep.subr.bf16.mxu1 %v5189_v34 }
 0x1dc   :  { %v6181_v47 = vmax.f32 %v6005_v53, %v422_v5  ;;  %5192 = vmatpush3.bf16.msra.mxu1 %v5189_v34  ;;  %v4088_v5 = vld [vmem:[%s7851_s3 + $0x88] sm:$0xff] }
 0x1dd   :  { %5194 = vmatprep.subr.bf16.mxu1 %v5193_v15 }
 0x1de   :  { %606 = vrot.lane.b32.xlu0 %v6181_v47, %s5568_s0 }
 0x1df   :  { %v424_v30 = vpop.permute.xlu0 %423 }
 0x1e0   :  { %v6192_v7 = vmax.f32 %v6009_v55, %v424_v30  ;;  %v6208_v55 = vld [vmem:[%s7850_s2] ss:$0 sm:$0xff]  ;;  %5196 = vmatpush3.bf16.msra.mxu1 %v5193_v15  ;;  %v5157_v30 = vpack.c.bf16 %v4088_v5, %v4087_v24  ;;  %v4090_v15 = vld [vmem:[%s7851_s3 + $0x98] sm:$0xff]  ;;  %v1550_v24 = vld [vmem:[%s7851_s3 + $0x68] sm:$0xff] }
 0x1e2   :  { %608 = vrot.lane.b32.xlu1 %v6192_v7, %s5568_s0  ;;  %5158 = vmatprep.subr.bf16.mxu0 %v5157_v30 }
 0x1e3   :  { %v426_v53 = vpop.permute.xlu1 %425  ;;  %5160 = vmatpush3.bf16.msra.mxu0 %v5157_v30 }
 0x1e4   :  { %v6203_v11 = vmax.f32 %v6016_v59, %v426_v53  ;;  %v553_v46 = vpop.permute.xlu0 %552  ;;  %v1541_v59 = vld [vmem:[%s7851_s3 + $0x20] sm:$0xff]  ;;  %v5205_v53 = vpack.c.bf16 %v1546_v51, %v1545_v49  ;;  %v4094_v51 = vld [vmem:[%s7851_s3 + $0xb8] sm:$0xff] }
 0x1e5   :  { %v663_v50 = vmax.f32 %v6014_v58, %v553_v46  ;;  %v5197_v60 = vpack.c.bf16 %v1542_v54, %v1541_v59  ;;  %v4089_v46 = vld [vmem:[%s7851_s3 + $0x90] sm:$0xff]  ;;  %v1548_v59 = vld [vmem:[%s7851_s3 + $0x58] sm:$0xff] }
 0x1e6   :  { %610 = vrot.lane.b32.xlu0 %v6203_v11, %s5568_s0 }
 0x1e7   :  { %v707_v52 = vadd.f32 %v6208_v55, %v663_v50  ;;  %5198 = vmatprep.subr.bf16.mxu1 %v5197_v60  ;;  %v5161_v50 = vpack.c.bf16 %v4090_v15, %v4089_v46  ;;  %v1552_v15 = vld [vmem:[%s7851_s3 + $0x78] sm:$0xff] }
 0x1e8   :  { %v555_v56 = vpop.permute.xlu1 %554  ;;  %v428_v57 = vpop.permute.xlu0 %427  ;;  %5200 = vmatpush3.bf16.msra.mxu1 %v5197_v60 }
 0x1e9   :  { %v744_v58 = vmax.f32 %v707_v52, 0.0  ;;  %v664_v61 = vmax.f32 %v6023_v62, %v555_v56  ;;  %v6222_v2 = vmax.f32 %v6025_v0, %v428_v57  ;;  %v1544_v62 = vld [vmem:[%s7851_s3 + $0x38] sm:$0xff]  ;;  %v1547_v52 = vld [vmem:[%s7851_s3 + $0x50] sm:$0xff]  ;;  %5162 = vmatprep.subr.bf16.mxu0 %v5161_v50 }
 0x1ea   :  { %v5201_v10 = vpack.c.bf16 %v1544_v62, %v1543_v6  ;;  %v5209_v57 = vpack.c.bf16 %v1548_v59, %v1547_v52  ;;  %5164 = vmatpush3.bf16.msra.mxu0 %v5161_v50  ;;  %v4092_v6 = vld [vmem:[%s7851_s3 + $0xa8] sm:$0xff] }
 0x1eb   :  { %v708_v63 = vadd.f32 %v6208_v55, %v664_v61  ;;  %612 = vrot.lane.b32.xlu1 %v6222_v2, %s5568_s0  ;;  %1199 = vrot.lane.b32.xlu0 %v744_v58, %s5569_s26  ;;  %824 = vst.msk [vmem:[#allocation2] sm:$0xff] %vm823_vm1, %v744_v58  ;;  %v4096_v52 = vld [vmem:[%s7851_s3 + $0xc8] sm:$0xff] }
 0x1ec   :  { %v430_v0 = vpop.permute.xlu1 %429  ;;  %5202 = vmatprep.subr.bf16.mxu1 %v5201_v10 }
 0x1ed   :  { %v745_v12 = vmax.f32 %v708_v63, 0.0  ;;  %v6236_v18 = vmax.f32 %v6031_v4, %v430_v0  ;;  %5204 = vmatpush3.bf16.msra.mxu1 %v5201_v10 }
 0x1ee   :  { %5206 = vmatprep.subr.bf16.mxu1 %v5205_v53 }
 0x1ef   :  { %897 = vrot.lane.b32.xlu1 %v744_v58, %s5570_s8  ;;  %v432_v3 = vpop.permute.xlu0 %431  ;;  %614 = vrot.lane.b32.xlu0 %v6236_v18, %s5568_s0  ;;  %825 = vst.msk [vmem:[#allocation2 + $0x8] sm:$0xff] %vm823_vm1, %v745_v12 }
 0x1f0   :  { %v557_v4 = vpop.permute.xlu1 %556 }
 0x1f1   :  { %v665_v34 = vmax.f32 %v6036_v8, %v557_v4  ;;  %5208 = vmatpush3.bf16.msra.mxu1 %v5205_v53 }
 0x1f2   :  { %5210 = vmatprep.subr.bf16.mxu1 %v5209_v57 }
 0x1f3   :  { %v709_v9 = vadd.f32 %v6208_v55, %v665_v34  ;;  %1048 = vrot.lane.b32.xlu1 %v744_v58, %s5571_s16  ;;  %v6257_v40 = vpop.permute.xlu0 %433  ;;  %899 = vrot.lane.b32.xlu0 %v745_v12, %s5570_s8  ;;  %v1551_v34 = vld [vmem:[%s7851_s3 + $0x70] sm:$0xff] }
 0x1f4   :  { %v559_v8 = vpop.permute.xlu1 %558 }
 0x1f5   :  { %v6272_v54 = vmax.f32 %v709_v9, 0.0  ;;  %v666_v56 = vmax.f32 %v6045_v14, %v559_v8  ;;  %v4091_v14 = vld [vmem:[%s7851_s3 + $0xa0] sm:$0xff]  ;;  %5212 = vmatpush3.bf16.msra.mxu1 %v5209_v57  ;;  %v5217_v8 = vpack.c.bf16 %v1552_v15, %v1551_v34 }
 0x1f6   :  { %v5165_v10 = vpack.c.bf16 %v4092_v6, %v4091_v14 }
 0x1f7   :  { %v710_v60 = vadd.f32 %v6208_v55, %v666_v56  ;;  %1350 = vrot.lane.b32.xlu1 %v744_v58, %s5572_s25  ;;  %v6277_v61 = vpop.permute.xlu0 %435  ;;  %1050 = vrot.lane.b32.xlu0 %v745_v12, %s5571_s16  ;;  %826 = vst.msk [vmem:[#allocation2 + $0x10] sm:$0xff] %vm823_vm1, %v6272_v54  ;;  %v1549_v58 = vld [vmem:[%s7851_s3 + $0x60] sm:$0xff] }
 0x1f8   :  { %v561_v63 = vpop.permute.xlu1 %560  ;;  %v5213_v5 = vpack.c.bf16 %v1550_v24, %v1549_v58  ;;  %5166 = vmatprep.subr.bf16.mxu0 %v5165_v10  ;;  %v4098_v58 = vld [vmem:[%s7851_s3 + $0xd8] sm:$0xff] }
 0x1f9   :  { %v6291_v62 = vmax.f32 %v710_v60, 0.0  ;;  %v667_v0 = vmax.f32 %v6054_v20, %v561_v63  ;;  %v4093_v20 = vld [vmem:[%s7851_s3 + $0xb0] sm:$0xff]  ;;  %5168 = vmatpush3.bf16.msra.mxu0 %v5165_v10 }
 0x1fa   :  { %5214 = vmatprep.subr.bf16.mxu1 %v5213_v5  ;;  %v5169_v46 = vpack.c.bf16 %v4094_v51, %v4093_v20 }
 0x1fb   :  { %v711_v4 = vadd.f32 %v6208_v55, %v667_v0  ;;  %1201 = vrot.lane.b32.xlu1 %v745_v12, %s5569_s26  ;;  %v6299_v30 = vpop.permute.xlu0 %437  ;;  %1352 = vrot.lane.b32.xlu0 %v745_v12, %s5572_s25  ;;  %827 = vst.msk [vmem:[#allocation2 + $0x18] sm:$0xff] %vm823_vm1, %v6291_v62  ;;  %v6314_v12 = vmax.f32 %v6038_v1, %v432_v3  ;;  %v4095_v3 = vld [vmem:[%s7851_s3 + $0xc0] sm:$0xff] }
 0x1fc   :  { %v563_v49 = vpop.permute.xlu1 %562  ;;  %5216 = vmatpush3.bf16.msra.mxu1 %v5213_v5  ;;  %5170 = vmatprep.subr.bf16.mxu0 %v5169_v46  ;;  %v5173_v57 = vpack.c.bf16 %v4096_v52, %v4095_v3  ;;  %v6356_v0 = vmax.f32 %v6047_v16, %v6257_v40 }
 0x1fd   :  { %v6316_v53 = vmax.f32 %v711_v4, 0.0  ;;  %v668_v9 = vmax.f32 %v6063_v26, %v563_v49  ;;  %5218 = vmatprep.subr.bf16.mxu1 %v5217_v8  ;;  %5172 = vmatpush3.bf16.msra.mxu0 %v5169_v46  ;;  %v4100_v49 = vld [vmem:[%s7851_s3 + $0xe8] sm:$0xff] }
 0x1fe   :  { %5174 = vmatprep.subr.bf16.mxu0 %v5173_v57 }
 0x1ff   :  { %v712_v50 = vadd.f32 %v6208_v55, %v668_v9  ;;  %616 = vrot.lane.b32.xlu1 %v6314_v12, %s5568_s0  ;;  %901 = vrot.lane.b32.xlu0 %v6272_v54, %s5570_s8  ;;  %v6327_v1 = vpop.permute.xlu0 %439  ;;  %828 = vst.msk [vmem:[#allocation2 + $0x20] sm:$0xff] %vm823_vm1, %v6316_v53 }
 0x200   :  { %v565_v26 = vpop.permute.xlu1 %564  ;;  %5220 = vmatpush3.bf16.msra.mxu1 %v5217_v8 }
 0x201   :  { %v6337_v59 = vmax.f32 %v712_v50, 0.0  ;;  %v669_v56 = vmax.f32 %v6072_v32, %v565_v26  ;;  %v4097_v32 = vld [vmem:[%s7851_s3 + $0xd0] sm:$0xff]  ;;  %5176 = vmatpush3.bf16.msra.mxu0 %v5173_v57 }
 0x203   :  { %v713_v60 = vadd.f32 %v6208_v55, %v669_v56  ;;  %1052 = vrot.lane.b32.xlu1 %v6272_v54, %s5571_s16  ;;  %1203 = vrot.lane.b32.xlu0 %v6272_v54, %s5569_s26  ;;  %v567_v63 = vpop.permute.xlu0 %566  ;;  %829 = vst.msk [vmem:[#allocation2 + $0x28] sm:$0xff] %vm823_vm1, %v6337_v59 }
 0x204   :  { %v670_v14 = vmax.f32 %v6081_v38, %v567_v63  ;;  %v569_v6 = vpop.permute.xlu1 %568  ;;  %v5177_v38 = vpack.c.bf16 %v4098_v58, %v4097_v32 }
 0x205   :  { %v6358_v10 = vmax.f32 %v713_v60, 0.0  ;;  %v671_v24 = vmax.f32 %v6084_v42, %v569_v6  ;;  %v4099_v42 = vld [vmem:[%s7851_s3 + $0xe0] sm:$0xff] }
 0x206   :  { %v714_v5 = vadd.f32 %v6208_v55, %v670_v14  ;;  %5178 = vmatprep.subr.bf16.mxu0 %v5177_v38  ;;  %v5181_v34 = vpack.c.bf16 %v4100_v49, %v4099_v42  ;;  %v6431_v14 = vmax.f32 %v6065_v28, %v6299_v30  ;;  %v6475_v42 = vmax.f32 %v6074_v36, %v6327_v1 }
 0x207   :  { %v715_v4 = vadd.f32 %v6208_v55, %v671_v24  ;;  %1354 = vrot.lane.b32.xlu1 %v6272_v54, %s5572_s25  ;;  %618 = vrot.lane.b32.xlu0 %v6356_v0, %s5568_s0  ;;  %830 = vst.msk [vmem:[#allocation2 + $0x30] sm:$0xff] %vm823_vm1, %v6358_v10  ;;  %v6379_v54 = vmax.f32 %v6056_v22, %v6277_v61  ;;  %v4102_v61 = vld [vmem:[%s7851_s3 + $0xf8] sm:$0xff] }
 0x208   :  { %v6369_v16 = vmax.f32 %v714_v5, 0.0  ;;  %v571_v40 = vpop.permute.xlu0 %570  ;;  %5180 = vmatpush3.bf16.msra.mxu0 %v5177_v38 }
 0x209   :  { %v6381_v20 = vmax.f32 %v715_v4, 0.0  ;;  %v672_v51 = vmax.f32 %v6091_v44, %v571_v40  ;;  %5182 = vmatprep.subr.bf16.mxu0 %v5181_v34  ;;  %v4101_v44 = vld [vmem:[%s7851_s3 + $0xf0] sm:$0xff] }
 0x20a   :  { %831 = vst.msk [vmem:[#allocation2 + $0x38] sm:$0xff] %vm823_vm1, %v6369_v16  ;;  %v5185_v8 = vpack.c.bf16 %v4102_v61, %v4101_v44 }
 0x20b   :  { %v716_v9 = vadd.f32 %v6208_v55, %v672_v51  ;;  %620 = vrot.lane.b32.xlu1 %v6379_v54, %s5568_s0  ;;  %903 = vrot.lane.b32.xlu0 %v6291_v62, %s5570_s8  ;;  %832 = vst.msk [vmem:[#allocation2 + $0x40] sm:$0xff] %vm823_vm1, %v6381_v20 }
 0x20c   :  { %v573_v22 = vpop.permute.xlu1 %572  ;;  %5184 = vmatpush3.bf16.msra.mxu0 %v5181_v34 }
 0x20d   :  { %v6399_v46 = vmax.f32 %v716_v9, 0.0  ;;  %v673_v15 = vmax.f32 %v6096_v13, %v573_v22  ;;  %5186 = vmatprep.subr.bf16.mxu0 %v5185_v8 }
 0x20f   :  { %v717_v50 = vadd.f32 %v6208_v55, %v673_v15  ;;  %905 = vrot.lane.b32.xlu1 %v6316_v53, %s5570_s8  ;;  %1054 = vrot.lane.b32.xlu0 %v6291_v62, %s5571_s16  ;;  %833 = vst.msk [vmem:[#allocation2 + $0x48] sm:$0xff] %vm823_vm1, %v6399_v46 }
 0x210   :  { %v575_v26 = vpop.permute.xlu0 %574  ;;  %5188 = vmatpush3.bf16.msra.mxu0 %v5185_v8 }
 0x211   :  { %v6409_v3 = vmax.f32 %v717_v50, 0.0  ;;  %v674_v52 = vmax.f32 %v6101_v48, %v575_v26 }
 0x213   :  { %v718_v13 = vadd.f32 %v6208_v55, %v674_v52  ;;  %1056 = vrot.lane.b32.xlu1 %v6316_v53, %s5571_s16  ;;  %1205 = vrot.lane.b32.xlu0 %v6291_v62, %s5569_s26  ;;  %834 = vst.msk [vmem:[#allocation2 + $0x50] sm:$0xff] %vm823_vm1, %v6409_v3 }
 0x214   :  { %v577_v56 = vpop.permute.xlu1 %576 }
 0x215   :  { %v6419_v57 = vmax.f32 %v718_v13, 0.0  ;;  %v675_v60 = vmax.f32 %v6106_v17, %v577_v56 }
 0x217   :  { %v719_v63 = vadd.f32 %v6208_v55, %v675_v60  ;;  %1207 = vrot.lane.b32.xlu1 %v6316_v53, %s5569_s26  ;;  %1356 = vrot.lane.b32.xlu0 %v6291_v62, %s5572_s25  ;;  %835 = vst.msk [vmem:[#allocation2 + $0x58] sm:$0xff] %vm823_vm1, %v6419_v57 }
 0x218   :  { %v579_v48 = vpop.permute.xlu0 %578 }
 0x219   :  { %v6433_v6 = vmax.f32 %v719_v63, 0.0  ;;  %v676_v17 = vmax.f32 %v6111_v19, %v579_v48 }
 0x21b   :  { %v720_v32 = vadd.f32 %v6208_v55, %v676_v17  ;;  %622 = vrot.lane.b32.xlu1 %v6431_v14, %s5568_s0  ;;  %1358 = vrot.lane.b32.xlu0 %v6316_v53, %s5572_s25  ;;  %836 = vst.msk [vmem:[#allocation2 + $0x60] sm:$0xff] %vm823_vm1, %v6433_v6 }
 0x21c   :  { %v581_v62 = vpop.permute.xlu1 %580 }
 0x21d   :  { %v6443_v58 = vmax.f32 %v720_v32, 0.0  ;;  %v677_v28 = vmax.f32 %v6116_v21, %v581_v62 }
 0x21f   :  { %v721_v30 = vadd.f32 %v6208_v55, %v677_v28  ;;  %907 = vrot.lane.b32.xlu1 %v6337_v59, %s5570_s8  ;;  %1058 = vrot.lane.b32.xlu0 %v6337_v59, %s5571_s16  ;;  %837 = vst.msk [vmem:[#allocation2 + $0x68] sm:$0xff] %vm823_vm1, %v6443_v58 }
 0x220   :  { %v583_v19 = vpop.permute.xlu0 %582 }
 0x221   :  { %v6453_v53 = vmax.f32 %v721_v30, 0.0  ;;  %v678_v24 = vmax.f32 %v6121_v23, %v583_v19 }
 0x223   :  { %v722_v38 = vadd.f32 %v6208_v55, %v678_v24  ;;  %909 = vrot.lane.b32.xlu1 %v6358_v10, %s5570_s8  ;;  %1209 = vrot.lane.b32.xlu0 %v6337_v59, %s5569_s26  ;;  %838 = vst.msk [vmem:[#allocation2 + $0x70] sm:$0xff] %vm823_vm1, %v6453_v53 }
 0x224   :  { %v585_v21 = vpop.permute.xlu1 %584 }
 0x225   :  { %v6463_v5 = vmax.f32 %v722_v38, 0.0  ;;  %v679_v4 = vmax.f32 %v6126_v25, %v585_v21 }
 0x227   :  { %v723_v40 = vadd.f32 %v6208_v55, %v679_v4  ;;  %1060 = vrot.lane.b32.xlu1 %v6358_v10, %s5571_s16  ;;  %1360 = vrot.lane.b32.xlu0 %v6337_v59, %s5572_s25  ;;  %839 = vst.msk [vmem:[#allocation2 + $0x78] sm:$0xff] %vm823_vm1, %v6463_v5 }
 0x228   :  { %v587_v23 = vpop.permute.xlu0 %586 }
 0x229   :  { %v6477_v49 = vmax.f32 %v723_v40, 0.0  ;;  %v680_v25 = vmax.f32 %v6131_v27, %v587_v23 }
 0x22b   :  { %v724_v51 = vadd.f32 %v6208_v55, %v680_v25  ;;  %1211 = vrot.lane.b32.xlu1 %v6358_v10, %s5569_s26  ;;  %624 = vrot.lane.b32.xlu0 %v6475_v42, %s5568_s0  ;;  %840 = vst.msk [vmem:[#allocation2 + $0x80] sm:$0xff] %vm823_vm1, %v6477_v49 }
 0x22c   :  { %v589_v59 = vpop.permute.xlu1 %588 }
 0x22d   :  { %v6487_v34 = vmax.f32 %v724_v51, 0.0  ;;  %v681_v36 = vmax.f32 %v6136_v29, %v589_v59 }
 0x22f   :  { %v725_v1 = vadd.f32 %v6208_v55, %v681_v36  ;;  %1362 = vrot.lane.b32.xlu0 %v6358_v10, %s5572_s25  ;;  %911 = vrot.lane.b32.xlu1 %v6369_v16, %s5570_s8  ;;  %841 = vst.msk [vmem:[#allocation2 + $0x88] sm:$0xff] %vm823_vm1, %v6487_v34 }
 0x230   :  { %v591_v27 = vpop.permute.xlu0 %590 }
 0x231   :  { %v6497_v9 = vmax.f32 %v725_v1, 0.0  ;;  %v682_v22 = vmax.f32 %v6141_v31, %v591_v27 }
 0x233   :  { %v726_v44 = vadd.f32 %v6208_v55, %v682_v22  ;;  %1062 = vrot.lane.b32.xlu0 %v6369_v16, %s5571_s16  ;;  %913 = vrot.lane.b32.xlu1 %v6381_v20, %s5570_s8  ;;  %842 = vst.msk [vmem:[#allocation2 + $0x90] sm:$0xff] %vm823_vm1, %v6497_v9 }
 0x234   :  { %v593_v29 = vpop.permute.xlu1 %592 }
 0x235   :  { %v6507_v10 = vmax.f32 %v726_v44, 0.0  ;;  %v683_v61 = vmax.f32 %v6146_v33, %v593_v29 }
 0x237   :  { %v727_v15 = vadd.f32 %v6208_v55, %v683_v61  ;;  %1213 = vrot.lane.b32.xlu0 %v6369_v16, %s5569_s26  ;;  %1064 = vrot.lane.b32.xlu1 %v6381_v20, %s5571_s16  ;;  %843 = vst.msk [vmem:[#allocation2 + $0x98] sm:$0xff] %vm823_vm1, %v6507_v10 }
 0x238   :  { %v595_v31 = vpop.permute.xlu0 %594 }
 0x239   :  { %v6517_v8 = vmax.f32 %v727_v15, 0.0  ;;  %v684_v50 = vmax.f32 %v6151_v35, %v595_v31 }
 0x23b   :  { %v728_v26 = vadd.f32 %v6208_v55, %v684_v50  ;;  %1364 = vrot.lane.b32.xlu0 %v6369_v16, %s5572_s25  ;;  %1215 = vrot.lane.b32.xlu1 %v6381_v20, %s5569_s26  ;;  %844 = vst.msk [vmem:[#allocation2 + $0xa0] sm:$0xff] %vm823_vm1, %v6517_v8 }
 0x23c   :  { %v597_v33 = vpop.permute.xlu1 %596 }
 0x23d   :  { %v6527_v52 = vmax.f32 %v728_v26, 0.0  ;;  %v685_v13 = vmax.f32 %v6156_v37, %v597_v33 }
 0x23f   :  { %v729_v56 = vadd.f32 %v6208_v55, %v685_v13  ;;  %1366 = vrot.lane.b32.xlu0 %v6381_v20, %s5572_s25  ;;  %915 = vrot.lane.b32.xlu1 %v6399_v46, %s5570_s8  ;;  %845 = vst.msk [vmem:[#allocation2 + $0xa8] sm:$0xff] %vm823_vm1, %v6527_v52 }
 0x240   :  { %v599_v35 = vpop.permute.xlu0 %598 }
 0x241   :  { %v6537_v16 = vmax.f32 %v729_v56, 0.0  ;;  %v686_v60 = vmax.f32 %v6161_v39, %v599_v35 }
 0x243   :  { %v730_v63 = vadd.f32 %v6208_v55, %v686_v60  ;;  %1066 = vrot.lane.b32.xlu0 %v6399_v46, %s5571_s16  ;;  %917 = vrot.lane.b32.xlu1 %v6409_v3, %s5570_s8  ;;  %846 = vst.msk [vmem:[#allocation2 + $0xb0] sm:$0xff] %vm823_vm1, %v6537_v16 }
 0x244   :  { %v601_v37 = vpop.permute.xlu1 %600 }
 0x245   :  { %v6547_v20 = vmax.f32 %v730_v63, 0.0  ;;  %v687_v48 = vmax.f32 %v6166_v41, %v601_v37 }
 0x247   :  { %v731_v17 = vadd.f32 %v6208_v55, %v687_v48  ;;  %1217 = vrot.lane.b32.xlu0 %v6399_v46, %s5569_s26  ;;  %1068 = vrot.lane.b32.xlu1 %v6409_v3, %s5571_s16  ;;  %847 = vst.msk [vmem:[#allocation2 + $0xb8] sm:$0xff] %vm823_vm1, %v6547_v20 }
 0x248   :  { %v603_v39 = vpop.permute.xlu0 %602 }
 0x249   :  { %v6557_v32 = vmax.f32 %v731_v17, 0.0  ;;  %v688_v62 = vmax.f32 %v6171_v43, %v603_v39 }
 0x24b   :  { %v732_v28 = vadd.f32 %v6208_v55, %v688_v62  ;;  %1368 = vrot.lane.b32.xlu0 %v6399_v46, %s5572_s25  ;;  %1219 = vrot.lane.b32.xlu1 %v6409_v3, %s5569_s26  ;;  %848 = vst.msk [vmem:[#allocation2 + $0xc0] sm:$0xff] %vm823_vm1, %v6557_v32 }
 0x24c   :  { %v605_v41 = vpop.permute.xlu1 %604 }
 0x24d   :  { %v6567_v30 = vmax.f32 %v732_v28, 0.0  ;;  %v689_v19 = vmax.f32 %v6176_v45, %v605_v41 }
 0x24f   :  { %v733_v24 = vadd.f32 %v6208_v55, %v689_v19  ;;  %1370 = vrot.lane.b32.xlu0 %v6409_v3, %s5572_s25  ;;  %919 = vrot.lane.b32.xlu1 %v6419_v57, %s5570_s8  ;;  %849 = vst.msk [vmem:[#allocation2 + $0xc8] sm:$0xff] %vm823_vm1, %v6567_v30 }
 0x250   :  { %v607_v43 = vpop.permute.xlu0 %606 }
 0x251   :  { %v6577_v46 = vmax.f32 %v733_v24, 0.0  ;;  %v690_v38 = vmax.f32 %v6181_v47, %v607_v43 }
 0x253   :  { %v734_v21 = vadd.f32 %v6208_v55, %v690_v38  ;;  %1070 = vrot.lane.b32.xlu0 %v6419_v57, %s5571_s16  ;;  %921 = vrot.lane.b32.xlu1 %v6433_v6, %s5570_s8  ;;  %850 = vst.msk [vmem:[#allocation2 + $0xd0] sm:$0xff] %vm823_vm1, %v6577_v46 }
 0x254   :  { %v609_v45 = vpop.permute.xlu1 %608 }
 0x255   :  { %v6587_v3 = vmax.f32 %v734_v21, 0.0  ;;  %v691_v4 = vmax.f32 %v6192_v7, %v609_v45 }
 0x257   :  { %v735_v40 = vadd.f32 %v6208_v55, %v691_v4  ;;  %1221 = vrot.lane.b32.xlu0 %v6419_v57, %s5569_s26  ;;  %1072 = vrot.lane.b32.xlu1 %v6433_v6, %s5571_s16  ;;  %851 = vst.msk [vmem:[#allocation2 + $0xd8] sm:$0xff] %vm823_vm1, %v6587_v3 }
 0x258   :  { %v611_v47 = vpop.permute.xlu0 %610 }
 0x259   :  { %v6597_v23 = vmax.f32 %v735_v40, 0.0  ;;  %v692_v25 = vmax.f32 %v6203_v11, %v611_v47 }
 0x25b   :  { %v736_v51 = vadd.f32 %v6208_v55, %v692_v25  ;;  %1372 = vrot.lane.b32.xlu0 %v6419_v57, %s5572_s25  ;;  %1223 = vrot.lane.b32.xlu1 %v6433_v6, %s5569_s26  ;;  %852 = vst.msk [vmem:[#allocation2 + $0xe0] sm:$0xff] %vm823_vm1, %v6597_v23 }
 0x25d   :  { %v6607_v7 = vmax.f32 %v736_v51, 0.0  ;;  %v613_v59 = vpop.permute.xlu1 %612  ;;  %v1200_v36 = vpop.permute.xlu0 %1199 }
 0x25e   :  { %v693_v1 = vmax.f32 %v6222_v2, %v613_v59 }
 0x25f   :  { %1374 = vrot.lane.b32.xlu0 %v6433_v6, %s5572_s25  ;;  %923 = vrot.lane.b32.xlu1 %v6443_v58, %s5570_s8  ;;  %853 = vst.msk [vmem:[#allocation2 + $0xe8] sm:$0xff] %vm823_vm1, %v6607_v7 }
 0x260   :  { %v737_v11 = vadd.f32 %v6208_v55, %v693_v1 }
 0x261   :  { %v898_v57 = vpop.permute.xlu1 %897  ;;  %v615_v27 = vpop.permute.xlu0 %614 }
 0x262   :  { %v6617_v22 = vmax.f32 %v737_v11, 0.0  ;;  %1009 = vst.msk [vmem:[#allocation2 - $0x1] sm:$0xfe] %vm1008_vm2, %v898_v57  ;;  %v694_v44 = vmax.f32 %v6236_v18, %v615_v27  ;;  %vm3547_vm2 = vcmask 1041152  }
 0x263   :  { %1074 = vrot.lane.b32.xlu0 %v6443_v58, %s5571_s16  ;;  %925 = vrot.lane.b32.xlu1 %v6453_v53, %s5570_s8 }
 0x264   :  { %854 = vst.msk [vmem:[#allocation2 + $0xf0] sm:$0xff] %vm823_vm1, %v6617_v22  ;;  %v738_v2 = vadd.f32 %v6208_v55, %v694_v44 }
 0x265   :  { %v1049_v6 = vpop.permute.xlu1 %1048  ;;  %v900_v29 = vpop.permute.xlu0 %899 }
 0x266   :  { %v6627_v61 = vmax.f32 %v738_v2, 0.0  ;;  %1160 = vst.msk [vmem:[#allocation2 - $0x2] sm:$0xfc] %vm1159_vm3, %v1049_v6  ;;  %vm4070_vm3 = vcmask 9216  }
 0x267   :  { %1011 = vst.msk [vmem:[#allocation2 + $0x7] sm:$0xff] %vm1010_vm4, %v900_v29  ;;  %1225 = vrot.lane.b32.xlu0 %v6443_v58, %s5569_s26  ;;  %1076 = vrot.lane.b32.xlu1 %v6453_v53, %s5571_s16 }
 0x268   :  { %1311 = vst.msk [vmem:[#allocation2 - $0x3] sm:$0xf8] %vm1310_vm5, %v1200_v36 }
 0x269   :  { %855 = vst.msk [vmem:[#allocation2 + $0xf8] sm:$0xff] %vm823_vm1, %v6627_v61  ;;  %v1351_v18 = vpop.permute.xlu1 %1350  ;;  %v1051_v15 = vpop.permute.xlu0 %1050 }
 0x26a   :  { %1462 = vst.msk [vmem:[#allocation2 - $0x4] sm:$0xf0] %vm1461_vm6, %v1351_v18 }
 0x26b   :  { %1162 = vst.msk [vmem:[#allocation2 + $0x6] sm:$0xff] %vm1161_vm7, %v1051_v15  ;;  %1376 = vrot.lane.b32.xlu0 %v6443_v58, %s5572_s25  ;;  %1227 = vrot.lane.b32.xlu1 %v6453_v53, %s5569_s26 }
 0x26d   :  { %v1202_v31 = vpop.permute.xlu1 %1201  ;;  %v1353_v50 = vpop.permute.xlu0 %1352 }
 0x26e   :  { %1313 = vst.msk [vmem:[#allocation2 + $0x5] sm:$0xff] %vm1312_vm8, %v1202_v31 }
 0x26f   :  { %1464 = vst.msk [vmem:[#allocation2 + $0x4] sm:$0xff] %vm1463_vm9, %v1353_v50  ;;  %1378 = vrot.lane.b32.xlu0 %v6453_v53, %s5572_s25  ;;  %927 = vrot.lane.b32.xlu1 %v6463_v5, %s5570_s8 }
 0x271   :  { %v617_v26 = vpop.permute.xlu1 %616  ;;  %v902_v33 = vpop.permute.xlu0 %901 }
 0x272   :  { %v695_v58 = vmax.f32 %v6314_v12, %v617_v26  ;;  %1012 = vst.msk [vmem:[#allocation2 + $0xf] sm:$0xff] %vm1010_vm4, %v902_v33 }
 0x273   :  { %1078 = vrot.lane.b32.xlu0 %v6463_v5, %s5571_s16  ;;  %929 = vrot.lane.b32.xlu1 %v6477_v49, %s5570_s8 }
 0x274   :  { %v739_v13 = vadd.f32 %v6208_v55, %v695_v58 }
 0x275   :  { %v1053_v56 = vpop.permute.xlu1 %1052  ;;  %v1204_v35 = vpop.permute.xlu0 %1203 }
 0x276   :  { %v6654_v53 = vmax.f32 %v739_v13, 0.0  ;;  %1163 = vst.msk [vmem:[#allocation2 + $0xe] sm:$0xff] %vm1161_vm7, %v1053_v56  ;;  %v1501_v60 = vld [vmem:[#allocation2] sm:$0xff] }
 0x277   :  { %1314 = vst.msk [vmem:[#allocation2 + $0xd] sm:$0xff] %vm1312_vm8, %v1204_v35  ;;  %1229 = vrot.lane.b32.xlu0 %v6463_v5, %s5569_s26  ;;  %1080 = vrot.lane.b32.xlu1 %v6477_v49, %s5571_s16 }
 0x278   :  { %856 = vst.msk [vmem:[#allocation2 + $0x100] sm:$0xff] %vm823_vm1, %v6654_v53  ;;  %4821 = vmatprep.mubr.f32.mxu1 %v1501_v60 }
 0x279   :  { %v1355_v12 = vpop.permute.xlu1 %1354  ;;  %v619_v63 = vpop.permute.xlu0 %618 }
 0x27a   :  { %1465 = vst.msk [vmem:[#allocation2 + $0xc] sm:$0xff] %vm1463_vm9, %v1355_v12  ;;  %v696_v37 = vmax.f32 %v6356_v0, %v619_v63 }
 0x27b   :  { %1380 = vrot.lane.b32.xlu0 %v6463_v5, %s5572_s25  ;;  %1231 = vrot.lane.b32.xlu1 %v6477_v49, %s5569_s26 }
 0x27c   :  { %v740_v48 = vadd.f32 %v6208_v55, %v696_v37 }
 0x27d   :  { %v621_v17 = vpop.permute.xlu1 %620  ;;  %v904_v39 = vpop.permute.xlu0 %903 }
 0x27e   :  { %v6671_v62 = vmax.f32 %v740_v48, 0.0  ;;  %v697_v28 = vmax.f32 %v6379_v54, %v621_v17  ;;  %1013 = vst.msk [vmem:[#allocation2 + $0x17] sm:$0xff] %vm1010_vm4, %v904_v39 }
 0x27f   :  { %1382 = vrot.lane.b32.xlu0 %v6477_v49, %s5572_s25  ;;  %931 = vrot.lane.b32.xlu1 %v6487_v34, %s5570_s8 }
 0x280   :  { %857 = vst.msk [vmem:[#allocation2 + $0x108] sm:$0xff] %vm823_vm1, %v6671_v62  ;;  %v741_v0 = vadd.f32 %v6208_v55, %v697_v28 }
 0x281   :  { %v906_v5 = vpop.permute.xlu1 %905  ;;  %v1055_v41 = vpop.permute.xlu0 %1054  ;;  %v1553_v19 = vld [vmem:[#allocation2 + $0xc] sm:$0xff] }
 0x282   :  { %v1502_v24 = vld [vmem:[#allocation2 + $0x8] sm:$0xff]  ;;  %v6682_v43 = vmax.f32 %v741_v0, 0.0  ;;  %1014 = vst.msk [vmem:[#allocation2 + $0x1f] sm:$0xff] %vm1010_vm4, %v906_v5  ;;  %4735 = vmatprep.mubr.f32.mxu0 %v1553_v19 }
 0x283   :  { %1164 = vst.msk [vmem:[#allocation2 + $0x16] sm:$0xff] %vm1161_vm7, %v1055_v41  ;;  %4822 = vmatmul.mubr.f32.vlgmr.msra.gmra.mrb[0].mxu1 %v1502_v24  ;;  %1082 = vrot.lane.b32.xlu0 %v6487_v34, %s5571_s16 }
 0x284   :  { %933 = vrot.lane.b32.xlu1 %v6497_v9, %s5570_s8  ;;  %858 = vst.msk [vmem:[#allocation2 + $0x110] sm:$0xff] %vm823_vm1, %v6682_v43 }
 0x285   :  { %v1057_v54 = vpop.permute.xlu1 %1056  ;;  %v1206_v49 = vpop.permute.xlu0 %1205 }
 0x286   :  { %1165 = vst.msk [vmem:[#allocation2 + $0x1e] sm:$0xff] %vm1161_vm7, %v1057_v54 }
 0x287   :  { %1315 = vst.msk [vmem:[#allocation2 + $0x15] sm:$0xff] %vm1312_vm8, %v1206_v49  ;;  %1233 = vrot.lane.b32.xlu0 %v6487_v34, %s5569_s26 }
 0x288   :  { %1084 = vrot.lane.b32.xlu1 %v6497_v9, %s5571_s16 }
 0x289   :  { %v1208_v38 = vpop.permute.xlu1 %1207  ;;  %v1357_v21 = vpop.permute.xlu0 %1356 }
 0x28a   :  { %1316 = vst.msk [vmem:[#allocation2 + $0x1d] sm:$0xff] %vm1312_vm8, %v1208_v38 }
 0x28b   :  { %1466 = vst.msk [vmem:[#allocation2 + $0x14] sm:$0xff] %vm1463_vm9, %v1357_v21  ;;  %1384 = vrot.lane.b32.xlu0 %v6487_v34, %s5572_s25 }
 0x28c   :  { %1235 = vrot.lane.b32.xlu1 %v6497_v9, %s5569_s26 }
 0x28d   :  { %v623_v45 = vpop.permute.xlu1 %622  ;;  %v1359_v4 = vpop.permute.xlu0 %1358 }
 0x28e   :  { %v698_v40 = vmax.f32 %v6431_v14, %v623_v45  ;;  %1467 = vst.msk [vmem:[#allocation2 + $0x1c] sm:$0xff] %vm1463_vm9, %v1359_v4 }
 0x28f   :  { %1386 = vrot.lane.b32.xlu0 %v6497_v9, %s5572_s25 }
 0x290   :  { %935 = vrot.lane.b32.xlu1 %v6507_v10, %s5570_s8  ;;  %v742_v47 = vadd.f32 %v6208_v55, %v698_v40  ;;  %v4104_v40 = vld [vmem:[%s7851_s3 + $0x108] sm:$0xff] }
 0x291   :  { %v908_v25 = vpop.permute.xlu1 %907  ;;  %v1059_v51 = vpop.permute.xlu0 %1058 }
 0x292   :  { %v1554_v34 = vld [vmem:[#allocation2 + $0x14] sm:$0xff]  ;;  %v6711_v36 = vmax.f32 %v742_v47, 0.0  ;;  %1015 = vst.msk [vmem:[#allocation2 + $0x27] sm:$0xff] %vm1010_vm4, %v908_v25 }
 0x293   :  { %v1503_v59 = vld [vmem:[#allocation2 + $0x10] sm:$0xff]  ;;  %4736 = vmatmul.mubr.f32.vlgmr.msra.gmra.mrb[74].mxu0 %v1554_v34  ;;  %1166 = vst.msk [vmem:[#allocation2 + $0x26] sm:$0xff] %vm1161_vm7, %v1059_v51  ;;  %1086 = vrot.lane.b32.xlu0 %v6507_v10, %s5571_s16 }
 0x294   :  { %4824 = vmatprep.mubr.f32.mxu1 %v1503_v59  ;;  %937 = vrot.lane.b32.xlu1 %v6517_v8, %s5570_s8  ;;  %859 = vst.msk [vmem:[#allocation2 + $0x118] sm:$0xff] %vm823_vm1, %v6711_v36  ;;  %vm3533_vm1 = vcmask 778752  }
 0x295   :  { %v910_v55 = vpop.permute.xlu1 %909  ;;  %v1210_v14 = vpop.permute.xlu0 %1209  ;;  %v1555_v9 = vld [vmem:[#allocation2 + $0x1c] sm:$0xff] }
 0x296   :  { %v1504_v1 = vld [vmem:[#allocation2 + $0x18] sm:$0xff]  ;;  %1016 = vst.msk [vmem:[#allocation2 + $0x2f] sm:$0xff] %vm1010_vm4, %v910_v55  ;;  %4738 = vmatprep.mubr.f32.mxu0 %v1555_v9 }
 0x297   :  { %1317 = vst.msk [vmem:[#allocation2 + $0x25] sm:$0xff] %vm1312_vm8, %v1210_v14  ;;  %4825 = vmatmul.mubr.f32.gmra.mrb[2].mxu1 %v1504_v1  ;;  %1237 = vrot.lane.b32.xlu0 %v6507_v10, %s5569_s26 }
 0x298   :  { %1088 = vrot.lane.b32.xlu1 %v6517_v8, %s5571_s16 }
 0x299   :  { %v1061_v11 = vpop.permute.xlu1 %1060  ;;  %v1361_v57 = vpop.permute.xlu0 %1360 }
 0x29a   :  { %1167 = vst.msk [vmem:[#allocation2 + $0x2e] sm:$0xff] %vm1161_vm7, %v1061_v11 }
 0x29b   :  { %1468 = vst.msk [vmem:[#allocation2 + $0x24] sm:$0xff] %vm1463_vm9, %v1361_v57  ;;  %1388 = vrot.lane.b32.xlu0 %v6507_v10, %s5572_s25  ;;  %v4105_v57 = vld [vmem:[%s7851_s3 + $0x110] sm:$0xff] }
 0x29c   :  { %1239 = vrot.lane.b32.xlu1 %v6517_v8, %s5569_s26 }
 0x29d   :  { %v1212_v27 = vpop.permute.xlu1 %1211  ;;  %v6733_v44 = vpop.permute.xlu0 %624 }
 0x29e   :  { %1318 = vst.msk [vmem:[#allocation2 + $0x2d] sm:$0xff] %vm1312_vm8, %v1212_v27  ;;  %v4106_v27 = vld [vmem:[%s7851_s3 + $0x118] sm:$0xff] }
 0x29f   :  { %1390 = vrot.lane.b32.xlu0 %v6517_v8, %s5572_s25 }
 0x2a0   :  { %939 = vrot.lane.b32.xlu1 %v6527_v52, %s5570_s8 }
 0x2a1   :  { %v912_v2 = vpop.permute.xlu1 %911  ;;  %v1363_v6 = vpop.permute.xlu0 %1362 }
 0x2a2   :  { %v1556_v29 = vld [vmem:[#allocation2 + $0x24] sm:$0xff]  ;;  %1017 = vst.msk [vmem:[#allocation2 + $0x37] sm:$0xff] %vm1010_vm4, %v912_v2 }
 0x2a3   :  { %v6740_v18 = vld [vmem:[#allocation2 + $0x20] sm:$0xff]  ;;  %1469 = vst.msk [vmem:[#allocation2 + $0x2c] sm:$0xff] %vm1463_vm9, %v1363_v6  ;;  %4739 = vmatmul.mubr.f32.gmra.mrb[76].mxu0 %v1556_v29  ;;  %1090 = vrot.lane.b32.xlu0 %v6527_v52, %s5571_s16 }
 0x2a4   :  { %4827 = vmatprep.mubr.f32.mxu1 %v6740_v18  ;;  %941 = vrot.lane.b32.xlu1 %v6537_v16, %s5570_s8 }
 0x2a5   :  { %v914_v10 = vpop.permute.xlu1 %913  ;;  %v1063_v8 = vpop.permute.xlu0 %1062 }
 0x2a6   :  { %1018 = vst.msk [vmem:[#allocation2 + $0x3f] sm:$0xff] %vm1010_vm4, %v914_v10 }
 0x2a7   :  { %1168 = vst.msk [vmem:[#allocation2 + $0x36] sm:$0xff] %vm1161_vm7, %v1063_v8  ;;  %1241 = vrot.lane.b32.xlu0 %v6527_v52, %s5569_s26 }
 0x2a8   :  { %1092 = vrot.lane.b32.xlu1 %v6537_v16, %s5571_s16 }
 0x2a9   :  { %v1065_v15 = vpop.permute.xlu1 %1064  ;;  %v1214_v31 = vpop.permute.xlu0 %1213 }
 0x2aa   :  { %v1557_v50 = vld [vmem:[#allocation2 + $0x2c] sm:$0xff]  ;;  %1169 = vst.msk [vmem:[#allocation2 + $0x3e] sm:$0xff] %vm1161_vm7, %v1065_v15  ;;  %v4107_v15 = vld [vmem:[%s7851_s3 + $0x120] sm:$0xff] }
 0x2ab   :  { %v6755_v26 = vld [vmem:[#allocation2 + $0x28] sm:$0xff]  ;;  %1319 = vst.msk [vmem:[#allocation2 + $0x35] sm:$0xff] %vm1312_vm8, %v1214_v31  ;;  %4741 = vmatprep.mubr.f32.mxu0 %v1557_v50  ;;  %1392 = vrot.lane.b32.xlu0 %v6527_v52, %s5572_s25 }
 0x2ac   :  { %4828 = vmatmul.mubr.f32.gmra.mrb[4].mxu1 %v6755_v26  ;;  %1243 = vrot.lane.b32.xlu1 %v6537_v16, %s5569_s26  ;;  %v4108_v31 = vld [vmem:[%s7851_s3 + $0x128] sm:$0xff] }
 0x2ad   :  { %v1216_v33 = vpop.permute.xlu1 %1215  ;;  %v1365_v58 = vpop.permute.xlu0 %1364  ;;  %v5229_v50 = vpack.c.bf16 %v4108_v31, %v4107_v15  ;;  %v4118_v15 = vld [vmem:[%s7851_s3 + $0x178] sm:$0xff] }
 0x2ae   :  { %1320 = vst.msk [vmem:[#allocation2 + $0x3d] sm:$0xff] %vm1312_vm8, %v1216_v33 }
 0x2af   :  { %1470 = vst.msk [vmem:[#allocation2 + $0x34] sm:$0xff] %vm1463_vm9, %v1365_v58  ;;  %1394 = vrot.lane.b32.xlu0 %v6537_v16, %s5572_s25 }
 0x2b0   :  { %943 = vrot.lane.b32.xlu1 %v6547_v20, %s5570_s8 }
 0x2b1   :  { %v916_v13 = vpop.permute.xlu1 %915  ;;  %v1367_v56 = vpop.permute.xlu0 %1366 }
 0x2b2   :  { %1019 = vst.msk [vmem:[#allocation2 + $0x47] sm:$0xff] %vm1010_vm4, %v916_v13 }
 0x2b3   :  { %1471 = vst.msk [vmem:[#allocation2 + $0x3c] sm:$0xff] %vm1463_vm9, %v1367_v56  ;;  %1094 = vrot.lane.b32.xlu0 %v6547_v20, %s5571_s16 }
 0x2b4   :  { %945 = vrot.lane.b32.xlu1 %v6557_v32, %s5570_s8 }
 0x2b5   :  { %v918_v52 = vpop.permute.xlu1 %917  ;;  %v1067_v35 = vpop.permute.xlu0 %1066 }
 0x2b6   :  { %v1558_v60 = vld [vmem:[#allocation2 + $0x34] sm:$0xff]  ;;  %1020 = vst.msk [vmem:[#allocation2 + $0x4f] sm:$0xff] %vm1010_vm4, %v918_v52 }
 0x2b7   :  { %v6776_v12 = vld [vmem:[#allocation2 + $0x30] sm:$0xff]  ;;  %1170 = vst.msk [vmem:[#allocation2 + $0x46] sm:$0xff] %vm1161_vm7, %v1067_v35  ;;  %4742 = vmatmul.mubr.f32.gmra.mrb[78].mxu0 %v1558_v60  ;;  %1245 = vrot.lane.b32.xlu0 %v6547_v20, %s5569_s26 }
 0x2b8   :  { %4830 = vmatprep.mubr.f32.mxu1 %v6776_v12  ;;  %1096 = vrot.lane.b32.xlu1 %v6557_v32, %s5571_s16  ;;  %v4109_v60 = vld [vmem:[%s7851_s3 + $0x130] sm:$0xff] }
 0x2b9   :  { %v1069_v16 = vpop.permute.xlu1 %1068  ;;  %v1218_v63 = vpop.permute.xlu0 %1217 }
 0x2ba   :  { %v1559_v37 = vld [vmem:[#allocation2 + $0x3c] sm:$0xff]  ;;  %1171 = vst.msk [vmem:[#allocation2 + $0x4e] sm:$0xff] %vm1161_vm7, %v1069_v16 }
 0x2bb   :  { %v6785_v48 = vld [vmem:[#allocation2 + $0x38] sm:$0xff]  ;;  %1321 = vst.msk [vmem:[#allocation2 + $0x45] sm:$0xff] %vm1312_vm8, %v1218_v63  ;;  %4744 = vmatprep.mubr.f32.mxu0 %v1559_v37  ;;  %1396 = vrot.lane.b32.xlu0 %v6547_v20, %s5572_s25 }
 0x2bc   :  { %4831 = vmatmul.mubr.f32.gmra.mrb[6].mxu1 %v6785_v48  ;;  %1247 = vrot.lane.b32.xlu1 %v6557_v32, %s5569_s26  ;;  %v4110_v16 = vld [vmem:[%s7851_s3 + $0x138] sm:$0xff] }
 0x2bd   :  { %v1220_v17 = vpop.permute.xlu1 %1219  ;;  %v1369_v39 = vpop.permute.xlu0 %1368 }
 0x2be   :  { %1322 = vst.msk [vmem:[#allocation2 + $0x4d] sm:$0xff] %vm1312_vm8, %v1220_v17 }
 0x2bf   :  { %1472 = vst.msk [vmem:[#allocation2 + $0x44] sm:$0xff] %vm1463_vm9, %v1369_v39  ;;  %1398 = vrot.lane.b32.xlu0 %v6557_v32, %s5572_s25 }
 0x2c0   :  { %947 = vrot.lane.b32.xlu1 %v6567_v30, %s5570_s8 }
 0x2c1   :  { %v920_v28 = vpop.permute.xlu1 %919  ;;  %v1371_v0 = vpop.permute.xlu0 %1370 }
 0x2c2   :  { %1021 = vst.msk [vmem:[#allocation2 + $0x57] sm:$0xff] %vm1010_vm4, %v920_v28 }
 0x2c3   :  { %1473 = vst.msk [vmem:[#allocation2 + $0x4c] sm:$0xff] %vm1463_vm9, %v1371_v0  ;;  %1098 = vrot.lane.b32.xlu0 %v6567_v30, %s5571_s16  ;;  %v4111_v0 = vld [vmem:[%s7851_s3 + $0x140] sm:$0xff] }
 0x2c4   :  { %949 = vrot.lane.b32.xlu1 %v6577_v46, %s5570_s8 }
 0x2c5   :  { %v922_v20 = vpop.permute.xlu1 %921  ;;  %v1071_v5 = vpop.permute.xlu0 %1070 }
 0x2c6   :  { %v1560_v41 = vld [vmem:[#allocation2 + $0x44] sm:$0xff]  ;;  %1022 = vst.msk [vmem:[#allocation2 + $0x5f] sm:$0xff] %vm1010_vm4, %v922_v20 }
 0x2c7   :  { %v6806_v19 = vld [vmem:[#allocation2 + $0x40] sm:$0xff]  ;;  %1172 = vst.msk [vmem:[#allocation2 + $0x56] sm:$0xff] %vm1161_vm7, %v1071_v5  ;;  %4745 = vmatmul.mubr.f32.gmra.mrb[80].mxu0 %v1560_v41  ;;  %1249 = vrot.lane.b32.xlu0 %v6567_v30, %s5569_s26  ;;  %v4112_v20 = vld [vmem:[%s7851_s3 + $0x148] sm:$0xff] }
 0x2c8   :  { %4833 = vmatprep.mubr.f32.mxu1 %v6806_v19  ;;  %1100 = vrot.lane.b32.xlu1 %v6577_v46, %s5571_s16  ;;  %v5237_v5 = vpack.c.bf16 %v4112_v20, %v4111_v0 }
 0x2c9   :  { %v1073_v32 = vpop.permute.xlu1 %1072  ;;  %v1222_v24 = vpop.permute.xlu0 %1221 }
 0x2ca   :  { %v1561_v54 = vld [vmem:[#allocation2 + $0x4c] sm:$0xff]  ;;  %1173 = vst.msk [vmem:[#allocation2 + $0x5e] sm:$0xff] %vm1161_vm7, %v1073_v32 }
 0x2cb   :  { %v6815_v49 = vld [vmem:[#allocation2 + $0x48] sm:$0xff]  ;;  %1323 = vst.msk [vmem:[#allocation2 + $0x55] sm:$0xff] %vm1312_vm8, %v1222_v24  ;;  %4747 = vmatprep.mubr.f32.mxu0 %v1561_v54  ;;  %1400 = vrot.lane.b32.xlu0 %v6567_v30, %s5572_s25  ;;  %v4103_v30 = vld [vmem:[%s7851_s3 + $0x100] sm:$0xff] }
 0x2cc   :  { %4834 = vmatmul.mubr.f32.gmra.mrb[8].mxu1 %v6815_v49  ;;  %1251 = vrot.lane.b32.xlu1 %v6577_v46, %s5569_s26 }
 0x2cd   :  { %v1224_v38 = vpop.permute.xlu1 %1223  ;;  %v1373_v21 = vpop.permute.xlu0 %1372 }
 0x2ce   :  { %1324 = vst.msk [vmem:[#allocation2 + $0x5d] sm:$0xff] %vm1312_vm8, %v1224_v38 }
 0x2cf   :  { %1474 = vst.msk [vmem:[#allocation2 + $0x54] sm:$0xff] %vm1463_vm9, %v1373_v21  ;;  %1402 = vrot.lane.b32.xlu0 %v6577_v46, %s5572_s25  ;;  %v5221_v46 = vpack.c.bf16 %v4104_v40, %v4103_v30  ;;  %v4114_v30 = vld [vmem:[%s7851_s3 + $0x158] sm:$0xff] }
 0x2d0   :  { %951 = vrot.lane.b32.xlu1 %v6587_v3, %s5570_s8 }
 0x2d1   :  { %v924_v45 = vpop.permute.xlu1 %923  ;;  %v1375_v4 = vpop.permute.xlu0 %1374  ;;  %5222 = vmatprep.subr.bf16.mxu1 %v5221_v46 }
 0x2d2   :  { %1023 = vst.msk [vmem:[#allocation2 + $0x67] sm:$0xff] %vm1010_vm4, %v924_v45  ;;  %5224 = vmatpush3.bf16.msra.mxu1 %v5221_v46 }
 0x2d3   :  { %1475 = vst.msk [vmem:[#allocation2 + $0x5c] sm:$0xff] %vm1463_vm9, %v1375_v4  ;;  %1102 = vrot.lane.b32.xlu0 %v6587_v3, %s5571_s16 }
 0x2d4   :  { %953 = vrot.lane.b32.xlu1 %v6597_v23, %s5570_s8 }
 0x2d5   :  { %v926_v47 = vpop.permute.xlu1 %925  ;;  %v1075_v25 = vpop.permute.xlu0 %1074 }
 0x2d6   :  { %v1562_v51 = vld [vmem:[#allocation2 + $0x54] sm:$0xff]  ;;  %1024 = vst.msk [vmem:[#allocation2 + $0x6f] sm:$0xff] %vm1010_vm4, %v926_v47 }
 0x2d7   :  { %v6842_v34 = vld [vmem:[#allocation2 + $0x50] sm:$0xff]  ;;  %1174 = vst.msk [vmem:[#allocation2 + $0x66] sm:$0xff] %vm1161_vm7, %v1075_v25  ;;  %4748 = vmatmul.mubr.f32.gmra.mrb[82].mxu0 %v1562_v51  ;;  %1253 = vrot.lane.b32.xlu0 %v6587_v3, %s5569_s26  ;;  %v699_v51 = vmax.f32 %v6475_v42, %v6733_v44  ;;  %v4115_v42 = vld [vmem:[%s7851_s3 + $0x160] sm:$0xff]  ;;  %v4116_v44 = vld [vmem:[%s7851_s3 + $0x168] sm:$0xff] }
 0x2d8   :  { %4836 = vmatprep.mubr.f32.mxu1 %v6842_v34  ;;  %1104 = vrot.lane.b32.xlu1 %v6597_v23, %s5571_s16 }
 0x2d9   :  { %v1077_v59 = vpop.permute.xlu1 %1076  ;;  %v1226_v55 = vpop.permute.xlu0 %1225 }
 0x2da   :  { %v1563_v14 = vld [vmem:[#allocation2 + $0x5c] sm:$0xff]  ;;  %1175 = vst.msk [vmem:[#allocation2 + $0x6e] sm:$0xff] %vm1161_vm7, %v1077_v59 }
 0x2db   :  { %v6851_v9 = vld [vmem:[#allocation2 + $0x58] sm:$0xff]  ;;  %1325 = vst.msk [vmem:[#allocation2 + $0x65] sm:$0xff] %vm1312_vm8, %v1226_v55  ;;  %4750 = vmatprep.mubr.f32.mxu0 %v1563_v14  ;;  %1404 = vrot.lane.b32.xlu0 %v6587_v3, %s5572_s25  ;;  %v5225_v3 = vpack.c.bf16 %v4106_v27, %v4105_v57  ;;  %v5537_v57 = vld [vmem:[%s7850_s2] ss:$0 sm:$0xff] }
 0x2dc   :  { %4837 = vmatmul.mubr.f32.gmra.mrb[10].mxu1 %v6851_v9  ;;  %1255 = vrot.lane.b32.xlu1 %v6597_v23, %s5569_s26  ;;  %v743_v27 = vadd.f32 %v5537_v57, %v699_v51 }
 0x2dd   :  { %v1228_v1 = vpop.permute.xlu1 %1227  ;;  %v1377_v11 = vpop.permute.xlu0 %1376  ;;  %5226 = vmatprep.subr.bf16.mxu1 %v5225_v3 }
 0x2de   :  { %1326 = vst.msk [vmem:[#allocation2 + $0x6d] sm:$0xff] %vm1312_vm8, %v1228_v1  ;;  %5228 = vmatpush3.bf16.msra.mxu1 %v5225_v3 }
 0x2df   :  { %1476 = vst.msk [vmem:[#allocation2 + $0x64] sm:$0xff] %vm1463_vm9, %v1377_v11  ;;  %1406 = vrot.lane.b32.xlu0 %v6597_v23, %s5572_s25  ;;  %5230 = vmatprep.subr.bf16.mxu1 %v5229_v50  ;;  %v5245_v11 = vpack.c.bf16 %v4116_v44, %v4115_v42 }
 0x2e0   :  { %955 = vrot.lane.b32.xlu1 %v6607_v7, %s5570_s8 }
 0x2e1   :  { %v928_v2 = vpop.permute.xlu1 %927  ;;  %v1379_v6 = vpop.permute.xlu0 %1378 }
 0x2e2   :  { %1025 = vst.msk [vmem:[#allocation2 + $0x77] sm:$0xff] %vm1010_vm4, %v928_v2  ;;  %5232 = vmatpush3.bf16.msra.mxu1 %v5229_v50 }
 0x2e3   :  { %1477 = vst.msk [vmem:[#allocation2 + $0x6c] sm:$0xff] %vm1463_vm9, %v1379_v6  ;;  %1106 = vrot.lane.b32.xlu0 %v6607_v7, %s5571_s16 }
 0x2e4   :  { %957 = vrot.lane.b32.xlu1 %v6617_v22, %s5570_s8 }
 0x2e5   :  { %v930_v29 = vpop.permute.xlu1 %929  ;;  %v1079_v10 = vpop.permute.xlu0 %1078 }
 0x2e6   :  { %v6878_v8 = vld [vmem:[#allocation2 + $0x64] sm:$0xff]  ;;  %1026 = vst.msk [vmem:[#allocation2 + $0x7f] sm:$0xff] %vm1010_vm4, %v930_v29 }
 0x2e7   :  { %v6880_v23 = vld [vmem:[#allocation2 + $0x60] sm:$0xff]  ;;  %1176 = vst.msk [vmem:[#allocation2 + $0x76] sm:$0xff] %vm1161_vm7, %v1079_v10  ;;  %4751 = vmatmul.mubr.f32.gmra.mrb[84].mxu0 %v6878_v8  ;;  %1257 = vrot.lane.b32.xlu0 %v6607_v7, %s5569_s26  ;;  %v4117_v10 = vld [vmem:[%s7851_s3 + $0x170] sm:$0xff] }
 0x2e8   :  { %4839 = vmatprep.mubr.f32.mxu1 %v6880_v23  ;;  %1108 = vrot.lane.b32.xlu1 %v6617_v22, %s5571_s16 }
 0x2e9   :  { %v1081_v33 = vpop.permute.xlu1 %1080  ;;  %v1230_v58 = vpop.permute.xlu0 %1229 }
 0x2ea   :  { %v6896_v13 = vld [vmem:[#allocation2 + $0x6c] sm:$0xff]  ;;  %1177 = vst.msk [vmem:[#allocation2 + $0x7e] sm:$0xff] %vm1161_vm7, %v1081_v33 }
 0x2eb   :  { %v6898_v56 = vld [vmem:[#allocation2 + $0x68] sm:$0xff]  ;;  %1327 = vst.msk [vmem:[#allocation2 + $0x75] sm:$0xff] %vm1312_vm8, %v1230_v58  ;;  %4753 = vmatprep.mubr.f32.mxu0 %v6896_v13  ;;  %1408 = vrot.lane.b32.xlu0 %v6607_v7, %s5572_s25  ;;  %v5233_v7 = vpack.c.bf16 %v4110_v16, %v4109_v60 }
 0x2ec   :  { %4840 = vmatmul.mubr.f32.gmra.mrb[12].mxu1 %v6898_v56  ;;  %1259 = vrot.lane.b32.xlu1 %v6617_v22, %s5569_s26 }
 0x2ed   :  { %v1232_v52 = vpop.permute.xlu1 %1231  ;;  %v1381_v35 = vpop.permute.xlu0 %1380  ;;  %5234 = vmatprep.subr.bf16.mxu1 %v5233_v7 }
 0x2ee   :  { %1328 = vst.msk [vmem:[#allocation2 + $0x7d] sm:$0xff] %vm1312_vm8, %v1232_v52  ;;  %5236 = vmatpush3.bf16.msra.mxu1 %v5233_v7  ;;  %v4119_v7 = vld [vmem:[%s7851_s3 + $0x180] sm:$0xff] }
 0x2ef   :  { %1478 = vst.msk [vmem:[#allocation2 + $0x74] sm:$0xff] %vm1463_vm9, %v1381_v35  ;;  %1410 = vrot.lane.b32.xlu0 %v6617_v22, %s5572_s25  ;;  %5238 = vmatprep.subr.bf16.mxu1 %v5237_v5 }
 0x2f0   :  { %959 = vrot.lane.b32.xlu1 %v6627_v61, %s5570_s8 }
 0x2f1   :  { %v932_v63 = vpop.permute.xlu1 %931  ;;  %v1383_v37 = vpop.permute.xlu0 %1382 }
 0x2f2   :  { %1027 = vst.msk [vmem:[#allocation2 + $0x87] sm:$0xff] %vm1010_vm4, %v932_v63  ;;  %5240 = vmatpush3.bf16.msra.mxu1 %v5237_v5  ;;  %v4120_v63 = vld [vmem:[%s7851_s3 + $0x188] sm:$0xff] }
 0x2f3   :  { %1479 = vst.msk [vmem:[#allocation2 + $0x7c] sm:$0xff] %vm1463_vm9, %v1383_v37  ;;  %1110 = vrot.lane.b32.xlu0 %v6627_v61, %s5571_s16  ;;  %v7054_v37 = vpack.c.bf16 %v4120_v63, %v4119_v7 }
 0x2f4   :  { %961 = vrot.lane.b32.xlu1 %v6654_v53, %s5570_s8 }
 0x2f5   :  { %v1083_v39 = vpop.permute.xlu0 %1082 }
 0x2f6   :  { %v934_v17 = vpop.permute.xlu1 %933  ;;  %v6926_v28 = vld [vmem:[#allocation2 + $0x74] sm:$0xff]  ;;  %1178 = vst.msk [vmem:[#allocation2 + $0x86] sm:$0xff] %vm1161_vm7, %v1083_v39 }
 0x2f7   :  { %v6928_v22 = vld [vmem:[#allocation2 + $0x70] sm:$0xff]  ;;  %1028 = vst.msk [vmem:[#allocation2 + $0x8f] sm:$0xff] %vm1010_vm4, %v934_v17  ;;  %4754 = vmatmul.mubr.f32.gmra.mrb[86].mxu0 %v6926_v28  ;;  %1261 = vrot.lane.b32.xlu0 %v6627_v61, %s5569_s26 }
 0x2f8   :  { %4842 = vmatprep.mubr.f32.mxu1 %v6928_v22  ;;  %1112 = vrot.lane.b32.xlu1 %v6654_v53, %s5571_s16 }
 0x2f9   :  { %v1234_v32 = vpop.permute.xlu0 %1233 }
 0x2fa   :  { %v1085_v41 = vpop.permute.xlu1 %1084  ;;  %v6944_v24 = vld [vmem:[#allocation2 + $0x7c] sm:$0xff]  ;;  %1329 = vst.msk [vmem:[#allocation2 + $0x85] sm:$0xff] %vm1312_vm8, %v1234_v32 }
 0x2fb   :  { %v6946_v54 = vld [vmem:[#allocation2 + $0x78] sm:$0xff]  ;;  %1179 = vst.msk [vmem:[#allocation2 + $0x8e] sm:$0xff] %vm1161_vm7, %v1085_v41  ;;  %4756 = vmatprep.mubr.f32.mxu0 %v6944_v24  ;;  %1412 = vrot.lane.b32.xlu0 %v6627_v61, %s5572_s25  ;;  %v4113_v61 = vld [vmem:[%s7851_s3 + $0x150] sm:$0xff] }
 0x2fc   :  { %4843 = vmatmul.mubr.f32.gmra.mrb[14].mxu1 %v6946_v54  ;;  %1263 = vrot.lane.b32.xlu1 %v6654_v53, %s5569_s26 }
 0x2fd   :  { %v1385_v21 = vpop.permute.xlu0 %1384 }
 0x2fe   :  { %v1236_v38 = vpop.permute.xlu1 %1235  ;;  %1480 = vst.msk [vmem:[#allocation2 + $0x84] sm:$0xff] %vm1463_vm9, %v1385_v21 }
 0x2ff   :  { %1330 = vst.msk [vmem:[#allocation2 + $0x8d] sm:$0xff] %vm1312_vm8, %v1236_v38  ;;  %1414 = vrot.lane.b32.xlu0 %v6654_v53, %s5572_s25  ;;  %v5241_v53 = vpack.c.bf16 %v4114_v30, %v4113_v61 }
 0x300   :  { %963 = vrot.lane.b32.xlu1 %v6671_v62, %s5570_s8 }
 0x301   :  { %v1387_v4 = vpop.permute.xlu0 %1386  ;;  %5242 = vmatprep.subr.bf16.mxu1 %v5241_v53 }
 0x302   :  { %v936_v45 = vpop.permute.xlu1 %935  ;;  %1481 = vst.msk [vmem:[#allocation2 + $0x8c] sm:$0xff] %vm1463_vm9, %v1387_v4  ;;  %5244 = vmatpush3.bf16.msra.mxu1 %v5241_v53 }
 0x303   :  { %1029 = vst.msk [vmem:[#allocation2 + $0x97] sm:$0xff] %vm1010_vm4, %v936_v45  ;;  %1114 = vrot.lane.b32.xlu0 %v6671_v62, %s5571_s16  ;;  %5246 = vmatprep.subr.bf16.mxu1 %v5245_v11 }
 0x304   :  { %965 = vrot.lane.b32.xlu1 %v6682_v43, %s5570_s8 }
 0x305   :  { %v1087_v46 = vpop.permute.xlu0 %1086  ;;  %v6974_v47 = vld [vmem:[#allocation2 + $0x84] sm:$0xff] }
 0x306   :  { %v938_v40 = vpop.permute.xlu1 %937  ;;  %v6976_v25 = vld [vmem:[#allocation2 + $0x80] sm:$0xff]  ;;  %1180 = vst.msk [vmem:[#allocation2 + $0x96] sm:$0xff] %vm1161_vm7, %v1087_v46  ;;  %4757 = vmatmul.mubr.f32.gmra.mrb[88].mxu0 %v6974_v47  ;;  %5248 = vmatpush3.bf16.msra.mxu1 %v5245_v11 }
 0x307   :  { %1030 = vst.msk [vmem:[#allocation2 + $0x9f] sm:$0xff] %vm1010_vm4, %v938_v40  ;;  %4845 = vmatprep.mubr.f32.mxu1 %v6976_v25  ;;  %1265 = vrot.lane.b32.xlu0 %v6671_v62, %s5569_s26 }
 0x308   :  { %1116 = vrot.lane.b32.xlu1 %v6682_v43, %s5571_s16 }
 0x309   :  { %v1238_v55 = vpop.permute.xlu0 %1237  ;;  %v6988_v14 = vld [vmem:[#allocation2 + $0x8c] sm:$0xff] }
 0x30a   :  { %v1089_v59 = vpop.permute.xlu1 %1088  ;;  %v6990_v1 = vld [vmem:[#allocation2 + $0x88] sm:$0xff]  ;;  %1331 = vst.msk [vmem:[#allocation2 + $0x95] sm:$0xff] %vm1312_vm8, %v1238_v55  ;;  %4759 = vmatprep.mubr.f32.mxu0 %v6988_v14 }
 0x30b   :  { %1181 = vst.msk [vmem:[#allocation2 + $0x9e] sm:$0xff] %vm1161_vm7, %v1089_v59  ;;  %4846 = vmatmul.mubr.f32.gmra.mrb[16].mxu1 %v6990_v1  ;;  %1416 = vrot.lane.b32.xlu0 %v6671_v62, %s5572_s25  ;;  %v780_v62 = vmax.f32 %v743_v27, 0.0 }
 0x30c   :  { %1267 = vrot.lane.b32.xlu1 %v6682_v43, %s5569_s26 }
 0x30d   :  { %v1389_v2 = vpop.permute.xlu0 %1388 }
 0x30e   :  { %v1240_v3 = vpop.permute.xlu1 %1239  ;;  %1482 = vst.msk [vmem:[#allocation2 + $0x94] sm:$0xff] %vm1463_vm9, %v1389_v2 }
 0x30f   :  { %1332 = vst.msk [vmem:[#allocation2 + $0x9d] sm:$0xff] %vm1312_vm8, %v1240_v3  ;;  %1418 = vrot.lane.b32.xlu0 %v6682_v43, %s5572_s25  ;;  %v5249_v43 = vpack.c.bf16 %v4118_v15, %v4117_v10 }
 0x310   :  { %967 = vrot.lane.b32.xlu1 %v6711_v36, %s5570_s8 }
 0x311   :  { %v1391_v29 = vpop.permute.xlu0 %1390  ;;  %5250 = vmatprep.subr.bf16.mxu1 %v5249_v43 }
 0x312   :  { %v940_v6 = vpop.permute.xlu1 %939  ;;  %1483 = vst.msk [vmem:[#allocation2 + $0x9c] sm:$0xff] %vm1463_vm9, %v1391_v29  ;;  %5252 = vmatpush3.bf16.msra.mxu1 %v5249_v43 }
 0x313   :  { %1031 = vst.msk [vmem:[#allocation2 + $0xa7] sm:$0xff] %vm1010_vm4, %v940_v6  ;;  %1118 = vrot.lane.b32.xlu0 %v6711_v36, %s5571_s16  ;;  %5254 = vmatprep.subr.bf16.mxu1 %v7054_v37 }
 0x314   :  { %969 = vrot.lane.b32.xlu1 %v780_v62, %s5570_s8 }
 0x315   :  { %v1091_v50 = vpop.permute.xlu0 %1090  ;;  %v7026_v33 = vld [vmem:[#allocation2 + $0x94] sm:$0xff] }
 0x316   :  { %v942_v31 = vpop.permute.xlu1 %941  ;;  %v7028_v58 = vld [vmem:[#allocation2 + $0x90] sm:$0xff]  ;;  %1182 = vst.msk [vmem:[#allocation2 + $0xa6] sm:$0xff] %vm1161_vm7, %v1091_v50  ;;  %4760 = vmatmul.mubr.f32.gmra.mrb[90].mxu0 %v7026_v33 }
 0x317   :  { %1032 = vst.msk [vmem:[#allocation2 + $0xaf] sm:$0xff] %vm1010_vm4, %v942_v31  ;;  %4848 = vmatprep.mubr.f32.mxu1 %v7028_v58  ;;  %1269 = vrot.lane.b32.xlu0 %v6711_v36, %s5569_s26 }
 0x318   :  { %1120 = vrot.lane.b32.xlu1 %v780_v62, %s5571_s16 }
 0x319   :  { %v1242_v35 = vpop.permute.xlu0 %1241  ;;  %v7037_v60 = vld [vmem:[#allocation2 + $0x9c] sm:$0xff] }
 0x31a   :  { %v1093_v52 = vpop.permute.xlu1 %1092  ;;  %v7039_v16 = vld [vmem:[#allocation2 + $0x98] sm:$0xff]  ;;  %1333 = vst.msk [vmem:[#allocation2 + $0xa5] sm:$0xff] %vm1312_vm8, %v1242_v35  ;;  %4762 = vmatprep.mubr.f32.mxu0 %v7037_v60 }
 0x31b   :  { %1183 = vst.msk [vmem:[#allocation2 + $0xae] sm:$0xff] %vm1161_vm7, %v1093_v52  ;;  %4849 = vmatmul.mubr.f32.gmra.mrb[18].mxu1 %v7039_v16  ;;  %1420 = vrot.lane.b32.xlu0 %v6711_v36, %s5572_s25 }
 0x31c   :  { %1271 = vrot.lane.b32.xlu1 %v780_v62, %s5569_s26 }
 0x31d   :  { %v1393_v39 = vpop.permute.xlu0 %1392 }
 0x31e   :  { %v1244_v17 = vpop.permute.xlu1 %1243  ;;  %1484 = vst.msk [vmem:[#allocation2 + $0xa4] sm:$0xff] %vm1463_vm9, %v1393_v39 }
 0x31f   :  { %1334 = vst.msk [vmem:[#allocation2 + $0xad] sm:$0xff] %vm1312_vm8, %v1244_v17 }
 0x320   :  { %1422 = vrot.lane.b32.xlu1 %v780_v62, %s5572_s25 }
 0x321   :  { %v1395_v0 = vpop.permute.xlu0 %1394 }
 0x322   :  { %v944_v36 = vpop.permute.xlu1 %943  ;;  %1485 = vst.msk [vmem:[#allocation2 + $0xac] sm:$0xff] %vm1463_vm9, %v1395_v0 }
 0x323   :  { %1033 = vst.msk [vmem:[#allocation2 + $0xb7] sm:$0xff] %vm1010_vm4, %v944_v36 }
 0x325   :  { %v1095_v5 = vpop.permute.xlu0 %1094  ;;  %v7062_v41 = vld [vmem:[#allocation2 + $0xa4] sm:$0xff] }
 0x326   :  { %v946_v20 = vpop.permute.xlu1 %945  ;;  %v7064_v32 = vld [vmem:[#allocation2 + $0xa0] sm:$0xff]  ;;  %1184 = vst.msk [vmem:[#allocation2 + $0xb6] sm:$0xff] %vm1161_vm7, %v1095_v5  ;;  %4763 = vmatmul.mubr.f32.gmra.mrb[92].mxu0 %v7062_v41 }
 0x327   :  { %1034 = vst.msk [vmem:[#allocation2 + $0xbf] sm:$0xff] %vm1010_vm4, %v946_v20  ;;  %4851 = vmatprep.mubr.f32.mxu1 %v7064_v32 }
 0x329   :  { %v1246_v21 = vpop.permute.xlu0 %1245  ;;  %v7070_v45 = vld [vmem:[#allocation2 + $0xac] sm:$0xff] }
 0x32a   :  { %v1097_v38 = vpop.permute.xlu1 %1096  ;;  %v7072_v4 = vld [vmem:[#allocation2 + $0xa8] sm:$0xff]  ;;  %1335 = vst.msk [vmem:[#allocation2 + $0xb5] sm:$0xff] %vm1312_vm8, %v1246_v21  ;;  %4765 = vmatprep.mubr.f32.mxu0 %v7070_v45 }
 0x32b   :  { %1185 = vst.msk [vmem:[#allocation2 + $0xbe] sm:$0xff] %vm1161_vm7, %v1097_v38  ;;  %4852 = vmatmul.mubr.f32.gmra.mrb[20].mxu1 %v7072_v4 }
 0x32d   :  { %v1397_v30 = vpop.permute.xlu0 %1396 }
 0x32e   :  { %v1248_v61 = vpop.permute.xlu1 %1247  ;;  %1486 = vst.msk [vmem:[#allocation2 + $0xb4] sm:$0xff] %vm1463_vm9, %v1397_v30 }
 0x32f   :  { %1336 = vst.msk [vmem:[#allocation2 + $0xbd] sm:$0xff] %vm1312_vm8, %v1248_v61 }
 0x331   :  { %v1399_v40 = vpop.permute.xlu0 %1398 }
 0x332   :  { %v948_v53 = vpop.permute.xlu1 %947  ;;  %1487 = vst.msk [vmem:[#allocation2 + $0xbc] sm:$0xff] %vm1463_vm9, %v1399_v40 }
 0x333   :  { %1035 = vst.msk [vmem:[#allocation2 + $0xc7] sm:$0xff] %vm1010_vm4, %v948_v53 }
 0x335   :  { %v1099_v51 = vpop.permute.xlu0 %1098  ;;  %v7082_v59 = vld [vmem:[#allocation2 + $0xb4] sm:$0xff] }
 0x336   :  { %v950_v46 = vpop.permute.xlu1 %949  ;;  %v7084_v55 = vld [vmem:[#allocation2 + $0xb0] sm:$0xff]  ;;  %1186 = vst.msk [vmem:[#allocation2 + $0xc6] sm:$0xff] %vm1161_vm7, %v1099_v51  ;;  %4766 = vmatmul.mubr.f32.gmra.mrb[94].mxu0 %v7082_v59 }
 0x337   :  { %1036 = vst.msk [vmem:[#allocation2 + $0xcf] sm:$0xff] %vm1010_vm4, %v950_v46  ;;  %4854 = vmatprep.mubr.f32.mxu1 %v7084_v55 }
 0x339   :  { %v1250_v44 = vpop.permute.xlu0 %1249  ;;  %v7090_v11 = vld [vmem:[#allocation2 + $0xbc] sm:$0xff] }
 0x33a   :  { %v1101_v42 = vpop.permute.xlu1 %1100  ;;  %v7092_v57 = vld [vmem:[#allocation2 + $0xb8] sm:$0xff]  ;;  %1337 = vst.msk [vmem:[#allocation2 + $0xc5] sm:$0xff] %vm1312_vm8, %v1250_v44  ;;  %4768 = vmatprep.mubr.f32.mxu0 %v7090_v11 }
 0x33b   :  { %1187 = vst.msk [vmem:[#allocation2 + $0xce] sm:$0xff] %vm1161_vm7, %v1101_v42  ;;  %4855 = vmatmul.mubr.f32.gmra.mrb[22].mxu1 %v7092_v57 }
 0x33d   :  { %v1401_v3 = vpop.permute.xlu0 %1400 }
 0x33e   :  { %v1252_v27 = vpop.permute.xlu1 %1251  ;;  %1488 = vst.msk [vmem:[#allocation2 + $0xc4] sm:$0xff] %vm1463_vm9, %v1401_v3 }
 0x33f   :  { %1338 = vst.msk [vmem:[#allocation2 + $0xcd] sm:$0xff] %vm1312_vm8, %v1252_v27 }
 0x341   :  { %v1403_v62 = vpop.permute.xlu0 %1402 }
 0x342   :  { %v952_v2 = vpop.permute.xlu1 %951  ;;  %1489 = vst.msk [vmem:[#allocation2 + $0xcc] sm:$0xff] %vm1463_vm9, %v1403_v62 }
 0x343   :  { %1037 = vst.msk [vmem:[#allocation2 + $0xd7] sm:$0xff] %vm1010_vm4, %v952_v2 }
 0x345   :  { %v1103_v29 = vpop.permute.xlu0 %1102  ;;  %v7102_v10 = vld [vmem:[#allocation2 + $0xc4] sm:$0xff] }
 0x346   :  { %v954_v6 = vpop.permute.xlu1 %953  ;;  %v7104_v15 = vld [vmem:[#allocation2 + $0xc0] sm:$0xff]  ;;  %1188 = vst.msk [vmem:[#allocation2 + $0xd6] sm:$0xff] %vm1161_vm7, %v1103_v29  ;;  %4769 = vmatmul.mubr.f32.gmra.mrb[96].mxu0 %v7102_v10 }
 0x347   :  { %1038 = vst.msk [vmem:[#allocation2 + $0xdf] sm:$0xff] %vm1010_vm4, %v954_v6  ;;  %4857 = vmatprep.mubr.f32.mxu1 %v7104_v15 }
 0x349   :  { %v1254_v31 = vpop.permute.xlu0 %1253  ;;  %v7110_v50 = vld [vmem:[#allocation2 + $0xcc] sm:$0xff] }
 0x34a   :  { %v1105_v43 = vpop.permute.xlu1 %1104  ;;  %v7112_v52 = vld [vmem:[#allocation2 + $0xc8] sm:$0xff]  ;;  %1339 = vst.msk [vmem:[#allocation2 + $0xd5] sm:$0xff] %vm1312_vm8, %v1254_v31  ;;  %4771 = vmatprep.mubr.f32.mxu0 %v7110_v50 }
 0x34b   :  { %1189 = vst.msk [vmem:[#allocation2 + $0xde] sm:$0xff] %vm1161_vm7, %v1105_v43  ;;  %4858 = vmatmul.mubr.f32.gmra.mrb[24].mxu1 %v7112_v52 }
 0x34d   :  { %v1405_v7 = vpop.permute.xlu0 %1404 }
 0x34e   :  { %v1256_v35 = vpop.permute.xlu1 %1255  ;;  %1490 = vst.msk [vmem:[#allocation2 + $0xd4] sm:$0xff] %vm1463_vm9, %v1405_v7 }
 0x34f   :  { %1340 = vst.msk [vmem:[#allocation2 + $0xdd] sm:$0xff] %vm1312_vm8, %v1256_v35 }
 0x351   :  { %v1407_v17 = vpop.permute.xlu0 %1406 }
 0x352   :  { %v956_v63 = vpop.permute.xlu1 %955  ;;  %1491 = vst.msk [vmem:[#allocation2 + $0xdc] sm:$0xff] %vm1463_vm9, %v1407_v17 }
 0x353   :  { %1039 = vst.msk [vmem:[#allocation2 + $0xe7] sm:$0xff] %vm1010_vm4, %v956_v63 }
 0x355   :  { %v1107_v36 = vpop.permute.xlu0 %1106  ;;  %v7122_v0 = vld [vmem:[#allocation2 + $0xd4] sm:$0xff] }
 0x356   :  { %v958_v39 = vpop.permute.xlu1 %957  ;;  %v7124_v20 = vld [vmem:[#allocation2 + $0xd0] sm:$0xff]  ;;  %1190 = vst.msk [vmem:[#allocation2 + $0xe6] sm:$0xff] %vm1161_vm7, %v1107_v36  ;;  %4772 = vmatmul.mubr.f32.gmra.mrb[98].mxu0 %v7122_v0 }
 0x357   :  { %1040 = vst.msk [vmem:[#allocation2 + $0xef] sm:$0xff] %vm1010_vm4, %v958_v39  ;;  %4860 = vmatprep.mubr.f32.mxu1 %v7124_v20 }
 0x359   :  { %v1258_v38 = vpop.permute.xlu0 %1257  ;;  %v7130_v21 = vld [vmem:[#allocation2 + $0xdc] sm:$0xff] }
 0x35a   :  { %v1109_v5 = vpop.permute.xlu1 %1108  ;;  %v7132_v61 = vld [vmem:[#allocation2 + $0xd8] sm:$0xff]  ;;  %1341 = vst.msk [vmem:[#allocation2 + $0xe5] sm:$0xff] %vm1312_vm8, %v1258_v38  ;;  %4774 = vmatprep.mubr.f32.mxu0 %v7130_v21 }
 0x35b   :  { %1191 = vst.msk [vmem:[#allocation2 + $0xee] sm:$0xff] %vm1161_vm7, %v1109_v5  ;;  %4861 = vmatmul.mubr.f32.gmra.mrb[26].mxu1 %v7132_v61 }
 0x35d   :  { %v1409_v53 = vpop.permute.xlu0 %1408 }
 0x35e   :  { %v1260_v30 = vpop.permute.xlu1 %1259  ;;  %1492 = vst.msk [vmem:[#allocation2 + $0xe4] sm:$0xff] %vm1463_vm9, %v1409_v53 }
 0x35f   :  { %1342 = vst.msk [vmem:[#allocation2 + $0xed] sm:$0xff] %vm1312_vm8, %v1260_v30 }
 0x361   :  { %v1411_v46 = vpop.permute.xlu0 %1410 }
 0x362   :  { %v960_v40 = vpop.permute.xlu1 %959  ;;  %1493 = vst.msk [vmem:[#allocation2 + $0xec] sm:$0xff] %vm1463_vm9, %v1411_v46 }
 0x363   :  { %1041 = vst.msk [vmem:[#allocation2 + $0xf7] sm:$0xff] %vm1010_vm4, %v960_v40 }
 0x365   :  { %v1111_v42 = vpop.permute.xlu0 %1110  ;;  %v7142_v44 = vld [vmem:[#allocation2 + $0xe4] sm:$0xff] }
 0x366   :  { %v962_v51 = vpop.permute.xlu1 %961  ;;  %v7144_v27 = vld [vmem:[#allocation2 + $0xe0] sm:$0xff]  ;;  %1192 = vst.msk [vmem:[#allocation2 + $0xf6] sm:$0xff] %vm1161_vm7, %v1111_v42  ;;  %v7148_v3 = vpop.f32.mrb[74].mxu0  ;;  %4775 = vmatmul.mubr.f32.gmra.mrb[100].mxu0 %v7142_v44 }
 0x367   :  { %1042 = vst.msk [vmem:[#allocation2 + $0xff] sm:$0xff] %vm1010_vm4, %v962_v51  ;;  %7856 = vst [vmem:[#allocation9_spill] sm:$0xff] %v7148_v3  ;;  %4863 = vmatprep.mubr.f32.mxu1 %v7144_v27  ;;  %v7152_v2 = vpop.f32.mrb[75].mxu0  ;;  %v4124_v3 = vld [vmem:[%s7851_s3 + $0x1a8] sm:$0xff] }
 0x368   :  { %7857 = vst [vmem:[#allocation10_spill] sm:$0xff] %v7152_v2 }
 0x369   :  { %v1262_v6 = vpop.permute.xlu0 %1261  ;;  %v7154_v29 = vld [vmem:[#allocation2 + $0xec] sm:$0xff] }
 0x36a   :  { %v1113_v62 = vpop.permute.xlu1 %1112  ;;  %v7156_v43 = vld [vmem:[#allocation2 + $0xe8] sm:$0xff]  ;;  %1343 = vst.msk [vmem:[#allocation2 + $0xf5] sm:$0xff] %vm1312_vm8, %v1262_v6  ;;  %4777 = vmatprep.mubr.f32.mxu0 %v7154_v29 }
 0x36b   :  { %1193 = vst.msk [vmem:[#allocation2 + $0xfe] sm:$0xff] %vm1161_vm7, %v1113_v62  ;;  %4864 = vmatmul.mubr.f32.gmra.mrb[28].mxu1 %v7156_v43 }
 0x36d   :  { %v1413_v35 = vpop.permute.xlu0 %1412 }
 0x36e   :  { %v1264_v31 = vpop.permute.xlu1 %1263  ;;  %1494 = vst.msk [vmem:[#allocation2 + $0xf4] sm:$0xff] %vm1463_vm9, %v1413_v35 }
 0x36f   :  { %1344 = vst.msk [vmem:[#allocation2 + $0xfd] sm:$0xff] %vm1312_vm8, %v1264_v31 }
 0x371   :  { %v1415_v63 = vpop.permute.xlu0 %1414 }
 0x372   :  { %v964_v7 = vpop.permute.xlu1 %963  ;;  %1495 = vst.msk [vmem:[#allocation2 + $0xfc] sm:$0xff] %vm1463_vm9, %v1415_v63 }
 0x373   :  { %1043 = vst.msk [vmem:[#allocation2 + $0x107] sm:$0xff] %vm1010_vm4, %v964_v7 }
 0x375   :  { %v1115_v39 = vpop.permute.xlu0 %1114  ;;  %v7166_v36 = vld [vmem:[#allocation2 + $0xf4] sm:$0xff] }
 0x376   :  { %v966_v17 = vpop.permute.xlu1 %965  ;;  %v7168_v5 = vld [vmem:[#allocation2 + $0xf0] sm:$0xff]  ;;  %1194 = vst.msk [vmem:[#allocation2 + $0x106] sm:$0xff] %vm1161_vm7, %v1115_v39  ;;  %v7172_v38 = vpop.f32.mrb[76].mxu0  ;;  %4778 = vmatmul.mubr.f32.gmra.mrb[102].mxu0 %v7166_v36 }
 0x377   :  { %1044 = vst.msk [vmem:[#allocation2 + $0x10f] sm:$0xff] %vm1010_vm4, %v966_v17  ;;  %7858 = vst [vmem:[#allocation11_spill] sm:$0xff] %v7172_v38  ;;  %4866 = vmatprep.mubr.f32.mxu1 %v7168_v5  ;;  %v7176_v30 = vpop.f32.mrb[77].mxu0  ;;  %v5538_v38 = vld [vmem:[#allocation2 + $0x18] sm:$0xff] }
 0x378   :  { %7859 = vst [vmem:[#allocation12_spill] sm:$0xff] %v7176_v30 }
 0x379   :  { %v1266_v40 = vpop.permute.xlu0 %1265  ;;  %v7178_v46 = vld [vmem:[#allocation2 + $0xfc] sm:$0xff] }
 0x37a   :  { %v1117_v53 = vpop.permute.xlu1 %1116  ;;  %v7180_v51 = vld [vmem:[#allocation2 + $0xf8] sm:$0xff]  ;;  %1345 = vst.msk [vmem:[#allocation2 + $0x105] sm:$0xff] %vm1312_vm8, %v1266_v40  ;;  %4780 = vmatprep.mubr.f32.mxu0 %v7178_v46 }
 0x37b   :  { %1195 = vst.msk [vmem:[#allocation2 + $0x10e] sm:$0xff] %vm1161_vm7, %v1117_v53  ;;  %4867 = vmatmul.mubr.f32.gmra.mrb[30].mxu1 %v7180_v51 }
 0x37d   :  { %v1417_v62 = vpop.permute.xlu0 %1416 }
 0x37e   :  { %v1268_v42 = vpop.permute.xlu1 %1267  ;;  %1496 = vst.msk [vmem:[#allocation2 + $0x104] sm:$0xff] %vm1463_vm9, %v1417_v62 }
 0x37f   :  { %1346 = vst.msk [vmem:[#allocation2 + $0x10d] sm:$0xff] %vm1312_vm8, %v1268_v42 }
 0x381   :  { %v1419_v31 = vpop.permute.xlu0 %1418 }
 0x382   :  { %v968_v6 = vpop.permute.xlu1 %967  ;;  %1497 = vst.msk [vmem:[#allocation2 + $0x10c] sm:$0xff] %vm1463_vm9, %v1419_v31 }
 0x383   :  { %1045 = vst.msk [vmem:[#allocation2 + $0x117] sm:$0xff] %vm1010_vm4, %v968_v6 }
 0x385   :  { %v1119_v7 = vpop.permute.xlu0 %1118  ;;  %v7190_v63 = vld [vmem:[#allocation2 + $0x104] sm:$0xff] }
 0x386   :  { %v970_v35 = vpop.permute.xlu1 %969  ;;  %v7192_v17 = vld [vmem:[#allocation2 + $0x100] sm:$0xff]  ;;  %1196 = vst.msk [vmem:[#allocation2 + $0x116] sm:$0xff] %vm1161_vm7, %v1119_v7  ;;  %4781 = vmatmul.mubr.f32.gmra.mrb[104].mxu0 %v7190_v63 }
 0x387   :  { %1047 = vst.msk [vmem:[#allocation2 + $0x11f] sm:$0x1] %vm1046_vm10, %v970_v35  ;;  %4869 = vmatprep.mubr.f32.mxu1 %v7192_v17 }
 0x389   :  { %v1270_v53 = vpop.permute.xlu0 %1269  ;;  %v7197_v40 = vld [vmem:[#allocation2 + $0x10c] sm:$0xff] }
 0x38a   :  { %v1121_v39 = vpop.permute.xlu1 %1120  ;;  %v7199_v42 = vld [vmem:[#allocation2 + $0x108] sm:$0xff]  ;;  %1347 = vst.msk [vmem:[#allocation2 + $0x115] sm:$0xff] %vm1312_vm8, %v1270_v53  ;;  %v7202_v62 = vpop.f32.mrb[78].mxu0  ;;  %4783 = vmatprep.mubr.f32.mxu0 %v7197_v40 }
 0x38b   :  { %1198 = vst.msk [vmem:[#allocation2 + $0x11e] sm:$0x3] %vm1197_vm11, %v1121_v39  ;;  %7860 = vst [vmem:[#allocation13_spill] sm:$0xff] %v7202_v62  ;;  %4870 = vmatmul.mubr.f32.gmra.mrb[32].mxu1 %v7199_v42  ;;  %v7206_v6 = vpop.f32.mrb[79].mxu0 }
 0x38c   :  { %7861 = vst [vmem:[#allocation14_spill] sm:$0xff] %v7206_v6  ;;  %v4121_v6 = vld [vmem:[%s7851_s3 + $0x190] sm:$0xff] }
 0x38d   :  { %v1421_v35 = vpop.permute.xlu0 %1420 }
 0x38e   :  { %v1272_v31 = vpop.permute.xlu1 %1271  ;;  %1498 = vst.msk [vmem:[#allocation2 + $0x114] sm:$0xff] %vm1463_vm9, %v1421_v35 }
 0x38f   :  { %1349 = vst.msk [vmem:[#allocation2 + $0x11d] sm:$0x7] %vm1348_vm12, %v1272_v31 }
 0x392   :  { %v1423_v7 = vpop.permute.xlu1 %1422 }
 0x393   :  { %1500 = vst.msk [vmem:[#allocation2 + $0x11c] sm:$0xf] %vm1499_vm13, %v1423_v7  ;;  %v4122_v7 = vld [vmem:[%s7851_s3 + $0x198] sm:$0xff] }
 0x394   :  { %v5257_v2 = vpack.c.bf16 %v4122_v7, %v4121_v6  ;;  %v4126_v6 = vld [vmem:[%s7851_s3 + $0x1b8] sm:$0xff] }
 0x395   :  { %v7209_v39 = vld [vmem:[#allocation2 + $0x114] sm:$0xff] }
 0x396   :  { %v7211_v53 = vld [vmem:[#allocation2 + $0x110] sm:$0xff]  ;;  %4784 = vmatmul.mubr.f32.gmra.mrb[106].mxu0 %v7209_v39 }
 0x397   :  { %4872 = vmatprep.mubr.f32.mxu1 %v7211_v53 }
 0x39a   :  { %v7218_v62 = vpop.f32.mrb[80].mxu0  ;;  %v7220_v31 = vld [vmem:[#allocation2 + $0x11c] sm:$0xff] }
 0x39b   :  { %7862 = vst [vmem:[#allocation15_spill] sm:$0xff] %v7218_v62  ;;  %v7222_v35 = vld [vmem:[#allocation2 + $0x118] sm:$0xff]  ;;  %v7227_v30 = vpop.f32.mrb[81].mxu0  ;;  %4786 = vmatprep.mubr.f32.mxu0 %v7220_v31  ;;  %v4123_v62 = vld [vmem:[%s7851_s3 + $0x1a0] sm:$0xff] }
 0x39c   :  { %7863 = vst [vmem:[#allocation16_spill] sm:$0xff] %v7227_v30  ;;  %4873 = vmatmul.mubr.f32.gmra.mrb[34].mxu1 %v7222_v35  ;;  %v5261_v30 = vpack.c.bf16 %v4124_v3, %v4123_v62  ;;  %v4128_v3 = vld [vmem:[%s7851_s3 + $0x1c8] sm:$0xff]  ;;  %v4130_v62 = vld [vmem:[%s7851_s3 + $0x1d8] sm:$0xff] }
 0x39d   :  { %4907 = vmatprep.mubr.f32.mxu1 %v5538_v38  ;;  %v4125_v38 = vld [vmem:[%s7851_s3 + $0x1b0] sm:$0xff] }
 0x3a0   :  { %4908 = vmatmul.mubr.f32.vlgmr.msra.gmra.mrb[0].mxu1 %v6740_v18  ;;  %v7248_v18 = vld [vmem:[#allocation2 + $0x124] sm:$0xff] }
 0x3a1   :  { %5256 = vmatpush3.bf16.msra.mxu1 %v7054_v37  ;;  %4910 = vmatprep.mubr.f32.mxu1 %v6755_v26  ;;  %v5265_v37 = vpack.c.bf16 %v4126_v6, %v4125_v38  ;;  %v4127_v26 = vld [vmem:[%s7851_s3 + $0x1c0] sm:$0xff]  ;;  %v4134_v38 = vld [vmem:[%s7851_s3 + $0x1f8] sm:$0xff]  ;;  %v4136_v6 = vld [vmem:[%s7851_s3 + $0x208] sm:$0xff] }
 0x3a2   :  { %5258 = vmatprep.subr.bf16.mxu1 %v5257_v2  ;;  %4787 = vmatmul.mubr.f32.gmra.mrb[108].mxu0 %v7248_v18 }
 0x3a4   :  { %4911 = vmatmul.mubr.f32.gmra.mrb[2].mxu1 %v6776_v12  ;;  %v5269_v12 = vpack.c.bf16 %v4128_v3, %v4127_v26  ;;  %v7325_v3 = vld [vmem:[#allocation2 + $0x120] sm:$0xff] }
 0x3a5   :  { %4913 = vmatprep.mubr.f32.mxu1 %v6785_v48  ;;  %5260 = vmatpush3.bf16.msra.mxu1 %v5257_v2  ;;  %v4129_v2 = vld [vmem:[%s7851_s3 + $0x1d0] sm:$0xff]  ;;  %3214 = vst.msk [vmem:[#allocation3 + $0x120] sm:$0xff] %vm3177_vm14, %v7325_v3  ;;  %3215 = vst.msk [vmem:[#allocation3 + $0x128] sm:$0xff] %vm3177_vm14, %v7325_v3 }
 0x3a6   :  { %5262 = vmatprep.subr.bf16.mxu1 %v5261_v30 }
 0x3a8   :  { %4914 = vmatmul.mubr.f32.gmra.mrb[4].mxu1 %v6806_v19  ;;  %v5273_v19 = vpack.c.bf16 %v4130_v62, %v4129_v2  ;;  %v4138_v2 = vld [vmem:[%s7851_s3 + $0x218] sm:$0xff]  ;;  %v2430_v62 = vld [vmem:[#allocation2 + $0x24] sm:$0xff] }
 0x3a9   :  { %4916 = vmatprep.mubr.f32.mxu1 %v6815_v49  ;;  %5264 = vmatpush3.bf16.msra.mxu1 %v5261_v30  ;;  %v4131_v49 = vld [vmem:[%s7851_s3 + $0x1e0] sm:$0xff]  ;;  %v4132_v30 = vld [vmem:[%s7851_s3 + $0x1e8] sm:$0xff] }
 0x3aa   :  { %5266 = vmatprep.subr.bf16.mxu1 %v5265_v37  ;;  %v7259_v48 = vpop.f32.mrb[82].mxu0 }
 0x3ab   :  { %v7267_v7 = vpop.f32.mrb[83].mxu0 }
 0x3ac   :  { %4917 = vmatmul.mubr.f32.gmra.mrb[6].mxu1 %v6842_v34  ;;  %v5277_v34 = vpack.c.bf16 %v4132_v30, %v4131_v49  ;;  %v2431_v49 = vld [vmem:[#allocation2 + $0x2c] sm:$0xff]  ;;  %v4139_v30 = vld [vmem:[%s7851_s3 + $0x220] sm:$0xff] }
 0x3ad   :  { %4919 = vmatprep.mubr.f32.mxu1 %v6851_v9  ;;  %5268 = vmatpush3.bf16.msra.mxu1 %v5265_v37  ;;  %v4133_v9 = vld [vmem:[%s7851_s3 + $0x1f0] sm:$0xff] }
 0x3ae   :  { %5270 = vmatprep.subr.bf16.mxu1 %v5269_v12 }
 0x3b0   :  { %4920 = vmatmul.mubr.f32.gmra.mrb[8].mxu1 %v6880_v23  ;;  %v5281_v23 = vpack.c.bf16 %v4134_v38, %v4133_v9  ;;  %v2432_v9 = vld [vmem:[#allocation2 + $0x34] sm:$0xff] }
 0x3b1   :  { %4922 = vmatprep.mubr.f32.mxu1 %v6898_v56  ;;  %5272 = vmatpush3.bf16.msra.mxu1 %v5269_v12  ;;  %v4135_v56 = vld [vmem:[%s7851_s3 + $0x200] sm:$0xff]  ;;  %v4137_v12 = vld [vmem:[%s7851_s3 + $0x210] sm:$0xff] }
 0x3b2   :  { %5274 = vmatprep.subr.bf16.mxu1 %v5273_v19 }
 0x3b4   :  { %4923 = vmatmul.mubr.f32.gmra.mrb[10].mxu1 %v6928_v22  ;;  %v5285_v22 = vpack.c.bf16 %v4136_v6, %v4135_v56  ;;  %v2433_v56 = vld [vmem:[#allocation2 + $0x3c] sm:$0xff]  ;;  %v4141_v6 = vld [vmem:[%s7851_s3 + $0x230] sm:$0xff] }
 0x3b5   :  { %4925 = vmatprep.mubr.f32.mxu1 %v6946_v54  ;;  %5276 = vmatpush3.bf16.msra.mxu1 %v5273_v19  ;;  %v5289_v19 = vpack.c.bf16 %v4138_v2, %v4137_v12  ;;  %v4142_v12 = vld [vmem:[%s7851_s3 + $0x238] sm:$0xff] }
 0x3b6   :  { %5278 = vmatprep.subr.bf16.mxu1 %v5277_v34 }
 0x3b8   :  { %4926 = vmatmul.mubr.f32.gmra.mrb[12].mxu1 %v6976_v25 }
 0x3b9   :  { %4928 = vmatprep.mubr.f32.mxu1 %v6990_v1  ;;  %5280 = vmatpush3.bf16.msra.mxu1 %v5277_v34  ;;  %v4140_v34 = vld [vmem:[%s7851_s3 + $0x228] sm:$0xff] }
 0x3ba   :  { %5282 = vmatprep.subr.bf16.mxu1 %v5281_v23  ;;  %v7295_v37 = vpop.f32.mrb[84].mxu0  ;;  %v5293_v38 = vpack.c.bf16 %v4140_v34, %v4139_v30  ;;  %v4143_v30 = vld [vmem:[%s7851_s3 + $0x240] sm:$0xff]  ;;  %v4144_v34 = vld [vmem:[%s7851_s3 + $0x248] sm:$0xff] }
 0x3bb   :  { %v7297_v54 = vpop.f32.mrb[85].mxu0 }
 0x3bc   :  { %4929 = vmatmul.mubr.f32.gmra.mrb[14].mxu1 %v7028_v58 }
 0x3bd   :  { %4931 = vmatprep.mubr.f32.mxu1 %v7039_v16  ;;  %5284 = vmatpush3.bf16.msra.mxu1 %v5281_v23 }
 0x3be   :  { %5286 = vmatprep.subr.bf16.mxu1 %v5285_v22 }
 0x3c0   :  { %4932 = vmatmul.mubr.f32.gmra.mrb[16].mxu1 %v7064_v32 }
 0x3c1   :  { %4934 = vmatprep.mubr.f32.mxu1 %v7072_v4 }
 0x3c4   :  { %4935 = vmatmul.mubr.f32.gmra.mrb[18].mxu1 %v7084_v55 }
 0x3c5   :  { %4937 = vmatprep.mubr.f32.mxu1 %v7092_v57 }
 0x3c8   :  { %4938 = vmatmul.mubr.f32.gmra.mrb[20].mxu1 %v7104_v15 }
 0x3c9   :  { %4940 = vmatprep.mubr.f32.mxu1 %v7112_v52 }
 0x3ca   :  { %v7307_v25 = vpop.f32.mrb[86].mxu0 }
 0x3cb   :  { %v7309_v1 = vpop.f32.mrb[87].mxu0 }
 0x3cc   :  { %4941 = vmatmul.mubr.f32.gmra.mrb[22].mxu1 %v7124_v20 }
 0x3cd   :  { %4943 = vmatprep.mubr.f32.mxu1 %v7132_v61 }
 0x3d0   :  { %4944 = vmatmul.mubr.f32.gmra.mrb[24].mxu1 %v7144_v27 }
 0x3d1   :  { %4946 = vmatprep.mubr.f32.mxu1 %v7156_v43 }
 0x3d4   :  { %4947 = vmatmul.mubr.f32.gmra.mrb[26].mxu1 %v7168_v5 }
 0x3d5   :  { %4949 = vmatprep.mubr.f32.mxu1 %v7180_v51 }
 0x3d8   :  { %4950 = vmatmul.mubr.f32.gmra.mrb[28].mxu1 %v7192_v17 }
 0x3d9   :  { %4952 = vmatprep.mubr.f32.mxu1 %v7199_v42  ;;  %v7319_v58 = vpop.f32.mrb[88].mxu0 }
 0x3da   :  { %v7321_v26 = vpop.f32.mrb[89].mxu0 }
 0x3dc   :  { %4953 = vmatmul.mubr.f32.gmra.mrb[30].mxu1 %v7211_v53 }
 0x3dd   :  { %4955 = vmatprep.mubr.f32.mxu1 %v7222_v35 }
 0x3e0   :  { %4956 = vmatmul.mubr.f32.gmra.mrb[32].mxu1 %v7325_v3 }
 0x3e1   :  { %4958 = vmatprep.mubr.f32.mxu1 %v7325_v3 }
 0x3e4   :  { %4959 = vmatmul.mubr.f32.gmra.mrb[34].mxu1 %v7325_v3 }
 0x3e5   :  { %4993 = vmatprep.mubr.f32.mxu1 %v2430_v62  ;;  %v2434_v62 = vld [vmem:[#allocation2 + $0x44] sm:$0xff] }
 0x3e8   :  { %4994 = vmatmul.mubr.f32.vlgmr.msra.gmra.mrb[0].mxu1 %v2431_v49  ;;  %v2435_v49 = vld [vmem:[#allocation2 + $0x4c] sm:$0xff] }
 0x3e9   :  { %5288 = vmatpush3.bf16.msra.mxu1 %v5285_v22  ;;  %4996 = vmatprep.mubr.f32.mxu1 %v2432_v9  ;;  %v7342_v23 = vpop.f32.mrb[90].mxu0  ;;  %v5297_v22 = vpack.c.bf16 %v4142_v12, %v4141_v6  ;;  %v2436_v9 = vld [vmem:[#allocation2 + $0x54] sm:$0xff] }
 0x3ea   :  { %5290 = vmatprep.subr.bf16.mxu1 %v5289_v19  ;;  %v7350_v2 = vpop.f32.mrb[91].mxu0  ;;  %v4146_v6 = vld [vmem:[%s7851_s3 + $0x258] sm:$0xff] }
 0x3eb   :  { %7864 = vst [vmem:[#allocation17_spill] sm:$0xff] %v7350_v2  ;;  %v2437_v2 = vld [vmem:[#allocation2 + $0x5c] sm:$0xff] }
 0x3ec   :  { %4997 = vmatmul.mubr.f32.gmra.mrb[2].mxu1 %v2433_v56  ;;  %v5301_v56 = vpack.c.bf16 %v4144_v34, %v4143_v30  ;;  %v2776_v34 = vld [vmem:[#allocation2 + $0x90] sm:$0xff] }
 0x3ed   :  { %4999 = vmatprep.mubr.f32.mxu1 %v2434_v62  ;;  %5292 = vmatpush3.bf16.msra.mxu1 %v5289_v19  ;;  %v4145_v19 = vld [vmem:[%s7851_s3 + $0x250] sm:$0xff]  ;;  %v4148_v62 = vld [vmem:[%s7851_s3 + $0x268] sm:$0xff] }
 0x3ee   :  { %5294 = vmatprep.subr.bf16.mxu1 %v5293_v38  ;;  %v5305_v12 = vpack.c.bf16 %v4146_v6, %v4145_v19 }
 0x3f0   :  { %5000 = vmatmul.mubr.f32.gmra.mrb[4].mxu1 %v2435_v49 }
 0x3f1   :  { %5002 = vmatprep.mubr.f32.mxu1 %v2436_v9  ;;  %5296 = vmatpush3.bf16.msra.mxu1 %v5293_v38  ;;  %v4147_v38 = vld [vmem:[%s7851_s3 + $0x260] sm:$0xff] }
 0x3f2   :  { %5298 = vmatprep.subr.bf16.mxu1 %v5297_v22 }
 0x3f4   :  { %5003 = vmatmul.mubr.f32.gmra.mrb[6].mxu1 %v2437_v2  ;;  %v5309_v2 = vpack.c.bf16 %v4148_v62, %v4147_v38  ;;  %v7868_v38 = vld [vmem:[#allocation12_spill] sm:$0xff] }
 0x3f5   :  { %5005 = vmatprep.mubr.f32.mxu1 %v6878_v8  ;;  %5300 = vmatpush3.bf16.msra.mxu1 %v5297_v22  ;;  %v4149_v8 = vld [vmem:[%s7851_s3 + $0x270] sm:$0xff]  ;;  %v4150_v22 = vld [vmem:[%s7851_s3 + $0x278] sm:$0xff] }
 0x3f6   :  { %5302 = vmatprep.subr.bf16.mxu1 %v5301_v56 }
 0x3f8   :  { %5006 = vmatmul.mubr.f32.gmra.mrb[8].mxu1 %v6896_v13  ;;  %v5313_v13 = vpack.c.bf16 %v4150_v22, %v4149_v8 }
 0x3f9   :  { %5008 = vmatprep.mubr.f32.mxu1 %v6926_v28  ;;  %5304 = vmatpush3.bf16.msra.mxu1 %v5301_v56  ;;  %v7373_v49 = vpop.f32.mrb[92].mxu0 }
 0x3fa   :  { %5306 = vmatprep.subr.bf16.mxu1 %v5305_v12  ;;  %v7381_v30 = vpop.f32.mrb[93].mxu0 }
 0x3fc   :  { %5009 = vmatmul.mubr.f32.gmra.mrb[10].mxu1 %v6944_v24 }
 0x3fd   :  { %5011 = vmatprep.mubr.f32.mxu1 %v6974_v47  ;;  %5308 = vmatpush3.bf16.msra.mxu1 %v5305_v12 }
 0x3fe   :  { %5310 = vmatprep.subr.bf16.mxu1 %v5309_v2 }
 0x400   :  { %5012 = vmatmul.mubr.f32.gmra.mrb[12].mxu1 %v6988_v14 }
 0x401   :  { %5014 = vmatprep.mubr.f32.mxu1 %v7026_v33  ;;  %5312 = vmatpush3.bf16.msra.mxu1 %v5309_v2  ;;  %v2463_v33 = vld [vmem:[#allocation2 + $0x12c] sm:$0xff] }
 0x402   :  { %5314 = vmatprep.subr.bf16.mxu1 %v5313_v13 }
 0x404   :  { %5015 = vmatmul.mubr.f32.gmra.mrb[14].mxu1 %v7037_v60  ;;  %v2464_v60 = vld [vmem:[#allocation2 + $0x134] sm:$0xff] }
 0x405   :  { %5017 = vmatprep.mubr.f32.mxu1 %v7062_v41  ;;  %5316 = vmatpush3.bf16.msra.mxu1 %v5313_v13  ;;  %v2465_v41 = vld [vmem:[#allocation2 + $0x13c] sm:$0xff] }
 0x408   :  { %5018 = vmatmul.mubr.f32.gmra.mrb[16].mxu1 %v7070_v45 }
 0x409   :  { %5020 = vmatprep.mubr.f32.mxu1 %v7082_v59  ;;  %v7391_v28 = vpop.f32.mrb[94].mxu0 }
 0x40a   :  { %v7393_v24 = vpop.f32.mrb[95].mxu0 }
 0x40c   :  { %5021 = vmatmul.mubr.f32.gmra.mrb[18].mxu1 %v7090_v11  ;;  %v2764_v11 = vld [vmem:[#allocation2 + $0x30] sm:$0xff] }
 0x40d   :  { %5023 = vmatprep.mubr.f32.mxu1 %v7102_v10  ;;  %v2765_v10 = vld [vmem:[#allocation2 + $0x38] sm:$0xff] }
 0x410   :  { %5024 = vmatmul.mubr.f32.gmra.mrb[20].mxu1 %v7110_v50  ;;  %v2766_v50 = vld [vmem:[#allocation2 + $0x40] sm:$0xff] }
 0x411   :  { %5026 = vmatprep.mubr.f32.mxu1 %v7122_v0  ;;  %v2767_v0 = vld [vmem:[#allocation2 + $0x48] sm:$0xff] }
 0x414   :  { %5027 = vmatmul.mubr.f32.gmra.mrb[22].mxu1 %v7130_v21  ;;  %v2768_v21 = vld [vmem:[#allocation2 + $0x50] sm:$0xff] }
 0x415   :  { %5029 = vmatprep.mubr.f32.mxu1 %v7142_v44  ;;  %v2769_v44 = vld [vmem:[#allocation2 + $0x58] sm:$0xff] }
 0x418   :  { %5030 = vmatmul.mubr.f32.gmra.mrb[24].mxu1 %v7154_v29  ;;  %v2770_v29 = vld [vmem:[#allocation2 + $0x60] sm:$0xff] }
 0x419   :  { %5032 = vmatprep.mubr.f32.mxu1 %v7166_v36  ;;  %v7403_v47 = vpop.f32.mrb[96].mxu0 }
 0x41a   :  { %v7405_v14 = vpop.f32.mrb[97].mxu0 }
 0x41c   :  { %5033 = vmatmul.mubr.f32.gmra.mrb[26].mxu1 %v7178_v46  ;;  %v2771_v46 = vld [vmem:[#allocation2 + $0x68] sm:$0xff] }
 0x41d   :  { %5035 = vmatprep.mubr.f32.mxu1 %v7190_v63 }
 0x420   :  { %5036 = vmatmul.mubr.f32.gmra.mrb[28].mxu1 %v7197_v40  ;;  %v2772_v40 = vld [vmem:[#allocation2 + $0x70] sm:$0xff] }
 0x421   :  { %5038 = vmatprep.mubr.f32.mxu1 %v7209_v39  ;;  %v2773_v39 = vld [vmem:[#allocation2 + $0x78] sm:$0xff] }
 0x424   :  { %5039 = vmatmul.mubr.f32.gmra.mrb[30].mxu1 %v7220_v31  ;;  %v2774_v31 = vld [vmem:[#allocation2 + $0x80] sm:$0xff] }
 0x425   :  { %5041 = vmatprep.mubr.f32.mxu1 %v7248_v18  ;;  %v2775_v18 = vld [vmem:[#allocation2 + $0x88] sm:$0xff] }
 0x428   :  { %5042 = vmatmul.mubr.f32.gmra.mrb[32].mxu1 %v2463_v33  ;;  %v7869_v33 = vld [vmem:[#allocation13_spill] sm:$0xff] }
 0x429   :  { %5044 = vmatprep.mubr.f32.mxu1 %v2464_v60  ;;  %v7413_v45 = vpop.f32.mrb[98].mxu0 }
 0x42a   :  { %v7415_v59 = vpop.f32.mrb[99].mxu0 }
 0x42c   :  { %5045 = vmatmul.mubr.f32.gmra.mrb[34].mxu1 %v2465_v41 }
 0x42d   :  { %5079 = vmatprep.mubr.f32.mxu1 %v2764_v11 }
 0x430   :  { %5080 = vmatmul.mubr.f32.vlgmr.msra.gmra.mrb[0].mxu1 %v2765_v10  ;;  %v7870_v10 = vld [vmem:[#allocation14_spill] sm:$0xff] }
 0x431   :  { %5082 = vmatprep.mubr.f32.mxu1 %v2766_v50 }
 0x434   :  { %5083 = vmatmul.mubr.f32.gmra.mrb[2].mxu1 %v2767_v0 }
 0x435   :  { %5085 = vmatprep.mubr.f32.mxu1 %v2768_v21 }
 0x438   :  { %5086 = vmatmul.mubr.f32.gmra.mrb[4].mxu1 %v2769_v44 }
 0x439   :  { %5088 = vmatprep.mubr.f32.mxu1 %v2770_v29  ;;  %v7417_v36 = vpop.f32.mrb[100].mxu0 }
 0x43a   :  { %v7419_v63 = vpop.f32.mrb[101].mxu0 }
 0x43c   :  { %5089 = vmatmul.mubr.f32.gmra.mrb[6].mxu1 %v2771_v46  ;;  %v7871_v46 = vld [vmem:[#allocation15_spill] sm:$0xff] }
 0x43d   :  { %5091 = vmatprep.mubr.f32.mxu1 %v2772_v40 }
 0x440   :  { %5092 = vmatmul.mubr.f32.gmra.mrb[8].mxu1 %v2773_v39 }
 0x441   :  { %5094 = vmatprep.mubr.f32.mxu1 %v2774_v31 }
 0x444   :  { %5095 = vmatmul.mubr.f32.gmra.mrb[10].mxu1 %v2775_v18  ;;  %v7872_v18 = vld [vmem:[#allocation16_spill] sm:$0xff] }
 0x445   :  { %5097 = vmatprep.mubr.f32.mxu1 %v2776_v34 }
 0x448   :  { %5098 = vmatmul.mubr.f32.gmra.mrb[12].mxu1 %v7039_v16 }
 0x449   :  { %5100 = vmatprep.mubr.f32.mxu1 %v7064_v32  ;;  %v7423_v9 = vpop.f32.mrb[102].mxu0 }
 0x44a   :  { %v7425_v56 = vpop.f32.mrb[103].mxu0 }
 0x44c   :  { %5101 = vmatmul.mubr.f32.gmra.mrb[14].mxu1 %v7072_v4 }
 0x44d   :  { %5103 = vmatprep.mubr.f32.mxu1 %v7084_v55 }
 0x450   :  { %5104 = vmatmul.mubr.f32.gmra.mrb[16].mxu1 %v7092_v57 }
 0x451   :  { %5106 = vmatprep.mubr.f32.mxu1 %v7104_v15 }
 0x454   :  { %5107 = vmatmul.mubr.f32.gmra.mrb[18].mxu1 %v7112_v52 }
 0x455   :  { %5109 = vmatprep.mubr.f32.mxu1 %v7124_v20  ;;  %v7467_v20 = vld [vmem:[%s7852_s4] ss:$0 sm:$0xff] }
 0x458   :  { %5110 = vmatmul.mubr.f32.gmra.mrb[20].mxu1 %v7132_v61  ;;  %v7865_v61 = vld [vmem:[#allocation9_spill] sm:$0xff] }
 0x459   :  { %5112 = vmatprep.mubr.f32.mxu1 %v7144_v27  ;;  %v7435_v16 = vpop.f32.mrb[104].mxu0 }
 0x45a   :  { %v7437_v32 = vpop.f32.mrb[105].mxu0 }
 0x45c   :  { %5113 = vmatmul.mubr.f32.gmra.mrb[22].mxu1 %v7156_v43 }
 0x45d   :  { %5115 = vmatprep.mubr.f32.mxu1 %v7168_v5  ;;  %v7866_v5 = vld [vmem:[#allocation10_spill] sm:$0xff] }
 0x460   :  { %5116 = vmatmul.mubr.f32.gmra.mrb[24].mxu1 %v7180_v51 }
 0x461   :  { %5118 = vmatprep.mubr.f32.mxu1 %v7192_v17 }
 0x464   :  { %5119 = vmatmul.mubr.f32.gmra.mrb[26].mxu1 %v7199_v42 }
 0x465   :  { %5121 = vmatprep.mubr.f32.mxu1 %v7211_v53 }
 0x468   :  { %5122 = vmatmul.mubr.f32.gmra.mrb[28].mxu1 %v7222_v35 }
 0x469   :  { %5124 = vmatprep.mubr.f32.mxu1 %v7325_v3  ;;  %v7447_v4 = vpop.f32.mrb[106].mxu0 }
 0x46a   :  { %v7449_v55 = vpop.f32.mrb[107].mxu0 }
 0x46c   :  { %5125 = vmatmul.mubr.f32.gmra.mrb[30].mxu1 %v7325_v3 }
 0x46d   :  { %5127 = vmatprep.mubr.f32.mxu1 %v7325_v3 }
 0x470   :  { %5128 = vmatmul.mubr.f32.gmra.mrb[32].mxu1 %v7325_v3 }
 0x471   :  { %5130 = vmatprep.mubr.f32.mxu1 %v7325_v3 }
 0x474   :  { %5131 = vmatmul.mubr.f32.gmra.mrb[34].mxu1 %v7325_v3  ;;  %v7867_v3 = vld [vmem:[#allocation11_spill] sm:$0xff] }
 0x475   :  { %v7460_v57 = vpop.f32.mrb[108].mxu0 }
 0x476   :  { %v7462_v15 = vpop.f32.mrb[109].mxu0 }
 0x503   :  { %v5081_v52 = vpop.f32.mrb[0].mxu1 }
 0x504   :  { %v5381_v27 = vadd.f32 %v5081_v52, %v7865_v61  ;;  %v2883_v43 = vpop.f32.mrb[1].mxu1 }
 0x505   :  { %v5382_v51 = vadd.f32 %v2883_v43, %v7866_v5 }
 0x506   :  { %v3106_v17 = vadd.f32 %v5381_v27, %v7467_v20 }
 0x507   :  { %v3105_v42 = vadd.f32 %v5382_v51, %v7467_v20  ;;  %v5084_v53 = vpop.f32.mrb[2].mxu1 }
 0x508   :  { %v3142_v35 = vmax.f32 %v3106_v17, 0.0  ;;  %v5383_v19 = vadd.f32 %v5084_v53, %v7867_v3  ;;  %v2893_v6 = vpop.f32.mrb[3].mxu1 }
 0x509   :  { %v3141_v12 = vmax.f32 %v3105_v42, 0.0  ;;  %v5384_v62 = vadd.f32 %v2893_v6, %v7868_v38 }
 0x50a   :  { %3179 = vst.msk [vmem:[#allocation3 + $0x8] sm:$0xff] %vm3177_vm14, %v3142_v35  ;;  %v3108_v2 = vadd.f32 %v5383_v19, %v7467_v20 }
 0x50b   :  { %3178 = vst.msk [vmem:[#allocation3] sm:$0xff] %vm3177_vm14, %v3141_v12  ;;  %v3107_v8 = vadd.f32 %v5384_v62, %v7467_v20  ;;  %v5087_v22 = vpop.f32.mrb[4].mxu1 }
 0x50c   :  { %v3144_v13 = vmax.f32 %v3108_v2, 0.0  ;;  %v5385_v60 = vadd.f32 %v5087_v22, %v7869_v33  ;;  %v2903_v41 = vpop.f32.mrb[5].mxu1 }
 0x50d   :  { %v3143_v11 = vmax.f32 %v3107_v8, 0.0  ;;  %v5386_v50 = vadd.f32 %v2903_v41, %v7870_v10 }
 0x50e   :  { %3181 = vst.msk [vmem:[#allocation3 + $0x18] sm:$0xff] %vm3177_vm14, %v3144_v13  ;;  %v3110_v0 = vadd.f32 %v5385_v60, %v7467_v20  ;;  %v3854_v13 = vld [vmem:[%s7853_s5 + $0x88] sm:$0xff] }
 0x50f   :  { %3180 = vst.msk [vmem:[#allocation3 + $0x10] sm:$0xff] %vm3177_vm14, %v3143_v11  ;;  %v3109_v21 = vadd.f32 %v5386_v50, %v7467_v20  ;;  %v5090_v44 = vpop.f32.mrb[6].mxu1  ;;  %v3837_v11 = vld [vmem:[%s7853_s5] sm:$0xff] }
 0x510   :  { %v3146_v29 = vmax.f32 %v3110_v0, 0.0  ;;  %v5387_v40 = vadd.f32 %v5090_v44, %v7871_v46  ;;  %v2913_v39 = vpop.f32.mrb[7].mxu1 }
 0x511   :  { %v3145_v31 = vmax.f32 %v3109_v21, 0.0  ;;  %v5388_v34 = vadd.f32 %v2913_v39, %v7872_v18 }
 0x512   :  { %3183 = vst.msk [vmem:[#allocation3 + $0x28] sm:$0xff] %vm3177_vm14, %v3146_v29  ;;  %v3112_v52 = vadd.f32 %v5387_v40, %v7467_v20  ;;  %v3216_v17 = vld [vmem:[#allocation3] sm:$0xff] }
 0x513   :  { %3182 = vst.msk [vmem:[#allocation3 + $0x20] sm:$0xff] %vm3177_vm14, %v3145_v31  ;;  %v3111_v61 = vadd.f32 %v5388_v34, %v7467_v20  ;;  %v5093_v27 = vpop.f32.mrb[8].mxu1  ;;  %v3252_v42 = vld [vmem:[#allocation3 + $0x1] sm:$0xff] }
 0x514   :  { %v3148_v43 = vmax.f32 %v3112_v52, 0.0  ;;  %v5389_v5 = vadd.f32 %v5093_v27, %v7259_v48  ;;  %v2923_v51 = vpop.f32.mrb[9].mxu1  ;;  %v3288_v62 = vmax.f32 %v3216_v17, %v3252_v42 }
 0x515   :  { %v3147_v53 = vmax.f32 %v3111_v61, 0.0  ;;  %v5390_v35 = vadd.f32 %v2923_v51, %v7267_v7  ;;  %v3853_v7 = vld [vmem:[%s7853_s5 + $0x80] sm:$0xff]  ;;  %v3219_v10 = vld [vmem:[#allocation3 + $0x18] sm:$0xff] }
 0x516   :  { %3185 = vst.msk [vmem:[#allocation3 + $0x38] sm:$0xff] %vm3177_vm14, %v3148_v43  ;;  %v3114_v3 = vadd.f32 %v5389_v5, %v7467_v20  ;;  %v3324_v19 = vld [vmem:[#allocation3 + $0xc] sm:$0xff]  ;;  %v5317_v41 = vpack.c.bf16 %v3854_v13, %v3853_v7 }
 0x517   :  { %v3360_v6 = vld [vmem:[#allocation3 + $0xd] sm:$0xff]  ;;  %3184 = vst.msk [vmem:[#allocation3 + $0x30] sm:$0xff] %vm3177_vm14, %v3147_v53  ;;  %v3113_v12 = vadd.f32 %v5390_v35, %v7467_v20  ;;  %v5096_v38 = vpop.f32.mrb[10].mxu1 }
 0x518   :  { %v3396_v2 = vmax.f32 %v3324_v19, %v3360_v6  ;;  %v3150_v48 = vmax.f32 %v3114_v3, 0.0  ;;  %v5391_v8 = vadd.f32 %v5096_v38, %v7295_v37  ;;  %v2933_v22 = vpop.f32.mrb[11].mxu1  ;;  %v3838_v37 = vld [vmem:[%s7853_s5 + $0x8] sm:$0xff]  ;;  %5318 = vmatprep.subr.bf16.mxu0 %v5317_v41 }
 0x519   :  { %v3149_v33 = vmax.f32 %v3113_v12, 0.0  ;;  %v5392_v60 = vadd.f32 %v2933_v22, %v7297_v54  ;;  %v5319_v44 = vpack.c.bf16 %v3838_v37, %v3837_v11  ;;  %v3856_v12 = vld [vmem:[%s7853_s5 + $0x98] sm:$0xff] }
 0x51a   :  { %v3255_v50 = vld [vmem:[#allocation3 + $0x19] sm:$0xff]  ;;  %3187 = vst.msk [vmem:[#allocation3 + $0x48] sm:$0xff] %vm3177_vm14, %v3150_v48  ;;  %v3116_v0 = vadd.f32 %v5391_v8, %v7467_v20  ;;  %v3432_v21 = vmax.f32 %v3288_v62, %v3396_v2  ;;  %v3327_v46 = vld [vmem:[#allocation3 + $0x24] sm:$0xff] }
 0x51b   :  { %v3291_v29 = vmax.f32 %v3219_v10, %v3255_v50  ;;  %3186 = vst.msk [vmem:[#allocation3 + $0x40] sm:$0xff] %vm3177_vm14, %v3149_v33  ;;  %v3115_v54 = vadd.f32 %v5392_v60, %v7467_v20  ;;  %v5099_v40 = vpop.f32.mrb[12].mxu1  ;;  %v3363_v39 = vld [vmem:[#allocation3 + $0x25] sm:$0xff]  ;;  %5320 = vmatpush3.bf16.msra.mxu0 %v5319_v44 }
 0x51c   :  { %v3152_v31 = vmax.f32 %v3116_v0, 0.0  ;;  %v5393_v18 = vadd.f32 %v5099_v40, %v7307_v25  ;;  %v2943_v34 = vpop.f32.mrb[13].mxu1  ;;  %3468 = vst.msk [vmem:[#allocation4] sm:$0xff] %vm3177_vm14, %v3432_v21  ;;  %v3399_v52 = vmax.f32 %v3327_v46, %v3363_v39  ;;  %v7873_v0 = vld [vmem:[#allocation17_spill] sm:$0xff] }
 0x51d   :  { %v3151_v61 = vmax.f32 %v3115_v54, 0.0  ;;  %v5394_v27 = vadd.f32 %v2943_v34, %v7309_v1  ;;  %v3855_v1 = vld [vmem:[%s7853_s5 + $0x90] sm:$0xff] }
 0x51e   :  { %3189 = vst.msk [vmem:[#allocation3 + $0x58] sm:$0xff] %vm3177_vm14, %v3152_v31  ;;  %v3118_v43 = vadd.f32 %v5393_v18, %v7467_v20  ;;  %v3435_v17 = vmax.f32 %v3291_v29, %v3399_v52  ;;  %v3222_v42 = vld [vmem:[#allocation3 + $0x30] sm:$0xff] }
 0x51f   :  { %3188 = vst.msk [vmem:[#allocation3 + $0x50] sm:$0xff] %vm3177_vm14, %v3151_v61  ;;  %v3117_v5 = vadd.f32 %v5394_v27, %v7467_v20  ;;  %v5102_v51 = vpop.f32.mrb[14].mxu1  ;;  %v3258_v3 = vld [vmem:[#allocation3 + $0x31] sm:$0xff] }
 0x520   :  { %v3154_v25 = vmax.f32 %v3118_v43, 0.0  ;;  %v5395_v53 = vadd.f32 %v5102_v51, %v7319_v58  ;;  %v2953_v35 = vpop.f32.mrb[15].mxu1  ;;  %3471 = vst.msk [vmem:[#allocation4 + $0x18] sm:$0xff] %vm3177_vm14, %v3435_v17  ;;  %v5321_v58 = vpack.c.bf16 %v3856_v12, %v3855_v1  ;;  %v3294_v8 = vmax.f32 %v3222_v42, %v3258_v3 }
 0x521   :  { %v3153_v19 = vmax.f32 %v3117_v5, 0.0  ;;  %v5396_v6 = vadd.f32 %v2953_v35, %v7321_v26  ;;  %v3225_v60 = vld [vmem:[#allocation3 + $0x48] sm:$0xff] }
 0x522   :  { %3191 = vst.msk [vmem:[#allocation3 + $0x68] sm:$0xff] %vm3177_vm14, %v3154_v25  ;;  %v3120_v38 = vadd.f32 %v5395_v53, %v7467_v20  ;;  %v3330_v62 = vld [vmem:[#allocation3 + $0x3c] sm:$0xff]  ;;  %5322 = vmatprep.subr.bf16.mxu0 %v5321_v58 }
 0x523   :  { %v3366_v2 = vld [vmem:[#allocation3 + $0x3d] sm:$0xff]  ;;  %3190 = vst.msk [vmem:[#allocation3 + $0x60] sm:$0xff] %vm3177_vm14, %v3153_v19  ;;  %v3119_v26 = vadd.f32 %v5396_v6, %v7467_v20  ;;  %v5105_v48 = vpop.f32.mrb[16].mxu1  ;;  %v3504_v37 = vld [vmem:[#allocation4] sm:$0x1] }
 0x524   :  { %v3402_v22 = vmax.f32 %v3330_v62, %v3366_v2  ;;  %v3156_v7 = vmax.f32 %v3120_v38, 0.0  ;;  %v5397_v13 = vadd.f32 %v5105_v48, %v7342_v23  ;;  %v4152_v33 = vld.sshfl [vmem:[#allocation4 + $0x2] sm:$0x1 pattern:$0x76325410]  ;;  %v2963_v11 = vpop.f32.mrb[17].mxu1 }
 0x525   :  { %v3155_v41 = vmax.f32 %v3119_v26, 0.0  ;;  %3516 = vrot.lane.b32.xlu0 %v4152_v33, %s5571_s16  ;;  %v5398_v21 = vadd.f32 %v2963_v11, %v7873_v0  ;;  %3506 = vst.msk [vmem:[#allocation5] sm:$0x1] %vm3505_vm15, %v3504_v37 }
 0x526   :  { %v3261_v10 = vld [vmem:[#allocation3 + $0x49] sm:$0xff]  ;;  %3193 = vst.msk [vmem:[#allocation3 + $0x78] sm:$0xff] %vm3177_vm14, %v3156_v7  ;;  %v3122_v50 = vadd.f32 %v5397_v13, %v7467_v20  ;;  %v3438_v44 = vmax.f32 %v3294_v8, %v3402_v22  ;;  %v3333_v23 = vld [vmem:[#allocation3 + $0x54] sm:$0xff] }
 0x527   :  { %v3297_v29 = vmax.f32 %v3225_v60, %v3261_v10  ;;  %3192 = vst.msk [vmem:[#allocation3 + $0x70] sm:$0xff] %vm3177_vm14, %v3155_v41  ;;  %v5108_v46 = vpop.f32.mrb[18].mxu1  ;;  %v3369_v54 = vld [vmem:[#allocation3 + $0x55] sm:$0xff]  ;;  %v3121_v39 = vadd.f32 %v5398_v21, %v7467_v20  ;;  %v3840_v22 = vld [vmem:[%s7853_s5 + $0x18] sm:$0xff] }
 0x528   :  { %v3158_v40 = vmax.f32 %v3122_v50, 0.0  ;;  %v5399_v31 = vadd.f32 %v5108_v46, %v7373_v49  ;;  %v4153_v18 = vld.sshfl [vmem:[#allocation4 + $0x4] sm:$0x1 pattern:$0x76325410]  ;;  %3474 = vst.msk [vmem:[#allocation4 + $0x30] sm:$0xff] %vm3177_vm14, %v3438_v44  ;;  %v3405_v34 = vmax.f32 %v3333_v23, %v3369_v54 }
 0x529   :  { %3530 = vrot.lane.b32.xlu0 %v4153_v18, %s5572_s25  ;;  %v4155_v52 = vld.sshfl [vmem:[#allocation4 + $0x1a] sm:$0x1 pattern:$0x76325410]  ;;  %v2973_v61 = vpop.f32.mrb[19].mxu1  ;;  %v3157_v27 = vmax.f32 %v3121_v39, 0.0 }
 0x52a   :  { %3195 = vst.msk [vmem:[#allocation3 + $0x88] sm:$0xff] %vm3177_vm14, %v3158_v40  ;;  %v3124_v43 = vadd.f32 %v5399_v31, %v7467_v20  ;;  %3560 = vrot.lane.b32.xlu1 %v4155_v52, %s5571_s16  ;;  %v5400_v5 = vadd.f32 %v2973_v61, %v7381_v30  ;;  %v3441_v17 = vmax.f32 %v3297_v29, %v3405_v34  ;;  %v4154_v53 = vld.sshfl [vmem:[#allocation4 + $0x6] sm:$0x1 pattern:$0x76325410] }
 0x52b   :  { %v5111_v51 = vpop.f32.mrb[20].mxu1  ;;  %3194 = vst.msk [vmem:[#allocation3 + $0x80] sm:$0xff] %vm3177_vm14, %v3157_v27  ;;  %v4156_v35 = vld.sshfl [vmem:[#allocation4 + $0x1c] sm:$0x1 pattern:$0x76325410] }
 0x52c   :  { %v3160_v49 = vmax.f32 %v3124_v43, 0.0  ;;  %v3123_v42 = vadd.f32 %v5400_v5, %v7467_v20  ;;  %v5401_v25 = vadd.f32 %v5111_v51, %v7391_v28  ;;  %v2983_v3 = vpop.f32.mrb[21].mxu1  ;;  %3477 = vst.msk [vmem:[#allocation4 + $0x48] sm:$0xff] %vm3177_vm14, %v3441_v17  ;;  %v3839_v28 = vld [vmem:[%s7853_s5 + $0x10] sm:$0xff]  ;;  %v3549_v39 = vld [vmem:[#allocation4 + $0x18] sm:$0x1] }
 0x52d   :  { %3544 = vrot.lane.b32.xlu0 %v4154_v53, %s5568_s0  ;;  %v5402_v6 = vadd.f32 %v2983_v3, %v7393_v24  ;;  %v4157_v62 = vld.sshfl [vmem:[#allocation4 + $0x1e] sm:$0x1 pattern:$0x76325410]  ;;  %v5323_v13 = vpack.c.bf16 %v3840_v22, %v3839_v28  ;;  %3550 = vst.msk [vmem:[#allocation5 + $0x2] sm:$0x1] %vm3505_vm15, %v3549_v39 }
 0x52e   :  { %3197 = vst.msk [vmem:[#allocation3 + $0x98] sm:$0xff] %vm3177_vm14, %v3160_v49  ;;  %v3159_v19 = vmax.f32 %v3123_v42, 0.0  ;;  %v3126_v30 = vadd.f32 %v5401_v25, %v7467_v20  ;;  %3573 = vrot.lane.b32.xlu1 %v4156_v35, %s5572_s25  ;;  %v3842_v22 = vld [vmem:[%s7853_s5 + $0x28] sm:$0xff] }
 0x52f   :  { %v5114_v1 = vpop.f32.mrb[22].mxu1  ;;  %v3125_v38 = vadd.f32 %v5402_v6, %v7467_v20  ;;  %v4158_v2 = vld.sshfl [vmem:[#allocation4 + $0x32] sm:$0x1 pattern:$0x76325410]  ;;  %5324 = vmatpush3.bf16.msra.mxu0 %v5323_v13 }
 0x530   :  { %3196 = vst.msk [vmem:[#allocation3 + $0x90] sm:$0xff] %vm3177_vm14, %v3159_v19  ;;  %v3162_v12 = vmax.f32 %v3126_v30, 0.0  ;;  %v5403_v58 = vadd.f32 %v5114_v1, %v7403_v47  ;;  %v2993_v26 = vpop.f32.mrb[23].mxu1  ;;  %v3590_v34 = vld [vmem:[#allocation4 + $0x30] sm:$0x1]  ;;  %v3858_v19 = vld [vmem:[%s7853_s5 + $0xa8] sm:$0xff] }
 0x531   :  { %v3161_v48 = vmax.f32 %v3125_v38, 0.0  ;;  %3601 = vrot.lane.b32.xlu0 %v4158_v2, %s5571_s16  ;;  %v5404_v8 = vadd.f32 %v2993_v26, %v7405_v14  ;;  %v4159_v47 = vld.sshfl [vmem:[#allocation4 + $0x34] sm:$0x1 pattern:$0x76325410] }
 0x532   :  { %3199 = vst.msk [vmem:[#allocation3 + $0xa8] sm:$0xff] %vm3177_vm14, %v3162_v12  ;;  %v3128_v24 = vadd.f32 %v5403_v58, %v7467_v20  ;;  %3586 = vrot.lane.b32.xlu1 %v4157_v62, %s5568_s0  ;;  %v4160_v29 = vld.sshfl [vmem:[#allocation4 + $0x36] sm:$0x1 pattern:$0x76325410]  ;;  %v3841_v12 = vld [vmem:[%s7853_s5 + $0x20] sm:$0xff] }
 0x533   :  { %v5117_v7 = vpop.f32.mrb[24].mxu1  ;;  %3198 = vst.msk [vmem:[#allocation3 + $0xa0] sm:$0xff] %vm3177_vm14, %v3161_v48  ;;  %v3127_v60 = vadd.f32 %v5404_v8, %v7467_v20  ;;  %v4161_v37 = vld.sshfl [vmem:[#allocation4 + $0x4a] sm:$0x1 pattern:$0x76325410] }
 0x534   :  { %v3164_v33 = vmax.f32 %v3128_v24, 0.0  ;;  %v3003_v41 = vpop.f32.mrb[25].mxu1  ;;  %v5405_v11 = vadd.f32 %v5117_v7, %v7413_v45  ;;  %v4162_v18 = vld.sshfl [vmem:[#allocation4 + $0x4c] sm:$0x1 pattern:$0x76325410] }
 0x535   :  { %v5406_v10 = vadd.f32 %v3003_v41, %v7415_v59  ;;  %v3163_v14 = vmax.f32 %v3127_v60, 0.0  ;;  %3614 = vrot.lane.b32.xlu0 %v4159_v47, %s5572_s25  ;;  %3591 = vst.msk [vmem:[#allocation5 + $0x4] sm:$0x1] %vm3505_vm15, %v3590_v34  ;;  %v3631_v53 = vld [vmem:[#allocation4 + $0x48] sm:$0x1] }
 0x536   :  { %3201 = vst.msk [vmem:[#allocation3 + $0xb8] sm:$0xff] %vm3177_vm14, %v3164_v33  ;;  %3642 = vrot.lane.b32.xlu1 %v4161_v37, %s5571_s16  ;;  %v3130_v0 = vadd.f32 %v5405_v11, %v7467_v20  ;;  %v4163_v3 = vld.sshfl [vmem:[#allocation4 + $0x4e] sm:$0x1 pattern:$0x76325410]  ;;  %v5327_v33 = vpack.c.bf16 %v3842_v22, %v3841_v12 }
 0x537   :  { %v3234_v50 = vld [vmem:[#allocation3 + $0x90] sm:$0xff]  ;;  %v3129_v21 = vadd.f32 %v5406_v10, %v7467_v20  ;;  %v5120_v44 = vpop.f32.mrb[26].mxu1  ;;  %3200 = vst.msk [vmem:[#allocation3 + $0xb0] sm:$0xff] %vm3177_vm14, %v3163_v14 }
 0x538   :  { %v5407_v45 = vadd.f32 %v5120_v44, %v7417_v36  ;;  %v3013_v59 = vpop.f32.mrb[27].mxu1  ;;  %v3270_v23 = vld [vmem:[#allocation3 + $0x91] sm:$0xff]  ;;  %v3166_v46 = vmax.f32 %v3130_v0, 0.0  ;;  %3632 = vst.msk [vmem:[#allocation5 + $0x6] sm:$0x1] %vm3505_vm15, %v3631_v53  ;;  %v3843_v44 = vld [vmem:[%s7853_s5 + $0x30] sm:$0xff] }
 0x539   :  { %v3165_v54 = vmax.f32 %v3129_v21, 0.0  ;;  %v5408_v40 = vadd.f32 %v3013_v59, %v7419_v63  ;;  %3627 = vrot.lane.b32.xlu0 %v4160_v29, %s5568_s0  ;;  %v3857_v63 = vld [vmem:[%s7853_s5 + $0xa0] sm:$0xff]  ;;  %v3306_v61 = vmax.f32 %v3234_v50, %v3270_v23  ;;  %v3237_v35 = vld [vmem:[#allocation3 + $0xa8] sm:$0xff] }
 0x53a   :  { %v3132_v31 = vadd.f32 %v5407_v45, %v7467_v20  ;;  %3203 = vst.msk [vmem:[#allocation3 + $0xc8] sm:$0xff] %vm3177_vm14, %v3166_v46  ;;  %3655 = vrot.lane.b32.xlu1 %v4162_v18, %s5572_s25  ;;  %v3342_v27 = vld [vmem:[#allocation3 + $0x9c] sm:$0xff]  ;;  %v5325_v1 = vpack.c.bf16 %v3858_v19, %v3857_v63  ;;  %v3860_v50 = vld [vmem:[%s7853_s5 + $0xb8] sm:$0xff] }
 0x53b   :  { %3202 = vst.msk [vmem:[#allocation3 + $0xc0] sm:$0xff] %vm3177_vm14, %v3165_v54  ;;  %v3131_v36 = vadd.f32 %v5408_v40, %v7467_v20  ;;  %v5123_v52 = vpop.f32.mrb[28].mxu1  ;;  %v3378_v43 = vld [vmem:[#allocation3 + $0x9d] sm:$0xff]  ;;  %v3844_v29 = vld [vmem:[%s7853_s5 + $0x38] sm:$0xff] }
 0x53c   :  { %v3168_v5 = vmax.f32 %v3132_v31, 0.0  ;;  %v3023_v51 = vpop.f32.mrb[29].mxu1  ;;  %v3414_v17 = vmax.f32 %v3342_v27, %v3378_v43  ;;  %v5409_v42 = vadd.f32 %v5123_v52, %v7423_v9  ;;  %5326 = vmatprep.subr.bf16.mxu0 %v5325_v1  ;;  %v5331_v59 = vpack.c.bf16 %v3844_v29, %v3843_v44  ;;  %v3862_v19 = vld [vmem:[%s7853_s5 + $0xc8] sm:$0xff]  ;;  %v3851_v44 = vld [vmem:[%s7853_s5 + $0x70] sm:$0xff]  ;;  %v3852_v29 = vld [vmem:[%s7853_s5 + $0x78] sm:$0xff] }
 0x53d   :  { %v3167_v49 = vmax.f32 %v3131_v36, 0.0  ;;  %v5410_v25 = vadd.f32 %v3023_v51, %v7425_v56  ;;  %5328 = vmatpush3.bf16.msra.mxu0 %v5327_v33  ;;  %v3846_v1 = vld [vmem:[%s7853_s5 + $0x48] sm:$0xff] }
 0x53e   :  { %3205 = vst.msk [vmem:[#allocation3 + $0xd8] sm:$0xff] %vm3177_vm14, %v3168_v5  ;;  %v3273_v30 = vld [vmem:[#allocation3 + $0xa9] sm:$0xff]  ;;  %v3134_v6 = vadd.f32 %v5409_v42, %v7467_v20  ;;  %3668 = vrot.lane.b32.xlu1 %v4163_v3, %s5568_s0  ;;  %v3450_v28 = vmax.f32 %v3306_v61, %v3414_v17  ;;  %v3345_v58 = vld [vmem:[#allocation3 + $0xb4] sm:$0xff] }
 0x53f   :  { %3204 = vst.msk [vmem:[#allocation3 + $0xd0] sm:$0xff] %vm3177_vm14, %v3167_v49  ;;  %v3133_v9 = vadd.f32 %v5410_v25, %v7467_v20  ;;  %v5126_v56 = vpop.f32.mrb[30].mxu1  ;;  %v3309_v38 = vmax.f32 %v3237_v35, %v3273_v30  ;;  %v3381_v26 = vld [vmem:[#allocation3 + $0xb5] sm:$0xff] }
 0x540   :  { %v5411_v62 = vadd.f32 %v5126_v56, %v7435_v16  ;;  %v3033_v2 = vpop.f32.mrb[31].mxu1  ;;  %v3170_v48 = vmax.f32 %v3134_v6, 0.0  ;;  %3486 = vst.msk [vmem:[#allocation4 + $0x90] sm:$0xff] %vm3177_vm14, %v3450_v28  ;;  %v3417_v7 = vmax.f32 %v3345_v58, %v3381_v26  ;;  %v3859_v16 = vld [vmem:[%s7853_s5 + $0xb0] sm:$0xff]  ;;  %v3845_v56 = vld [vmem:[%s7853_s5 + $0x40] sm:$0xff] }
 0x541   :  { %v3169_v24 = vmax.f32 %v3133_v9, 0.0  ;;  %v5412_v8 = vadd.f32 %v3033_v2, %v7437_v32  ;;  %v5329_v45 = vpack.c.bf16 %v3860_v50, %v3859_v16  ;;  %v5335_v12 = vpack.c.bf16 %v3846_v1, %v3845_v56  ;;  %v3863_v26 = vld [vmem:[%s7853_s5 + $0xd0] sm:$0xff]  ;;  %v3865_v16 = vld [vmem:[%s7853_s5 + $0xe0] sm:$0xff] }
 0x542   :  { %v3240_v47 = vld [vmem:[#allocation3 + $0xc0] sm:$0xff]  ;;  %v3136_v13 = vadd.f32 %v5411_v62, %v7467_v20  ;;  %3207 = vst.msk [vmem:[#allocation3 + $0xe8] sm:$0xff] %vm3177_vm14, %v3170_v48  ;;  %v3453_v14 = vmax.f32 %v3309_v38, %v3417_v7  ;;  %v3848_v7 = vld [vmem:[%s7853_s5 + $0x58] sm:$0xff]  ;;  %v3869_v1 = vld [vmem:[%s7853_s5 + $0x100] sm:$0xff] }
 0x543   :  { %v3276_v60 = vld [vmem:[#allocation3 + $0xc1] sm:$0xff]  ;;  %3206 = vst.msk [vmem:[#allocation3 + $0xe0] sm:$0xff] %vm3177_vm14, %v3169_v24  ;;  %v3135_v32 = vadd.f32 %v5412_v8, %v7467_v20  ;;  %v5129_v41 = vpop.f32.mrb[32].mxu1  ;;  %5330 = vmatprep.subr.bf16.mxu0 %v5329_v45  ;;  %v5347_v45 = vpack.c.bf16 %v3852_v29, %v3851_v44  ;;  %v3894_v44 = vld [vmem:[%s7853_s5 + $0x1c8] sm:$0xff] }
 0x544   :  { %v3172_v11 = vmax.f32 %v3136_v13, 0.0  ;;  %v5413_v37 = vadd.f32 %v5129_v41, %v7447_v4  ;;  %v3043_v10 = vpop.f32.mrb[33].mxu1  ;;  %3489 = vst.msk [vmem:[#allocation4 + $0xa8] sm:$0xff] %vm3177_vm14, %v3453_v14  ;;  %v3312_v23 = vmax.f32 %v3240_v47, %v3276_v60  ;;  %5332 = vmatpush3.bf16.msra.mxu0 %v5331_v59  ;;  %v3864_v24 = vld [vmem:[%s7853_s5 + $0xd8] sm:$0xff]  ;;  %v3847_v8 = vld [vmem:[%s7853_s5 + $0x50] sm:$0xff]  ;;  %v3866_v41 = vld [vmem:[%s7853_s5 + $0xe8] sm:$0xff] }
 0x545   :  { %v3171_v0 = vmax.f32 %v3135_v32, 0.0  ;;  %v5414_v21 = vadd.f32 %v3043_v10, %v7449_v55  ;;  %v3243_v36 = vld [vmem:[#allocation3 + $0xd8] sm:$0xff]  ;;  %v5337_v22 = vpack.c.bf16 %v3864_v24, %v3863_v26  ;;  %v5339_v13 = vpack.c.bf16 %v3848_v7, %v3847_v8  ;;  %v3867_v50 = vld [vmem:[%s7853_s5 + $0xf0] sm:$0xff]  ;;  %v3885_v59 = vld [vmem:[%s7853_s5 + $0x180] sm:$0xff] }
 0x546   :  { %3209 = vst.msk [vmem:[#allocation3 + $0xf8] sm:$0xff] %vm3177_vm14, %v3172_v11  ;;  %v3138_v4 = vadd.f32 %v5413_v37, %v7467_v20  ;;  %v3348_v46 = vld [vmem:[#allocation3 + $0xcc] sm:$0xff]  ;;  %v3850_v37 = vld [vmem:[%s7853_s5 + $0x68] sm:$0xff]  ;;  %v5341_v10 = vpack.c.bf16 %v3866_v41, %v3865_v16 }
 0x547   :  { %v3384_v54 = vld [vmem:[#allocation3 + $0xcd] sm:$0xff]  ;;  %3208 = vst.msk [vmem:[#allocation3 + $0xf0] sm:$0xff] %vm3177_vm14, %v3171_v0  ;;  %v5132_v55 = vpop.f32.mrb[34].mxu1  ;;  %v3137_v31 = vadd.f32 %v5414_v21, %v7467_v20  ;;  %v3672_v35 = vld [vmem:[#allocation4 + $0x90] sm:$0x1]  ;;  %v3874_v41 = vld [vmem:[%s7853_s5 + $0x128] sm:$0xff] }
 0x548   :  { %v3420_v40 = vmax.f32 %v3348_v46, %v3384_v54  ;;  %v3174_v39 = vmax.f32 %v3138_v4, 0.0  ;;  %v4164_v18 = vld.sshfl [vmem:[#allocation4 + $0x92] sm:$0x1 pattern:$0x76325410]  ;;  %v5415_v34 = vadd.f32 %v5132_v55, %v7460_v57  ;;  %v3053_v52 = vpop.f32.mrb[35].mxu1 }
 0x549   :  { %3683 = vrot.lane.b32.xlu0 %v4164_v18, %s5571_s16  ;;  %v3173_v61 = vmax.f32 %v3137_v31, 0.0  ;;  %v5416_v43 = vadd.f32 %v3053_v52, %v7462_v15  ;;  %v4165_v5 = vld.sshfl [vmem:[#allocation4 + $0x94] sm:$0x1 pattern:$0x76325410]  ;;  %v3861_v57 = vld [vmem:[%s7853_s5 + $0xc0] sm:$0xff] }
 0x54a   :  { %v3279_v63 = vld [vmem:[#allocation3 + $0xd9] sm:$0xff]  ;;  %3211 = vst.msk [vmem:[#allocation3 + $0x108] sm:$0xff] %vm3177_vm14, %v3174_v39  ;;  %v3140_v27 = vadd.f32 %v5415_v34, %v7467_v20  ;;  %v3456_v51 = vmax.f32 %v3312_v23, %v3420_v40  ;;  %v3351_v49 = vld [vmem:[#allocation3 + $0xe4] sm:$0xff]  ;;  %v5333_v6 = vpack.c.bf16 %v3862_v19, %v3861_v57  ;;  %v3849_v11 = vld [vmem:[%s7853_s5 + $0x60] sm:$0xff] }
 0x54b   :  { %v3315_v17 = vmax.f32 %v3243_v36, %v3279_v63  ;;  %v3387_v42 = vld [vmem:[#allocation3 + $0xe5] sm:$0xff]  ;;  %3210 = vst.msk [vmem:[#allocation3 + $0x100] sm:$0xff] %vm3177_vm14, %v3173_v61  ;;  %v3139_v53 = vadd.f32 %v5416_v43, %v7467_v20  ;;  %v4167_v15 = vld.sshfl [vmem:[#allocation4 + $0xaa] sm:$0x1 pattern:$0x76325410]  ;;  %v5343_v14 = vpack.c.bf16 %v3850_v37, %v3849_v11 }
 0x54c   :  { %v3176_v25 = vmax.f32 %v3140_v27, 0.0  ;;  %3492 = vst.msk [vmem:[#allocation4 + $0xc0] sm:$0xff] %vm3177_vm14, %v3456_v51  ;;  %v3423_v3 = vmax.f32 %v3351_v49, %v3387_v42  ;;  %3724 = vrot.lane.b32.xlu1 %v4167_v15, %s5571_s16  ;;  %v4166_v9 = vld.sshfl [vmem:[#allocation4 + $0x96] sm:$0x1 pattern:$0x76325410]  ;;  %5334 = vmatprep.subr.bf16.mxu0 %v5333_v6 }
 0x54d   :  { %3696 = vrot.lane.b32.xlu0 %v4165_v5, %s5572_s25  ;;  %3673 = vst.msk [vmem:[#allocation5 + $0x1] sm:$0x1] %vm3505_vm15, %v3672_v35  ;;  %v3175_v30 = vmax.f32 %v3139_v53, 0.0  ;;  %v3713_v38 = vld [vmem:[#allocation4 + $0xa8] sm:$0x1]  ;;  %5336 = vmatpush3.bf16.msra.mxu0 %v5335_v12  ;;  %v3868_v0 = vld [vmem:[%s7853_s5 + $0xf8] sm:$0xff] }
 0x54e   :  { %3213 = vst.msk [vmem:[#allocation3 + $0x118] sm:$0xff] %vm3177_vm14, %v3176_v25  ;;  %v3459_v20 = vmax.f32 %v3315_v17, %v3423_v3  ;;  %v4168_v28 = vld.sshfl [vmem:[#allocation4 + $0xac] sm:$0x1 pattern:$0x76325410]  ;;  %5338 = vmatprep.subr.bf16.mxu0 %v5337_v22  ;;  %v5345_v21 = vpack.c.bf16 %v3868_v0, %v3867_v50  ;;  %v3871_v22 = vld [vmem:[%s7853_s5 + $0x110] sm:$0xff] }
 0x54f   :  { %3212 = vst.msk [vmem:[#allocation3 + $0x110] sm:$0xff] %vm3177_vm14, %v3175_v30  ;;  %v4169_v58 = vld.sshfl [vmem:[#allocation4 + $0xae] sm:$0x1 pattern:$0x76325410]  ;;  %v3913_v30 = vlaneseq  ;;  %v3872_v7 = vld [vmem:[%s7853_s5 + $0x118] sm:$0xff] }
 0x550   :  { %3495 = vst.msk [vmem:[#allocation4 + $0xd8] sm:$0xff] %vm3177_vm14, %v3459_v20  ;;  %3737 = vrot.lane.b32.xlu1 %v4168_v28, %s5572_s25  ;;  %v3886_v23 = vld [vmem:[%s7853_s5 + $0x188] sm:$0xff]  ;;  %v5573_v15 = vmov 1983009808   ;;  %v5355_v16 = vpack.c.bf16 %v3872_v7, %v3871_v22  ;;  %v3891_v11 = vld [vmem:[%s7853_s5 + $0x1b0] sm:$0xff]  ;;  %v3892_v37 = vld [vmem:[%s7853_s5 + $0x1b8] sm:$0xff] }
 0x551   :  { %3709 = vrot.lane.b32.xlu0 %v4166_v9, %s5568_s0  ;;  %3714 = vst.msk [vmem:[#allocation5 + $0x3] sm:$0x1] %vm3505_vm15, %v3713_v38  ;;  %5340 = vmatpush3.bf16.msra.mxu0 %v5339_v13  ;;  %v5349_v46 = vpack.c.bf16 %v3886_v23, %v3885_v59  ;;  %v3911_v19 = vunpack.c.l.s4 %v5573_v15  ;;  %v3914_v9 = vshrl.u32 %v3913_v30, 7  ;;  %v3870_v12 = vld [vmem:[%s7853_s5 + $0x108] sm:$0xff]  ;;  %v3889_v13 = vld [vmem:[%s7853_s5 + $0x1a0] sm:$0xff]  ;;  %v3875_v50 = vld [vmem:[%s7853_s5 + $0x130] sm:$0xff] }
 0x552   :  { %5342 = vmatprep.subr.bf16.mxu0 %v5341_v10  ;;  %v3876_v0 = vld [vmem:[%s7853_s5 + $0x138] sm:$0xff]  ;;  %v3878_v59 = vld [vmem:[%s7853_s5 + $0x148] sm:$0xff]  ;;  %v3895_v23 = vld [vmem:[%s7853_s5 + $0x1d0] sm:$0xff] }
 0x553   :  { %v4170_v62 = vld.sshfl [vmem:[#allocation4 + $0xc2] sm:$0x1 pattern:$0x76325410]  ;;  %v3754_v33 = vld [vmem:[#allocation4 + $0xc0] sm:$0x1]  ;;  %v3912_v20 = vunpack.c.0.s8 %v3911_v19  ;;  %v5363_v29 = vpack.c.bf16 %v3876_v0, %v3875_v50 }
 0x554   :  { %3750 = vrot.lane.b32.xlu1 %v4169_v58, %s5568_s0  ;;  %v4171_v2 = vld.sshfl [vmem:[#allocation4 + $0xc4] sm:$0x1 pattern:$0x76325410]  ;;  %3755 = vst.msk [vmem:[#allocation5 + $0x5] sm:$0x1] %vm3505_vm15, %v3754_v33 }
 0x555   :  { %3765 = vrot.lane.b32.xlu0 %v4170_v62, %s5571_s16  ;;  %v4172_v47 = vld.sshfl [vmem:[#allocation4 + $0xc6] sm:$0x1 pattern:$0x76325410]  ;;  %5344 = vmatpush3.bf16.msra.mxu0 %v5343_v14  ;;  %v3915_v56 = vsub.s32 %v3912_v20, %v3914_v9  ;;  %v3887_v62 = vld [vmem:[%s7853_s5 + $0x190] sm:$0xff]  ;;  %v3890_v33 = vld [vmem:[%s7853_s5 + $0x1a8] sm:$0xff]  ;;  %v5361_v14 = vpack.c.bf16 %v3892_v37, %v3891_v11 }
 0x556   :  { %5346 = vmatprep.subr.bf16.mxu0 %v5345_v21  ;;  %v3893_v21 = vld [vmem:[%s7853_s5 + $0x1c0] sm:$0xff] }
 0x557   :  { %v4173_v48 = vld.sshfl [vmem:[#allocation4 + $0xda] sm:$0x1 pattern:$0x76325410]  ;;  %v3795_v32 = vld [vmem:[#allocation4 + $0xd8] sm:$0x1] }
 0x558   :  { %3806 = vrot.lane.b32.xlu1 %v4173_v48, %s5571_s16  ;;  %v4174_v60 = vld.sshfl [vmem:[#allocation4 + $0xdc] sm:$0x1 pattern:$0x76325410]  ;;  %3796 = vst.msk [vmem:[#allocation5 + $0x7] sm:$0x1] %vm3505_vm15, %v3795_v32  ;;  %v5351_v48 = vpack.c.bf16 %v3870_v12, %v3869_v1 }
 0x559   :  { %3778 = vrot.lane.b32.xlu0 %v4171_v2, %s5572_s25  ;;  %v4175_v4 = vld.sshfl [vmem:[#allocation4 + $0xde] sm:$0x1 pattern:$0x76325410]  ;;  %5348 = vmatpush3.bf16.msra.mxu0 %v5347_v45  ;;  %v3873_v32 = vld [vmem:[%s7853_s5 + $0x120] sm:$0xff] }
 0x55a   :  { %5350 = vmatprep.subr.bf16.mxu0 %v5349_v46  ;;  %v3888_v2 = vld [vmem:[%s7853_s5 + $0x198] sm:$0xff]  ;;  %v5359_v10 = vpack.c.bf16 %v3874_v41, %v3873_v32  ;;  %v3877_v45 = vld [vmem:[%s7853_s5 + $0x140] sm:$0xff] }
 0x55b   :  { %v5353_v8 = vpack.c.bf16 %v3888_v2, %v3887_v62  ;;  %v3896_v46 = vld [vmem:[%s7853_s5 + $0x1d8] sm:$0xff] }
 0x55c   :  { %3819 = vrot.lane.b32.xlu1 %v4174_v60, %s5572_s25  ;;  %v5357_v60 = vpack.c.bf16 %v3890_v33, %v3889_v13 }
 0x55d   :  { %3791 = vrot.lane.b32.xlu0 %v4172_v47, %s5568_s0 }
 0x560   :  { %3832 = vrot.lane.b32.xlu1 %v4175_v4, %s5568_s0  ;;  %v5365_v4 = vpack.c.bf16 %v3894_v44, %v3893_v21 }
 0x597   :  { %v3517_v54 = vpop.permute.xlu0 %3516 }
 0x598   :  { %3520 = vst.msk [vmem:[#allocation5] sm:$0x1] %vm3519_vm0, %v3517_v54  ;;  %v5367_v54 = vpack.c.bf16 %v3878_v59, %v3877_v45 }
 0x59b   :  { %v3531_v55 = vpop.permute.xlu0 %3530 }
 0x59c   :  { %3534 = vst.msk [vmem:[#allocation5] sm:$0x1] %vm3533_vm1, %v3531_v55  ;;  %v3561_v40 = vpop.permute.xlu1 %3560  ;;  %v5369_v55 = vpack.c.bf16 %v3896_v46, %v3895_v23 }
 0x59d   :  { %3563 = vst.msk [vmem:[#allocation5 + $0x2] sm:$0x1] %vm3519_vm0, %v3561_v40  ;;  %v3879_v40 = vld [vmem:[%s7853_s5 + $0x150] sm:$0xff] }
 0x59f   :  { %v3545_v39 = vpop.permute.xlu0 %3544 }
 0x5a0   :  { %3548 = vst.msk [vmem:[#allocation5] sm:$0x1] %vm3547_vm2, %v3545_v39  ;;  %v3574_v31 = vpop.permute.xlu1 %3573  ;;  %v3880_v39 = vld [vmem:[%s7853_s5 + $0x158] sm:$0xff] }
 0x5a1   :  { %3576 = vst.msk [vmem:[#allocation5 + $0x2] sm:$0x1] %vm3533_vm1, %v3574_v31  ;;  %v3897_v31 = vld [vmem:[%s7853_s5 + $0x1e0] sm:$0xff] }
 0x5a3   :  { %v3602_v34 = vpop.permute.xlu0 %3601 }
 0x5a4   :  { %v3587_v18 = vpop.permute.xlu1 %3586  ;;  %3604 = vst.msk [vmem:[#allocation5 + $0x4] sm:$0x1] %vm3519_vm0, %v3602_v34  ;;  %v5371_v34 = vpack.c.bf16 %v3880_v39, %v3879_v40 }
 0x5a5   :  { %3589 = vst.msk [vmem:[#allocation5 + $0x2] sm:$0x1] %vm3547_vm2, %v3587_v18  ;;  %v3898_v18 = vld [vmem:[%s7853_s5 + $0x1e8] sm:$0xff] }
 0x5a7   :  { %v3615_v36 = vpop.permute.xlu0 %3614 }
 0x5a8   :  { %v3643_v52 = vpop.permute.xlu1 %3642  ;;  %3617 = vst.msk [vmem:[#allocation5 + $0x4] sm:$0x1] %vm3533_vm1, %v3615_v36  ;;  %v5373_v36 = vpack.c.bf16 %v3898_v18, %v3897_v31 }
 0x5a9   :  { %3645 = vst.msk [vmem:[#allocation5 + $0x6] sm:$0x1] %vm3519_vm0, %v3643_v52  ;;  %v3881_v52 = vld [vmem:[%s7853_s5 + $0x160] sm:$0xff] }
 0x5ab   :  { %v3628_v63 = vpop.permute.xlu0 %3627 }
 0x5ac   :  { %3630 = vst.msk [vmem:[#allocation5 + $0x4] sm:$0x1] %vm3547_vm2, %v3628_v63  ;;  %v3656_v61 = vpop.permute.xlu1 %3655  ;;  %v3882_v63 = vld [vmem:[%s7853_s5 + $0x168] sm:$0xff] }
 0x5ad   :  { %3658 = vst.msk [vmem:[#allocation5 + $0x6] sm:$0x1] %vm3533_vm1, %v3656_v61  ;;  %v3899_v61 = vld [vmem:[%s7853_s5 + $0x1f0] sm:$0xff] }
 0x5b0   :  { %v3669_v27 = vpop.permute.xlu1 %3668 }
 0x5b1   :  { %3671 = vst.msk [vmem:[#allocation5 + $0x6] sm:$0x1] %vm3547_vm2, %v3669_v27  ;;  %v3900_v27 = vld [vmem:[%s7853_s5 + $0x1f8] sm:$0xff] }
 0x5bb   :  { %v3684_v43 = vpop.permute.xlu0 %3683 }
 0x5bc   :  { %3686 = vst.msk [vmem:[#allocation5 + $0x1] sm:$0x1] %vm3519_vm0, %v3684_v43  ;;  %v5375_v43 = vpack.c.bf16 %v3882_v63, %v3881_v52 }
 0x5be   :  { %v3725_v51 = vpop.permute.xlu1 %3724 }
 0x5bf   :  { %v3697_v5 = vpop.permute.xlu0 %3696  ;;  %3727 = vst.msk [vmem:[#allocation5 + $0x3] sm:$0x1] %vm3519_vm0, %v3725_v51  ;;  %v3883_v51 = vld [vmem:[%s7853_s5 + $0x170] sm:$0xff] }
 0x5c0   :  { %3699 = vst.msk [vmem:[#allocation5 + $0x1] sm:$0x1] %vm3533_vm1, %v3697_v5  ;;  %v5377_v5 = vpack.c.bf16 %v3900_v27, %v3899_v61 }
 0x5c2   :  { %v3738_v17 = vpop.permute.xlu1 %3737 }
 0x5c3   :  { %v3710_v57 = vpop.permute.xlu0 %3709  ;;  %3740 = vst.msk [vmem:[#allocation5 + $0x3] sm:$0x1] %vm3533_vm1, %v3738_v17 }
 0x5c4   :  { %3712 = vst.msk [vmem:[#allocation5 + $0x1] sm:$0x1] %vm3547_vm2, %v3710_v57  ;;  %v3884_v57 = vld [vmem:[%s7853_s5 + $0x178] sm:$0xff]  ;;  %s5540_s5 = scalar_lea.vmem %s4079_s27, 32 }
 0x5c5   :  { %v5379_v17 = vpack.c.bf16 %v3884_v57, %v3883_v51  ;;  %p5541_p0 = scmp.ne.s32.totalorder %s4079_s27, %s5540_s5  ;;  %p5546_p2 = scmp.lt.s32.totalorder %s5540_s5, %s5540_s5 }
 0x5c6   :  { %v3751_v49 = vpop.permute.xlu1 %3750 }
 0x5c7   :  { %3753 = vst.msk [vmem:[#allocation5 + $0x3] sm:$0x1] %vm3547_vm2, %v3751_v49  ;;  %v3766_v42 = vpop.permute.xlu0 %3765  ;;  %p5547_p3 = por %p5546_p2, %p5545_p1 }
 0x5c8   :  { %3768 = vst.msk [vmem:[#allocation5 + $0x5] sm:$0x1] %vm3519_vm0, %v3766_v42 }
 0x5c9   :  { %p5548_p4 = pnand %p5547_p3, %p5541_p0 }
 0x5ca   :  { %v3807_v53 = vpop.permute.xlu1 %3806 }
 0x5cb   :  { %v3779_v25 = vpop.permute.xlu0 %3778  ;;  %3809 = vst.msk [vmem:[#allocation5 + $0x7] sm:$0x1] %vm3519_vm0, %v3807_v53  ;;  %v4176_v53 = vld [vmem:[%s7854_s6] ss:$0 sm:$0xff] }
 0x5cc   :  { %3781 = vst.msk [vmem:[#allocation5 + $0x5] sm:$0x1] %vm3533_vm1, %v3779_v25 }
 0x5ce   :  { %v3820_v3 = vpop.permute.xlu1 %3819 }
 0x5cf   :  { %v3792_v35 = vpop.permute.xlu0 %3791  ;;  %3822 = vst.msk [vmem:[#allocation5 + $0x7] sm:$0x1] %vm3533_vm1, %v3820_v3 }
 0x5d0   :  { %3794 = vst.msk [vmem:[#allocation5 + $0x5] sm:$0x1] %vm3547_vm2, %v3792_v35 }
 0x5d2   :  { %v3833_v6 = vpop.permute.xlu1 %3832 }
 0x5d3   :  { %3835 = vst.msk [vmem:[#allocation5 + $0x7] sm:$0x1] %vm3547_vm2, %v3833_v6 }
 0x5da   :  { %v3836_v28 = vld [vmem:[#allocation5] sm:$0xff] }
 0x5db   :  { %v3916_v38 = vrot.slane %v3836_v28, %v3915_v56  ;;  %v3909_v58 = vcombine.high %v3836_v28, %v3836_v28 }
 0x5dd   :  { %v3924_v26 = vcombine.high %v3916_v38, %v3916_v38  ;;  %v3923_v24 = vrot.slane %v3909_v58, %v3915_v56 }
 0x5df   :  { %3994 = vmatprep.mubr.f32.mxu0 %v3924_v26  ;;  %v3925_v47 = vcombine.high %v3923_v24, %v3923_v24 }
 0x5e0   :  { %3995 = vmatmul.mubr.f32.vlgmr.msra.gmra.mrb[110].mxu0 %v3916_v38 }
 0x5e1   :  { %5352 = vmatpush3.bf16.msra.mxu0 %v5351_v48  ;;  %4064 = vmatprep.mubr.f32.mxu0 %v3925_v47 }
 0x5e2   :  { %5354 = vmatprep.subr.bf16.mxu0 %v5353_v8 }
 0x5e5   :  { %5356 = vmatpush3.bf16.msra.mxu0 %v5355_v16 }
 0x5e6   :  { %5358 = vmatprep.subr.bf16.mxu0 %v5357_v60 }
 0x5e9   :  { %5360 = vmatpush3.bf16.msra.mxu0 %v5359_v10 }
 0x5ea   :  { %5362 = vmatprep.subr.bf16.mxu0 %v5361_v14 }
 0x5ed   :  { %5364 = vmatpush3.bf16.msra.mxu0 %v5363_v29 }
 0x5ee   :  { %5366 = vmatprep.subr.bf16.mxu0 %v5365_v4 }
 0x5f1   :  { %5368 = vmatpush3.bf16.msra.mxu0 %v5367_v54 }
 0x5f2   :  { %5370 = vmatprep.subr.bf16.mxu0 %v5369_v55 }
 0x5f5   :  { %5372 = vmatpush3.bf16.msra.mxu0 %v5371_v34 }
 0x5f6   :  { %5374 = vmatprep.subr.bf16.mxu0 %v5373_v36 }
 0x5f9   :  { %5376 = vmatpush3.bf16.msra.mxu0 %v5375_v43 }
 0x5fa   :  { %5378 = vmatprep.subr.bf16.mxu0 %v5377_v5 }
 0x5fd   :  { %5380 = vmatpush3.bf16.msra.mxu0 %v5379_v17 }
 0x600   :  { %4065 = vmatmul.mubr.f32.vlgmr.msra.gmra.mrb[112].mxu0 %v3923_v24 }
 0x6b3   :  { %v4522_v49 = vpop.f32.mrb[110].mxu0 }
 0x6b4   :  { %v4523_v42 = vpop.f32.mrb[111].mxu0 }
 0x6b5   :  { %v4524_v25 = vadd.f32 %v4523_v42, %v4522_v49 }
 0x6b7   :  { %v3997_v15 = vadd.f32 %v4524_v25, %v4176_v53 }
 0x6d3   :  { %v4557_v35 = vpop.f32.mrb[112].mxu0 }
 0x6d4   :  { %v4558_v3 = vpop.f32.mrb[113].mxu0 }
 0x6d5   :  { %v4559_v19 = vadd.f32 %v4558_v3, %v4557_v35 }
 0x6d7   :  { %v4067_v30 = vadd.f32 %v4559_v19, %v3997_v15 }
 0x6d9   :  { %4071 = vst.msk [vmem:[#allocation6] sm:$0x3] %vm4070_vm3, %v4067_v30 }
 0x6da   :  { %5551 = shalt.err (!%p5548_p4)
}
 0x6db   :  { %s5552_s6 = scalar_lea.hbm %s7855_s7, 32 }
 0x6dc   :  { %p5553_p5 = scmp.ne.s32.totalorder %s7855_s7, %s5552_s6  ;;  %p5556_p6 = scmp.lt.u32.totalorder %s5552_s6, %s7855_s7 }
 0x6de   :  { %p5558_p7 = pnand %p5556_p6, %p5553_p5 }
 0x6e0   :  { %5561 = shalt.err (!%p5558_p7)
}
 0x6e1   :  { %4081 = dma.vmem_to_hbm [thread:$0]  %s4079_s27, 32, %s7855_s7, [#allocation7]  }
 0x6e2   :  { %5562 = dma.done.wait [#allocation7], 32  }
 0x6e3   :  { %5563 = vsyncadd [#allocation7], 4294967264 }
 0x6e4   :  { %4085 = vsyncpa [#allocation7], 1 }

</bundles_post_ra>
